<compile_context>
chip_gen: v6e
topology: v6e:2x2x1
jax: 0.10.0
libtpu: 0.0.40
codegen_flags: <defaults>
</compile_context>

<pallas_src>
import jax
import jax.numpy as jnp
from jax.experimental import pallas as pl
from jax.experimental.pallas import tpu as pltpu


def _linear_relu_kernel(x_ref, w_ref, b_ref, o_ref):
    # x_ref: (Mp, K) bf16   w_ref: (K, tn) bf16   b_ref: (1, tn) f32   o_ref: (Mp, tn) f32
    acc = jnp.dot(x_ref[...], w_ref[...], preferred_element_type=jnp.float32)
    o_ref[...] = jnp.maximum(acc + b_ref[...], 0.0)


def prepare_params(W, b, *, tn=640):
    """One-time parameter setup: transpose, pad N to a tn multiple, cast weight to bf16.

    W: (N, K) float32  (nn.Linear weight),  b: (N,) float32.
    Returns (wp: (K, Np) bf16, bp: (1, Np) f32, N).
    """
    N, K = W.shape
    assert tn % 128 == 0
    Np = pl.cdiv(N, tn) * tn
    wp = jnp.zeros((K, Np), jnp.bfloat16).at[:, :N].set(W.T.astype(jnp.bfloat16))
    bp = jnp.zeros((1, Np), jnp.float32).at[0, :N].set(b)
    return wp, bp, N


def linear_for_reshape(x, wp, bp, N, *, tn=640):
    """x: (batch, channels, length) f32; wp: (K, Np) bf16 pre-padded; bp: (1, Np) f32."""
    batch, channels, length = x.shape
    K = batch * length                      # 2128
    Np = wp.shape[1]
    assert wp.shape[0] == K and Np % tn == 0 and N == 100 * length

    # permute(1,0,2).reshape(channels, -1)  -- plain JAX glue (tiny: channels x 2128)
    x2 = jnp.transpose(x, (1, 0, 2)).reshape(channels, K)

    # Pad M to sublane multiple (8) only; K stays 2128 (full-extent / %8 dims).
    Mp = max(8, ((channels + 7) // 8) * 8)
    xp = jnp.zeros((Mp, K), jnp.bfloat16).at[:channels, :].set(x2.astype(jnp.bfloat16))

    cost = pl.CostEstimate(
        flops=2 * Mp * K * Np,
        transcendentals=0,
        bytes_accessed=(xp.size * 2 + wp.size * 2 + bp.size * 4 + Mp * Np * 4),
    )

    out = pl.pallas_call(
        _linear_relu_kernel,
        out_shape=jax.ShapeDtypeStruct((Mp, Np), jnp.float32),
        grid=(Np // tn,),
        in_specs=[
            pl.BlockSpec((Mp, K), lambda j: (0, 0)),    # x: small, resident across N-tiles
            pl.BlockSpec((K, tn), lambda j: (0, j)),    # weight slab streamed over N (bf16)
            pl.BlockSpec((1, tn), lambda j: (0, j)),    # bias slab
        ],
        out_specs=pl.BlockSpec((Mp, tn), lambda j: (0, j)),
        compiler_params=pltpu.CompilerParams(
            dimension_semantics=("parallel",),          # even 6-step N axis -> 2-TC split on v7x
            vmem_limit_bytes=32 << 20,                  # ~6 MB working set; leave headroom on v7x
        ),
        cost_estimate=cost,
    )(xp, wp, bp)

    y = out[:channels, :N]                       # strip padding
    return y.reshape(channels, 100, length)      # .view(channels, 100, length)


if __name__ == "__main__":
    # Shapes implied by the module: batch=56, length=38 (fixed by Linear dims); channels is free.
    batch, channels, length = 56, 4, 38
    in_features, out_features = 56 * 38, 100 * 38   # 2128, 3800

    key = jax.random.PRNGKey(0)
    kx, kw, kb = jax.random.split(key, 3)

    x = jax.random.normal(kx, (batch, channels, length), dtype=jnp.float32)

    # Deterministic nn.Linear-style init: U(-1/sqrt(fan_in), 1/sqrt(fan_in)).
    bound = 1.0 / (in_features ** 0.5)
    W = jax.random.uniform(kw, (out_features, in_features), jnp.float32, -bound, bound)
    b = jax.random.uniform(kb, (out_features,), jnp.float32, -bound, bound)

    # One-time parameter prep (padded, bf16 weight) -- out of the per-call hot path.
    wp, bp, N = prepare_params(W, b, tn=640)

    y = linear_for_reshape(x, wp, bp, N, tn=640)
    jax.block_until_ready(y)

    # Pure-JAX f32 reference check (tolerance relaxed for bf16 weight/activation streaming).
    x2 = jnp.transpose(x, (1, 0, 2)).reshape(channels, -1)
    ref = jnp.maximum(x2 @ W.T + b, 0.0).reshape(channels, 100, length)
    assert y.shape == (channels, 100, length)
    assert jnp.allclose(y, ref, atol=5e-2, rtol=3e-2), float(jnp.max(jnp.abs(y - ref)))

    print("KERNEL_OK")
</pallas_src>

<mosaic_0001>
module attributes {stable_mosaic.version = 11 : i64} {
  func.func @_linear_relu_kernel(%arg0: i32, %arg1: memref<8x2128xbf16, #tpu.memory_space<vmem>>, %arg2: memref<2128x640xbf16, #tpu.memory_space<vmem>>, %arg3: memref<1x640xf32, #tpu.memory_space<vmem>>, %arg4: memref<8x640xf32, #tpu.memory_space<vmem>>) attributes {dimension_semantics = [#tpu.dimension_semantics<parallel>], iteration_bounds = array<i64: 6>, scalar_prefetch = 0 : i64, scratch_operands = 0 : i64, tpu.core_type = #tpu.core_type<tc>, window_params = [{pipeline_mode = #tpu.pipeline_mode<synchronous>, transform_indices = @transform_0, window_bounds = array<i64: 8, 2128>}, {transform_indices = @transform_1, window_bounds = array<i64: 2128, 640>}, {transform_indices = @transform_2, window_bounds = array<i64: 1, 640>}, {transform_indices = @transform_3, window_bounds = array<i64: 8, 640>}]} {
    %c0 = arith.constant 0 : index
    %c0_0 = arith.constant 0 : index
    %0 = vector.load %arg1[%c0, %c0_0] : memref<8x2128xbf16, #tpu.memory_space<vmem>>, vector<8x2128xbf16>
    %c0_1 = arith.constant 0 : index
    %c0_2 = arith.constant 0 : index
    %1 = vector.load %arg2[%c0_1, %c0_2] : memref<2128x640xbf16, #tpu.memory_space<vmem>>, vector<2128x640xbf16>
    %cst = arith.constant dense<0.000000e+00> : vector<8x640xf32>
    %2 = tpu.matmul %0, %1, %cst {dimension_numbers = #tpu.dot_dimension_numbers<[1], [0], [0], [1], [0, 0, 1, 1], [], []>} : vector<8x2128xbf16>, vector<2128x640xbf16>, vector<8x640xf32> -> vector<8x640xf32>
    %c0_3 = arith.constant 0 : index
    %c0_4 = arith.constant 0 : index
    %3 = vector.load %arg3[%c0_3, %c0_4] : memref<1x640xf32, #tpu.memory_space<vmem>>, vector<1x640xf32>
    %4 = vector.broadcast %3 : vector<1x640xf32> to vector<8x640xf32>
    %5 = arith.addf %2, %4 : vector<8x640xf32>
    %cst_5 = arith.constant 0.000000e+00 : f32
    %6 = vector.broadcast %cst_5 : f32 to vector<8x640xf32>
    %7 = arith.maximumf %5, %6 : vector<8x640xf32>
    %c0_6 = arith.constant 0 : index
    %c0_7 = arith.constant 0 : index
    %8 = vector.load %arg4[%c0_6, %c0_7] : memref<8x640xf32, #tpu.memory_space<vmem>>, vector<8x640xf32>
    tpu.vector_store %arg4[%c0_6, %c0_7], %7 {strides = array<i32>} : memref<8x640xf32, #tpu.memory_space<vmem>>, vector<8x640xf32>,
    return
  }
  func.func @transform_0(%arg0: i32) -> (i32, i32) {
    %c0_i32 = arith.constant 0 : i32
    %c0_i32_0 = arith.constant 0 : i32
    %c0_i32_1 = arith.constant 0 : i32
    return %c0_i32, %c0_i32_0 : i32, i32
  }
  func.func @transform_1(%arg0: i32) -> (i32, i32) {
    %c0_i32 = arith.constant 0 : i32
    %c0_i32_0 = arith.constant 0 : i32
    return %c0_i32, %arg0 : i32, i32
  }
  func.func @transform_2(%arg0: i32) -> (i32, i32) {
    %c0_i32 = arith.constant 0 : i32
    %c0_i32_0 = arith.constant 0 : i32
    return %c0_i32, %arg0 : i32, i32
  }
  func.func @transform_3(%arg0: i32) -> (i32, i32) {
    %c0_i32 = arith.constant 0 : i32
    %c0_i32_0 = arith.constant 0 : i32
    return %c0_i32, %arg0 : i32, i32
  }
}

</mosaic_0001>

<bundles_post_ra>
// kernel: tpu_custom_call.1
= control target key start
LH: loop header
LB: loop body
LE: loop exit
PB: predicated region body
PF: predicated region fallthrough
CT: control target
= control target key end

     0   :  { %8 = vsyncpa [#allocation3], 0  ;;  %s8993_s0 = inlined_call_operand.hbm [shape: bf16[8,2128], index: 0, kind: input, shape index: {}]   ;;  %s8994_s1 = inlined_call_operand.hbm [shape: bf16[2128,3840], index: 1, kind: input, shape index: {}]   ;;  %s8995_s2 = inlined_call_operand.hbm [shape: f32[1,3840], index: 2, kind: input, shape index: {}]   ;;  %s8996_s3 = inlined_call_operand.hbm [shape: f32[8,3840], index: 3, kind: output, shape index: {}]  }
   0x1   :  { %9 = vsyncpa [#allocation6], 0 }
   0x2   :  { %11 = vsyncpa [#allocation6 + $0x1], 0 }
   0x3   :  { %12 = vsyncpa [#allocation4], 0 }
   0x4   :  { %14 = vsyncpa [#allocation4 + $0x1], 0  ;;  %s7921_s12 = smov 0   ;;  %s7923_s13 = smov 0  }
   0x5   :  { %s7925_s14 = smov 0   ;;  %s7927_s15 = smov 0  }
   0x6 LB: > { %s7942_s16 = sadd.s32 1, %s7889_s15   ;;  %s48_s17 = sadd.s32 1, %s7885_s14  ;;  %s7889_s15 = sphi %s7927_s15, %s9017_s15   ;;  %s7885_s14 = sphi %s7925_s14, %s9016_s14   ;;  %s7881_s13 = sphi %s7923_s13, %s9015_s13   ;;  %s7877_s12 = sphi %s7921_s12, %s9014_s12  }
   0x7   : > { %s45_s18 = ssub.s32 %s7889_s15, %s7942_s16  ;;  %p55_p0 = scmp.ne.s32.totalorder %s7885_s14, %s7881_s13 }
   0x8   : > { %p46_p1 = scmp.eq.s32.totalorder %s45_s18, 0  ;;  %p56_p2 = scmp.eq.s32.totalorder %s7889_s15, 0 }
   0x9   : > { %p6747_p3 = scmp.lt.s32.totalorder %s7889_s15, 6  ;;  %s148_s20 = sand.u32 1, %s7889_s15  }
   0xa   : > { %s7952_s19 = scalar_select %p46_p1, %s7885_s14, %s48_s17  }
   0xb   : > { %p57_p4 = por %p56_p2, %p55_p0  ;;  %s150_s21 = sand.u32 1, %s7885_s14  }
   0xc   : > { %s6716_s22 = smul.u32 5320, %s150_s21  ;;  %s7973_s30 = scalar_lea.sflag [#allocation6], %s148_s20 }
   0xd   : > { %p7961_p5 = pnand %p6747_p3, %p57_p4  ;;  %s6517_s24 = smul.u32 320, %s7889_s15 }
   0xe   : > { %s152_s28 = scalar_lea.vmem [#allocation5], %s6716_s22  ;;  %s7744_s7 = scalar_lea.hbm %s8994_s1, 510720 }
   0xf   : > { %s7969_s27 = scalar_lea.hbm %s8994_s1, %s6517_s24  ;;  %s159_s29 = sshll.u32 %s152_s28, 4  ;;  %s7971_s29 = int_to_ptr.vmem [resolvable:$true] %s159_s29 }
  0x10   : > { %s7739_s4 = scalar_lea.hbm %s7969_s27, 85120  ;;  %p8998_p7 = pneg %p7961_p5 }
  0x11   : > { %p7740_p6 = scmp.ne.s32.totalorder %s7969_s27, %s7739_s4  ;;  %p7745_p10 = scmp.lt.s32.totalorder %s7969_s27, %s8994_s1 }
  0x12   : > { %p7746_p11 = scmp.lt.s32.totalorder %s7744_s7, %s7739_s4 }
  0x13   : > { %p7742_p8 = pnand %p8998_p7, %p7740_p6 }
  0x14   : > { %p7747_p12 = por %p7746_p11, %p7745_p10 }
  0x15   : > { %p7743_p9 = pneg %p7742_p8 }
  0x17   : > { %p7748_p13 = pnand %p7747_p12, %p7743_p9 }
  0x19   : > { %7751 = shalt.err (!%p7748_p13)
}
  0x1a   : > { %s7752_s10 = scalar_lea.vmem %s7971_s29, 85120  ;;  %s7891_s11 = smov [#allocation5]  }
  0x1b   : > { %p7753_p1 = scmp.ne.s32.totalorder %s7971_s29, %s7752_s10  ;;  %s7757_s17 = sshll.u32 %s7891_s11, 4  ;;  %s7758_s17 = int_to_ptr.vmem [resolvable:$false] %s7757_s17 }
  0x1c   : > { %s7759_s18 = scalar_lea.vmem %s7758_s17, 170240  ;;  %p7760_p4 = scmp.lt.s32.totalorder %s7971_s29, %s7758_s17 }
  0x1d   : > { %p7755_p2 = pnand %p7753_p1, %p8998_p7  ;;  %p7761_p6 = scmp.lt.s32.totalorder %s7759_s18, %s7752_s10 }
  0x1f   : > { %p7756_p3 = pneg %p7755_p2  ;;  %p7762_p8 = por %p7761_p6, %p7760_p4 }
  0x21   : > { %p7763_p10 = pnand %p7762_p8, %p7756_p3 }
  0x23   : > { %7766 = shalt.err (!%p7763_p10)
}
  0x24   : > { %s7892_s20 = smov 1920   ;;  %s7893_s22 = smov 320  }
  0x25   : > { %s7894_s24 = smov 20   ;;  %s8001_s25 = sadd.s32 4294967295, %s7889_s15  }
  0x26   : > { %6738 = dma.hbm_to_vmem [thread:$0]  (!%p7961_p5), %s7969_s27, 85120, %s7971_s29, %s7973_s30, %s7892_s20, %s7893_s22, %s7894_s24  }
  0x27   : > { %s5821_s26 = sadd.s32 4294967294, %s7889_s15   ;;  %p61_p9 = scmp.ne.s32.totalorder %s7881_s13, %s7877_s12 }
  0x28   : > { %p8997_p11 = scmp.eq.s32.totalorder %s8001_s25, 0  ;;  %p111_p12 = scmp.eq.s32.totalorder %s8001_s25, 5 }
  0x29   : > { %p117_p13 = scmp.eq.s32.totalorder %s5821_s26, 5  ;;  %p5822_p1 = scmp.ge.s32.totalorder %s7889_s15, 1 }
  0x2a   : > { %p8011_p2 = por %p8997_p11, %p61_p9  ;;  %p8018_p3 = por %p111_p12, %p55_p0 }
  0x2b   : > { %p8022_p4 = por %p117_p13, %p61_p9  ;;  %p124_p6 = scmp.lt.s32.totalorder %s7889_s15, 7 }
  0x2c   : > { %s9002_s28 = scalar_select %p8011_p2, 1, 0 }
  0x2d   : > { %s9003_s27 = scalar_select %p8018_p3, 1, 0 }
  0x2e   : > { %s9004_s29 = scalar_select %p8022_p4, 1, 0 }
  0x2f   : > { %p8027_p8 = pnand %p5822_p1, %p124_p6  ;;  %s7895_s5 = smov [#allocation2]  }
  0x30   : > { %s137_s6 = sshll.u32 %s7895_s5, 4  ;;  %s6717_s7 = smul.u32 5, %s150_s21  ;;  %s138_s6 = int_to_ptr.vmem [resolvable:$true] %s137_s6 }
  0x31   : > { %p6731_p10 = pneg %p8027_p8  ;;  %s6518_s8 = smul.u32 80, %s7889_s15 }
  0x32   : > { %s173_s18 = scalar_lea.vmem [#allocation7], %s6717_s7  ;;  %s7778_s21 = scalar_lea.vmem %s138_s6, 1088 }
  0x33   : > { %p8038_p0 = pnand %p6731_p10, %p8997_p11  ;;  %s8045_s17 = scalar_lea.hbm %s8995_s2, %s6518_s8 }
  0x34   : > { %s181_s20 = sshll.u32 %s173_s18, 4  ;;  %p7779_p12 = scmp.ne.s32.totalorder %s138_s6, %s7778_s21  ;;  %s8047_s20 = int_to_ptr.vmem [resolvable:$true] %s181_s20 }
  0x35   : > { %p7769_p9 = pneg %p8038_p0  ;;  %p7786_p6 = scmp.lt.s32.totalorder %s138_s6, %s138_s6 }
  0x36   : > { %p7787_p10 = scmp.lt.s32.totalorder %s7778_s21, %s7778_s21 }
  0x37   : > { %p7781_p13 = pnand %p7779_p12, %p7769_p9 }
  0x38   : > { %p7788_p11 = por %p7787_p10, %p7786_p6 }
  0x39   : > { %p7782_p1 = pneg %p7781_p13 }
  0x3b   : > { %p7789_p7 = pnand %p7788_p11, %p7782_p1 }
  0x3d   : > { %7792 = shalt.err (!%p7789_p7)
}
  0x3e   : > { %6734 = dma.hbm_to_vmem [thread:$0]  (!%p8038_p0), %s8993_s0, 1088, %s138_s6, [#allocation3]  }
  0x3f   : > { %s7793_s26 = scalar_lea.hbm %s8045_s17, 80  ;;  %p9007_p9 = pneg %p7961_p5 }
  0x40   : > { %p7794_p4 = scmp.ne.s32.totalorder %s8045_s17, %s7793_s26  ;;  %s7798_s8 = scalar_lea.hbm %s8995_s2, 480 }
  0x41   : > { %p7799_p7 = scmp.lt.s32.totalorder %s8045_s17, %s8995_s2  ;;  %p7800_p11 = scmp.lt.s32.totalorder %s7798_s8, %s7793_s26 }
  0x42   : > { %p7796_p12 = pnand %p7794_p4, %p9007_p9 }
  0x43   : > { %p7801_p1 = por %p7800_p11, %p7799_p7 }
  0x44   : > { %p7797_p13 = pneg %p7796_p12 }
  0x46   : > { %p7802_p6 = pnand %p7801_p1, %p7797_p13 }
  0x48   : > { %7805 = shalt.err (!%p7802_p6)
}
  0x49   : > { %s7806_s6 = scalar_lea.vmem %s8047_s20, 80  ;;  %p9008_p4 = pmov %p9007_p9 }
  0x4a   : > { %p7807_p0 = scmp.ne.s32.totalorder %s8047_s20, %s7806_s6  ;;  %s7896_s11 = smov [#allocation7]  }
  0x4b   : > { %s7811_s18 = sshll.u32 %s7896_s11, 4  ;;  %s7812_s18 = int_to_ptr.vmem [resolvable:$false] %s7811_s18 }
  0x4c   : > { %p7809_p10 = pnand %p7807_p0, %p9008_p4  ;;  %s7813_s21 = scalar_lea.vmem %s7812_s18, 160 }
  0x4d   : > { %p7814_p12 = scmp.lt.s32.totalorder %s8047_s20, %s7812_s18  ;;  %p7815_p3 = scmp.lt.s32.totalorder %s7813_s21, %s7806_s6 }
  0x4e   : > { %p7810_p9 = pneg %p7809_p10 }
  0x4f   : > { %p7816_p2 = por %p7815_p3, %p7814_p12 }
  0x51   : > { %p7817_p7 = pnand %p7816_p2, %p7810_p9 }
  0x53   : > { %7820 = shalt.err (!%p7817_p7)
}
  0x54   : > { %6741 = dma.hbm_to_vmem [thread:$0]  (!%p7961_p5), %s8045_s17, 80, %s8047_s20, %s7973_s30  }
  0x55   : > { %190 = sbr.rel (%p8027_p8) target bundleno = 988 (0x3dc), region = 32  ;;  %p9009_p13 = scmp.eq.s32.totalorder (!%p8027_p8), %s8001_s25, 0 }
  0x5a   : > { %7864 = dma.done.wait (%p9009_p13), [#allocation3], 1088   ;;  %p9010_p11 = pmov %p9009_p13 }
  0x5b   : > { %s196_s22 = sand.u32 1, %s8001_s25   ;;  %s8087_s24 = sand.u32 1, %s7881_s13  }
  0x5c   : > { %7866 = vsyncadd (%p9010_p11), [#allocation3], 4294966208  ;;  %s6718_s23 = smul.u32 5320, %s8087_s24  ;;  %s197_s26 = scalar_lea.sflag [#allocation6], %s196_s22 }
  0x5d   : > { %p9011_p5 = scmp.ne.s32.totalorder %s9002_s28, 0 }
  0x5e   : > { %s8090_s5 = scalar_lea.vmem [#allocation5], %s6718_s23 }
  0x5f   : > { %7868 = dma.done.wait (%p9011_p5), %s197_s26, 85200  }
  0x60   : > { %7870 = vsyncadd (%p9011_p5), %s197_s26, 4294882096  ;;  %v6789_v0 = vld [vmem:[%s8090_s5 + $0x11c] ss:$20 sps:$4 sm:$0xff]   ;;  %v6793_v2 = vld [vmem:[%s8090_s5 + $0x118] ss:$20 sps:$4 sm:$0xff]   ;;  %s6719_s30 = smul.u32 5, %s8087_s24 }
  0x61   : > { %v6791_v1 = vld [vmem:[%s8090_s5 + $0x39c] ss:$20 sps:$4 sm:$0xff]   ;;  %4596 = vmatprep.subr.bf16.mxu0 %v6789_v0  ;;  %v6794_v3 = vld [vmem:[%s8090_s5 + $0x398] ss:$20 sps:$4 sm:$0xff]   ;;  %v6795_v4 = vld [vmem:[%s8090_s5 + $0xf4] ss:$20 sps:$4 sm:$0xff]  }
  0x62   : > { %4637 = vmatprep.subr.bf16.mxu1 %v6791_v1  ;;  %4597 = vmatpush1.bf16.msra.mxu0 %v6793_v2  ;;  %v6797_v5 = vld [vmem:[%s8090_s5 + $0x374] ss:$20 sps:$4 sm:$0xff]   ;;  %v6799_v6 = vld [vmem:[%s8090_s5 + $0xf0] ss:$20 sps:$4 sm:$0xff]   ;;  %v6801_v8 = vld [vmem:[%s8090_s5 + $0xcc] ss:$20 sps:$4 sm:$0xff]  }
  0x63   : > { %4638 = vmatpush1.bf16.msra.mxu1 %v6794_v3  ;;  %4598 = vmatprep.subr.bf16.mxu0 %v6795_v4  ;;  %v6800_v7 = vld [vmem:[%s8090_s5 + $0x370] ss:$20 sps:$4 sm:$0xff]   ;;  %v6803_v9 = vld [vmem:[%s8090_s5 + $0x34c] ss:$20 sps:$4 sm:$0xff]   ;;  %v6805_v10 = vld [vmem:[%s8090_s5 + $0xc8] ss:$20 sps:$4 sm:$0xff]  }
  0x64   : > { %4639 = vmatprep.subr.bf16.mxu1 %v6797_v5  ;;  %v6806_v11 = vld [vmem:[%s8090_s5 + $0x348] ss:$20 sps:$4 sm:$0xff]   ;;  %v6807_v12 = vld [vmem:[%s8090_s5 + $0xa4] ss:$20 sps:$4 sm:$0xff]   ;;  %v6811_v14 = vld [vmem:[%s8090_s5 + $0xa0] ss:$20 sps:$4 sm:$0xff]  }
  0x65   : > { %v6809_v13 = vld [vmem:[%s8090_s5 + $0x324] ss:$20 sps:$4 sm:$0xff]   ;;  %v6812_v15 = vld [vmem:[%s8090_s5 + $0x320] ss:$20 sps:$4 sm:$0xff]   ;;  %v6813_v16 = vld [vmem:[%s8090_s5 + $0x7c] ss:$20 sps:$4 sm:$0xff]  }
  0x66   : > { %4599 = vmatpush1.bf16.msra.mxu0 %v6799_v6  ;;  %v6815_v17 = vld [vmem:[%s8090_s5 + $0x2fc] ss:$20 sps:$4 sm:$0xff]   ;;  %v6817_v18 = vld [vmem:[%s8090_s5 + $0x78] ss:$20 sps:$4 sm:$0xff]   ;;  %v6819_v20 = vld [vmem:[%s8090_s5 + $0x54] ss:$20 sps:$4 sm:$0xff]  }
  0x67   : > { %4640 = vmatpush1.bf16.msra.mxu1 %v6800_v7  ;;  %4600 = vmatprep.subr.bf16.mxu0 %v6801_v8  ;;  %v6818_v19 = vld [vmem:[%s8090_s5 + $0x2f8] ss:$20 sps:$4 sm:$0xff]   ;;  %v6821_v21 = vld [vmem:[%s8090_s5 + $0x2d4] ss:$20 sps:$4 sm:$0xff]   ;;  %v6823_v22 = vld [vmem:[%s8090_s5 + $0x50] ss:$20 sps:$4 sm:$0xff]  }
  0x68   : > { %4641 = vmatprep.subr.bf16.mxu1 %v6803_v9  ;;  %v6824_v23 = vld [vmem:[%s8090_s5 + $0x2d0] ss:$20 sps:$4 sm:$0xff]   ;;  %v6825_v24 = vld [vmem:[%s8090_s5 + $0x2c] ss:$20 sps:$4 sm:$0xff]   ;;  %v6829_v26 = vld [vmem:[%s8090_s5 + $0x28] ss:$20 sps:$4 sm:$0xff]  }
  0x69   : > { %v6827_v25 = vld [vmem:[%s8090_s5 + $0x2ac] ss:$20 sps:$4 sm:$0xff]   ;;  %v6830_v27 = vld [vmem:[%s8090_s5 + $0x2a8] ss:$20 sps:$4 sm:$0xff]   ;;  %v6831_v28 = vld [vmem:[%s8090_s5 + $0x4] ss:$20 sps:$4 sm:$0xff]  }
  0x6a   : > { %4601 = vmatpush1.bf16.msra.mxu0 %v6805_v10  ;;  %v6833_v29 = vld [vmem:[%s8090_s5 + $0x284] ss:$20 sps:$4 sm:$0xff]   ;;  %v6835_v30 = vld [vmem:[%s8090_s5] ss:$20 sps:$4 sm:$0xff]   ;;  %v6837_v32 = vld [vmem:[%s8090_s5 + $0x25c] ss:$20 sps:$4 sm:$0xff]  }
  0x6b   : > { %4642 = vmatpush1.bf16.msra.mxu1 %v6806_v11  ;;  %4602 = vmatprep.subr.bf16.mxu0 %v6807_v12  ;;  %v6836_v31 = vld [vmem:[%s8090_s5 + $0x280] ss:$20 sps:$4 sm:$0xff]   ;;  %v6839_v33 = vld [vmem:[%s8090_s5 + $0x4dc] ss:$20 sps:$4 sm:$0xff]   ;;  %v6841_v34 = vld [vmem:[%s8090_s5 + $0x258] ss:$20 sps:$4 sm:$0xff]  }
  0x6c   : > { %4643 = vmatprep.subr.bf16.mxu1 %v6809_v13  ;;  %v6842_v35 = vld [vmem:[%s8090_s5 + $0x4d8] ss:$20 sps:$4 sm:$0xff]   ;;  %v6843_v36 = vld [vmem:[%s8090_s5 + $0x234] ss:$20 sps:$4 sm:$0xff]   ;;  %v6847_v38 = vld [vmem:[%s8090_s5 + $0x230] ss:$20 sps:$4 sm:$0xff]  }
  0x6d   : > { %v6845_v37 = vld [vmem:[%s8090_s5 + $0x4b4] ss:$20 sps:$4 sm:$0xff]   ;;  %v6848_v39 = vld [vmem:[%s8090_s5 + $0x4b0] ss:$20 sps:$4 sm:$0xff]   ;;  %v6849_v40 = vld [vmem:[%s8090_s5 + $0x20c] ss:$20 sps:$4 sm:$0xff]  }
  0x6e   : > { %4603 = vmatpush1.bf16.msra.mxu0 %v6811_v14  ;;  %v6851_v41 = vld [vmem:[%s8090_s5 + $0x48c] ss:$20 sps:$4 sm:$0xff]   ;;  %v6853_v42 = vld [vmem:[%s8090_s5 + $0x208] ss:$20 sps:$4 sm:$0xff]   ;;  %v6855_v44 = vld [vmem:[%s8090_s5 + $0x1e4] ss:$20 sps:$4 sm:$0xff]  }
  0x6f   : > { %4644 = vmatpush1.bf16.msra.mxu1 %v6812_v15  ;;  %4604 = vmatprep.subr.bf16.mxu0 %v6813_v16  ;;  %v6854_v43 = vld [vmem:[%s8090_s5 + $0x488] ss:$20 sps:$4 sm:$0xff]   ;;  %v6857_v45 = vld [vmem:[%s8090_s5 + $0x464] ss:$20 sps:$4 sm:$0xff]   ;;  %v6859_v49 = vld [vmem:[%s8090_s5 + $0x1e0] ss:$20 sps:$4 sm:$0xff]  }
  0x70   : > { %4645 = vmatprep.subr.bf16.mxu1 %v6815_v17  ;;  %v241_v46 = vld [vmem:[#allocation2] sm:$0xff]  ;;  %v242_v48 = vld [vmem:[#allocation2 + $0x8] sm:$0xff]  ;;  %s8429_s28 = scalar_lea.vmem [#allocation7], %s6719_s30  ;;  %vm4592_vm0 = vcmask 654336   ;;  %s6720_s4 = smul.u32 40, %s8087_s24  ;;  %vm7899_vm1 = vmmov 0  }
  0x71   : > { %v8142_v47 = vcombine.high %v241_v46, %v241_v46  ;;  %v6860_v50 = vld [vmem:[%s8090_s5 + $0x460] ss:$20 sps:$4 sm:$0xff]   ;;  %v8146_v51 = vcombine.high %v242_v48, %v242_v48  ;;  %v6861_v52 = vld [vmem:[%s8090_s5 + $0x1bc] ss:$20 sps:$4 sm:$0xff]   ;;  %v6865_v54 = vld [vmem:[%s8090_s5 + $0x1b8] ss:$20 sps:$4 sm:$0xff]   ;;  %v8168_v6 = vcombine.low %v241_v46, %v241_v46  ;;  %v8170_v7 = vcombine.low %v242_v48, %v242_v48 }
  0x72   : > { %4605 = vmatpush1.bf16.msra.mxu0 %v6817_v18  ;;  %v6863_v53 = vld [vmem:[%s8090_s5 + $0x43c] ss:$20 sps:$4 sm:$0xff]   ;;  %v6866_v55 = vld [vmem:[%s8090_s5 + $0x438] ss:$20 sps:$4 sm:$0xff]   ;;  %v6867_v56 = vld [vmem:[%s8090_s5 + $0x194] ss:$20 sps:$4 sm:$0xff]  }
  0x73   : > { %4646 = vmatpush1.bf16.msra.mxu1 %v6818_v19  ;;  %4606 = vmatprep.subr.bf16.mxu0 %v6819_v20  ;;  %v6869_v57 = vld [vmem:[%s8090_s5 + $0x414] ss:$20 sps:$4 sm:$0xff]   ;;  %v6871_v58 = vld [vmem:[%s8090_s5 + $0x190] ss:$20 sps:$4 sm:$0xff]   ;;  %v6873_v60 = vld [vmem:[%s8090_s5 + $0x16c] ss:$20 sps:$4 sm:$0xff]  }
  0x74   : > { %4647 = vmatprep.subr.bf16.mxu1 %v6821_v21  ;;  %4628 = vmatprep.mubr.bf16.mxu0 %v8142_v47  ;;  %v6872_v59 = vld [vmem:[%s8090_s5 + $0x410] ss:$20 sps:$4 sm:$0xff]   ;;  %v6875_v61 = vld [vmem:[%s8090_s5 + $0x3ec] ss:$20 sps:$4 sm:$0xff]   ;;  %v6877_v62 = vld [vmem:[%s8090_s5 + $0x168] ss:$20 sps:$4 sm:$0xff]  }
  0x75   : > { %4669 = vmatprep.mubr.bf16.mxu1 %v8146_v51  ;;  %v6878_v63 = vld [vmem:[%s8090_s5 + $0x3e8] ss:$20 sps:$4 sm:$0xff]   ;;  %v6879_v0 = vld [vmem:[%s8090_s5 + $0x144] ss:$20 sps:$4 sm:$0xff]   ;;  %v6883_v2 = vld [vmem:[%s8090_s5 + $0x140] ss:$20 sps:$4 sm:$0xff]  }
  0x76   : > { %4607 = vmatpush1.bf16.msra.mxu0 %v6823_v22  ;;  %v6881_v1 = vld [vmem:[%s8090_s5 + $0x3c4] ss:$20 sps:$4 sm:$0xff]   ;;  %v6884_v3 = vld [vmem:[%s8090_s5 + $0x3c0] ss:$20 sps:$4 sm:$0xff]   ;;  %v6890_v4 = vld [vmem:[%s8090_s5 + $0x61c] ss:$20 sps:$4 sm:$0xff]  }
  0x77   : > { %4648 = vmatpush1.bf16.msra.mxu1 %v6824_v23  ;;  %4608 = vmatprep.subr.bf16.mxu0 %v6825_v24  ;;  %v6893_v5 = vld [vmem:[%s8090_s5 + $0x89c] ss:$20 sps:$4 sm:$0xff]   ;;  %v6888_v8 = vld [vmem:[%s8090_s5 + $0x618] ss:$20 sps:$4 sm:$0xff]   ;;  %v6897_v10 = vld [vmem:[%s8090_s5 + $0x5f4] ss:$20 sps:$4 sm:$0xff]  }
  0x78   : > { %4649 = vmatprep.subr.bf16.mxu1 %v6827_v25  ;;  %v6891_v9 = vld [vmem:[%s8090_s5 + $0x898] ss:$20 sps:$4 sm:$0xff]   ;;  %v6900_v11 = vld [vmem:[%s8090_s5 + $0x874] ss:$20 sps:$4 sm:$0xff]   ;;  %v6895_v12 = vld [vmem:[%s8090_s5 + $0x5f0] ss:$20 sps:$4 sm:$0xff]  }
  0x79   : > { %v6898_v13 = vld [vmem:[%s8090_s5 + $0x870] ss:$20 sps:$4 sm:$0xff]   ;;  %v6903_v14 = vld [vmem:[%s8090_s5 + $0x5cc] ss:$20 sps:$4 sm:$0xff]   ;;  %v6901_v16 = vld [vmem:[%s8090_s5 + $0x5c8] ss:$20 sps:$4 sm:$0xff]  }
  0x7a   : > { %4609 = vmatpush1.bf16.msra.mxu0 %v6829_v26  ;;  %v6906_v15 = vld [vmem:[%s8090_s5 + $0x84c] ss:$20 sps:$4 sm:$0xff]   ;;  %v6904_v17 = vld [vmem:[%s8090_s5 + $0x848] ss:$20 sps:$4 sm:$0xff]   ;;  %v6909_v18 = vld [vmem:[%s8090_s5 + $0x5a4] ss:$20 sps:$4 sm:$0xff]  }
  0x7b   : > { %4650 = vmatpush1.bf16.msra.mxu1 %v6830_v27  ;;  %4610 = vmatprep.subr.bf16.mxu0 %v6831_v28  ;;  %v6912_v19 = vld [vmem:[%s8090_s5 + $0x824] ss:$20 sps:$4 sm:$0xff]   ;;  %v6907_v20 = vld [vmem:[%s8090_s5 + $0x5a0] ss:$20 sps:$4 sm:$0xff]   ;;  %v6915_v22 = vld [vmem:[%s8090_s5 + $0x57c] ss:$20 sps:$4 sm:$0xff]  }
  0x7c   : > { %4651 = vmatprep.subr.bf16.mxu1 %v6833_v29  ;;  %v6910_v21 = vld [vmem:[%s8090_s5 + $0x820] ss:$20 sps:$4 sm:$0xff]   ;;  %v6918_v23 = vld [vmem:[%s8090_s5 + $0x7fc] ss:$20 sps:$4 sm:$0xff]   ;;  %v6913_v24 = vld [vmem:[%s8090_s5 + $0x578] ss:$20 sps:$4 sm:$0xff]  }
  0x7d   : > { %v6916_v25 = vld [vmem:[%s8090_s5 + $0x7f8] ss:$20 sps:$4 sm:$0xff]   ;;  %v6921_v26 = vld [vmem:[%s8090_s5 + $0x554] ss:$20 sps:$4 sm:$0xff]   ;;  %v6919_v28 = vld [vmem:[%s8090_s5 + $0x550] ss:$20 sps:$4 sm:$0xff]  }
  0x7e   : > { %4611 = vmatpush1.bf16.msra.mxu0 %v6835_v30  ;;  %v6924_v27 = vld [vmem:[%s8090_s5 + $0x7d4] ss:$20 sps:$4 sm:$0xff]   ;;  %v6922_v29 = vld [vmem:[%s8090_s5 + $0x7d0] ss:$20 sps:$4 sm:$0xff]   ;;  %v6927_v30 = vld [vmem:[%s8090_s5 + $0x52c] ss:$20 sps:$4 sm:$0xff]  }
  0x7f   : > { %4652 = vmatpush1.bf16.msra.mxu1 %v6836_v31  ;;  %4612 = vmatprep.subr.bf16.mxu0 %v6837_v32  ;;  %v6930_v31 = vld [vmem:[%s8090_s5 + $0x7ac] ss:$20 sps:$4 sm:$0xff]   ;;  %v6945_v46 = vld [vmem:[%s8090_s5 + $0x734] ss:$20 sps:$4 sm:$0xff]   ;;  %s8703_s17 = scalar_lea.vmem [#allocation8], %s6720_s4  ;;  %s6519_s20 = smul.u32 640, %s8001_s25 }
  0x80   : > { %4653 = vmatprep.subr.bf16.mxu1 %v6839_v33  ;;  %v8198_v32 = vld [vmem:[#allocation2 + $0x10] sm:$0xff]  ;;  %v8200_v33 = vld [vmem:[#allocation2 + $0x18] sm:$0xff]  ;;  %s5719_s7 = sshll.u32 %s8703_s17, 4  ;;  %s5705_s6 = scalar_lea.sflag [#allocation4], %s8087_s24  ;;  %s8952_s7 = int_to_ptr.vmem [resolvable:$true] %s5719_s7 }
  0x81   : > { %v6948_v48 = vld [vmem:[%s8090_s5 + $0x9b4] ss:$20 sps:$4 sm:$0xff]   ;;  %s8950_s9 = scalar_lea.hbm %s8996_s3, %s6519_s20  ;;  %s7821_s25 = scalar_lea.vmem %s8952_s7, 640 }
  0x82   : > { %4613 = vmatpush2.bf16.msra.mxu0 %v6841_v34  ;;  %v6925_v34 = vld [vmem:[%s8090_s5 + $0x528] ss:$20 sps:$4 sm:$0xff]   ;;  %p7822_p2 = scmp.ne.s32.totalorder %s8952_s7, %s7821_s25  ;;  %p9012_p3 = scmp.ne.s32.totalorder %s9003_s27, 0 }
  0x83   : > { %4654 = vmatpush2.bf16.msra.mxu1 %v6842_v35  ;;  %4614 = vmatprep.subr.bf16.mxu0 %v6843_v36  ;;  %v6928_v35 = vld [vmem:[%s8090_s5 + $0x7a8] ss:$20 sps:$4 sm:$0xff]   ;;  %v8206_v36 = vcombine.high %v8198_v32, %v8198_v32  ;;  %s7900_s11 = smov [#allocation8]  }
  0x84   : > { %4655 = vmatprep.subr.bf16.mxu1 %v6845_v37  ;;  %v8210_v37 = vcombine.high %v8200_v33, %v8200_v33  ;;  %p7823_p8 = pnand %p7822_p2, %p9012_p3  ;;  %s7825_s18 = sshll.u32 %s7900_s11, 4  ;;  %s7826_s18 = int_to_ptr.vmem [resolvable:$false] %s7825_s18 }
  0x85   : > { %s7827_s21 = scalar_lea.vmem %s7826_s18, 1280  ;;  %p7828_p6 = scmp.lt.s32.totalorder %s8952_s7, %s7826_s18 }
  0x86   : > { %4615 = vmatpush2.bf16.msra.mxu0 %v6847_v38  ;;  %v6933_v38 = vld [vmem:[%s8090_s5 + $0x504] ss:$20 sps:$4 sm:$0xff]   ;;  %p7824_p1 = pneg %p7823_p8  ;;  %p7829_p0 = scmp.lt.s32.totalorder %s7827_s21, %s7821_s25 }
  0x87   : > { %4656 = vmatpush2.bf16.msra.mxu1 %v6848_v39  ;;  %4616 = vmatprep.subr.bf16.mxu0 %v6849_v40  ;;  %v6936_v39 = vld [vmem:[%s8090_s5 + $0x784] ss:$20 sps:$4 sm:$0xff]   ;;  %v6931_v40 = vld [vmem:[%s8090_s5 + $0x500] ss:$20 sps:$4 sm:$0xff]  }
  0x88   : > { %4657 = vmatprep.subr.bf16.mxu1 %v6851_v41  ;;  %v6934_v41 = vld [vmem:[%s8090_s5 + $0x780] ss:$20 sps:$4 sm:$0xff]   ;;  %p7830_p4 = por %p7829_p0, %p7828_p6 }
  0x8a   : > { %4617 = vmatpush2.bf16.msra.mxu0 %v6853_v42  ;;  %v6939_v42 = vld [vmem:[%s8090_s5 + $0x75c] ss:$20 sps:$4 sm:$0xff]   ;;  %p7831_p10 = pnand %p7830_p4, %p7824_p1 }
  0x8b   : > { %4658 = vmatpush2.bf16.msra.mxu1 %v6854_v43  ;;  %4618 = vmatprep.subr.bf16.mxu0 %v6855_v44  ;;  %v6942_v43 = vld [vmem:[%s8090_s5 + $0x9dc] ss:$20 sps:$4 sm:$0xff]   ;;  %v6937_v44 = vld [vmem:[%s8090_s5 + $0x758] ss:$20 sps:$4 sm:$0xff]  }
  0x8c   : > { %4659 = vmatprep.subr.bf16.mxu1 %v6857_v45  ;;  %v6940_v45 = vld [vmem:[%s8090_s5 + $0x9d8] ss:$20 sps:$4 sm:$0xff]  }
  0x8e   : > { %4619 = vmatpush2.bf16.msra.mxu0 %v6859_v49  ;;  %v6943_v49 = vld [vmem:[%s8090_s5 + $0x730] ss:$20 sps:$4 sm:$0xff]  }
  0x8f   : > { %4660 = vmatpush2.bf16.msra.mxu1 %v6860_v50  ;;  %4620 = vmatprep.subr.bf16.mxu0 %v6861_v52  ;;  %v6946_v50 = vld [vmem:[%s8090_s5 + $0x9b0] ss:$20 sps:$4 sm:$0xff]   ;;  %v6951_v52 = vld [vmem:[%s8090_s5 + $0x70c] ss:$20 sps:$4 sm:$0xff]  }
  0x90   : > { %4661 = vmatprep.subr.bf16.mxu1 %v6863_v53  ;;  %v6954_v53 = vld [vmem:[%s8090_s5 + $0x98c] ss:$20 sps:$4 sm:$0xff]  }
  0x92   : > { %4621 = vmatpush2.bf16.msra.mxu0 %v6865_v54  ;;  %v6949_v54 = vld [vmem:[%s8090_s5 + $0x708] ss:$20 sps:$4 sm:$0xff]  }
  0x93   : > { %4662 = vmatpush2.bf16.msra.mxu1 %v6866_v55  ;;  %4622 = vmatprep.subr.bf16.mxu0 %v6867_v56  ;;  %v6952_v55 = vld [vmem:[%s8090_s5 + $0x988] ss:$20 sps:$4 sm:$0xff]   ;;  %v6957_v56 = vld [vmem:[%s8090_s5 + $0x6e4] ss:$20 sps:$4 sm:$0xff]  }
  0x94   : > { %4663 = vmatprep.subr.bf16.mxu1 %v6869_v57  ;;  %v6960_v57 = vld [vmem:[%s8090_s5 + $0x964] ss:$20 sps:$4 sm:$0xff]  }
  0x96   : > { %4623 = vmatpush2.bf16.msra.mxu0 %v6871_v58  ;;  %v6955_v58 = vld [vmem:[%s8090_s5 + $0x6e0] ss:$20 sps:$4 sm:$0xff]  }
  0x97   : > { %4664 = vmatpush2.bf16.msra.mxu1 %v6872_v59  ;;  %4624 = vmatprep.subr.bf16.mxu0 %v6873_v60  ;;  %v6958_v59 = vld [vmem:[%s8090_s5 + $0x960] ss:$20 sps:$4 sm:$0xff]   ;;  %v6963_v60 = vld [vmem:[%s8090_s5 + $0x6bc] ss:$20 sps:$4 sm:$0xff]  }
  0x98   : > { %4665 = vmatprep.subr.bf16.mxu1 %v6875_v61  ;;  %v6966_v61 = vld [vmem:[%s8090_s5 + $0x93c] ss:$20 sps:$4 sm:$0xff]  }
  0x9a   : > { %4625 = vmatpush2.bf16.msra.mxu0 %v6877_v62  ;;  %v6961_v62 = vld [vmem:[%s8090_s5 + $0x6b8] ss:$20 sps:$4 sm:$0xff]  }
  0x9b   : > { %4666 = vmatpush2.bf16.msra.mxu1 %v6878_v63  ;;  %4626 = vmatprep.subr.bf16.mxu0 %v6879_v0  ;;  %v6964_v63 = vld [vmem:[%s8090_s5 + $0x938] ss:$20 sps:$4 sm:$0xff]   ;;  %v6969_v0 = vld [vmem:[%s8090_s5 + $0x694] ss:$20 sps:$4 sm:$0xff]  }
  0x9c   : > { %4667 = vmatprep.subr.bf16.mxu1 %v6881_v1  ;;  %v6972_v1 = vld [vmem:[%s8090_s5 + $0x914] ss:$20 sps:$4 sm:$0xff]  }
  0x9e   : > { %4627 = vmatpush2.bf16.msra.mxu0 %v6883_v2  ;;  %v6967_v2 = vld [vmem:[%s8090_s5 + $0x690] ss:$20 sps:$4 sm:$0xff]  }
  0x9f   : > { %4668 = vmatpush2.bf16.msra.mxu1 %v6884_v3  ;;  %4678 = vmatprep.subr.bf16.mxu0 %v6890_v4  ;;  %v6970_v3 = vld [vmem:[%s8090_s5 + $0x910] ss:$20 sps:$4 sm:$0xff]   ;;  %v6975_v4 = vld [vmem:[%s8090_s5 + $0x66c] ss:$20 sps:$4 sm:$0xff]  }
  0xa0   : > { %4719 = vmatprep.subr.bf16.mxu1 %v6893_v5  ;;  %v6978_v5 = vld [vmem:[%s8090_s5 + $0x8ec] ss:$20 sps:$4 sm:$0xff]  }
  0xa1   : > { %4629 = vmatmul.mubr.bf16.vlgmr.msra.gmra.mxu0 %v8168_v6 }
  0xa2   : > { %4670 = vmatmul.mubr.bf16.vlgmr.msra.gmra.mxu1 %v8170_v7  ;;  %4679 = vmatpush1.bf16.msra.mxu0 %v6888_v8  ;;  %v6973_v8 = vld [vmem:[%s8090_s5 + $0x668] ss:$20 sps:$4 sm:$0xff]  }
  0xa3   : > { %4720 = vmatpush1.bf16.msra.mxu1 %v6891_v9  ;;  %4680 = vmatprep.subr.bf16.mxu0 %v6897_v10  ;;  %v6976_v9 = vld [vmem:[%s8090_s5 + $0x8e8] ss:$20 sps:$4 sm:$0xff]   ;;  %v6981_v10 = vld [vmem:[%s8090_s5 + $0x644] ss:$20 sps:$4 sm:$0xff]  }
  0xa4   : > { %4721 = vmatprep.subr.bf16.mxu1 %v6900_v11  ;;  %4710 = vmatprep.mubr.bf16.mxu0 %v8206_v36  ;;  %v6984_v11 = vld [vmem:[%s8090_s5 + $0x8c4] ss:$20 sps:$4 sm:$0xff]  }
  0xa5   : > { %4751 = vmatprep.mubr.bf16.mxu1 %v8210_v37 }
  0xa6   : > { %4681 = vmatpush1.bf16.msra.mxu0 %v6895_v12  ;;  %v6979_v12 = vld [vmem:[%s8090_s5 + $0x640] ss:$20 sps:$4 sm:$0xff]  }
  0xa7   : > { %4722 = vmatpush1.bf16.msra.mxu1 %v6898_v13  ;;  %4682 = vmatprep.subr.bf16.mxu0 %v6903_v14  ;;  %v6982_v13 = vld [vmem:[%s8090_s5 + $0x8c0] ss:$20 sps:$4 sm:$0xff]   ;;  %v6991_v14 = vld [vmem:[%s8090_s5 + $0xb1c] ss:$20 sps:$4 sm:$0xff]  }
  0xa8   : > { %4723 = vmatprep.subr.bf16.mxu1 %v6906_v15  ;;  %v6994_v15 = vld [vmem:[%s8090_s5 + $0xd9c] ss:$20 sps:$4 sm:$0xff]  }
  0xaa   : > { %4683 = vmatpush1.bf16.msra.mxu0 %v6901_v16  ;;  %v8254_v16 = vcombine.low %v8198_v32, %v8198_v32  ;;  %v7009_v32 = vld [vmem:[%s8090_s5 + $0xaa4] ss:$20 sps:$4 sm:$0xff]  }
  0xab   : > { %4724 = vmatpush1.bf16.msra.mxu1 %v6904_v17  ;;  %4684 = vmatprep.subr.bf16.mxu0 %v6909_v18  ;;  %v8258_v17 = vcombine.low %v8200_v33, %v8200_v33  ;;  %v6989_v18 = vld [vmem:[%s8090_s5 + $0xb18] ss:$20 sps:$4 sm:$0xff]  }
  0xac   : > { %4725 = vmatprep.subr.bf16.mxu1 %v6912_v19  ;;  %v6992_v19 = vld [vmem:[%s8090_s5 + $0xd98] ss:$20 sps:$4 sm:$0xff]  }
  0xad   : > { %v7012_v33 = vld [vmem:[%s8090_s5 + $0xd24] ss:$20 sps:$4 sm:$0xff]  }
  0xae   : > { %4685 = vmatpush1.bf16.msra.mxu0 %v6907_v20  ;;  %v6997_v20 = vld [vmem:[%s8090_s5 + $0xaf4] ss:$20 sps:$4 sm:$0xff]  }
  0xaf   : > { %4726 = vmatpush1.bf16.msra.mxu1 %v6910_v21  ;;  %4686 = vmatprep.subr.bf16.mxu0 %v6915_v22  ;;  %v7000_v21 = vld [vmem:[%s8090_s5 + $0xd74] ss:$20 sps:$4 sm:$0xff]  }
  0xb0   : > { %4727 = vmatprep.subr.bf16.mxu1 %v6918_v23  ;;  %v8264_v22 = vld [vmem:[#allocation2 + $0x20] sm:$0xff]  ;;  %v8266_v23 = vld [vmem:[#allocation2 + $0x28] sm:$0xff] }
  0xb2   : > { %4687 = vmatpush1.bf16.msra.mxu0 %v6913_v24  ;;  %v8270_v24 = vcombine.high %v8264_v22, %v8264_v22 }
  0xb3   : > { %4728 = vmatpush1.bf16.msra.mxu1 %v6916_v25  ;;  %4688 = vmatprep.subr.bf16.mxu0 %v6921_v26  ;;  %v8274_v25 = vcombine.high %v8266_v23, %v8266_v23  ;;  %v6995_v26 = vld [vmem:[%s8090_s5 + $0xaf0] ss:$20 sps:$4 sm:$0xff]  }
  0xb4   : > { %4729 = vmatprep.subr.bf16.mxu1 %v6924_v27  ;;  %v6998_v27 = vld [vmem:[%s8090_s5 + $0xd70] ss:$20 sps:$4 sm:$0xff]  }
  0xb6   : > { %4689 = vmatpush1.bf16.msra.mxu0 %v6919_v28  ;;  %v7003_v28 = vld [vmem:[%s8090_s5 + $0xacc] ss:$20 sps:$4 sm:$0xff]  }
  0xb7   : > { %4730 = vmatpush1.bf16.msra.mxu1 %v6922_v29  ;;  %4690 = vmatprep.subr.bf16.mxu0 %v6927_v30  ;;  %v7006_v29 = vld [vmem:[%s8090_s5 + $0xd4c] ss:$20 sps:$4 sm:$0xff]   ;;  %v7001_v30 = vld [vmem:[%s8090_s5 + $0xac8] ss:$20 sps:$4 sm:$0xff]  }
  0xb8   : > { %4731 = vmatprep.subr.bf16.mxu1 %v6930_v31  ;;  %v7004_v31 = vld [vmem:[%s8090_s5 + $0xd48] ss:$20 sps:$4 sm:$0xff]  }
  0xba   : > { %4691 = vmatpush1.bf16.msra.mxu0 %v6925_v34  ;;  %v7007_v34 = vld [vmem:[%s8090_s5 + $0xaa0] ss:$20 sps:$4 sm:$0xff]  }
  0xbb   : > { %4732 = vmatpush1.bf16.msra.mxu1 %v6928_v35  ;;  %4692 = vmatprep.subr.bf16.mxu0 %v6933_v38  ;;  %v7010_v35 = vld [vmem:[%s8090_s5 + $0xd20] ss:$20 sps:$4 sm:$0xff]   ;;  %v7015_v38 = vld [vmem:[%s8090_s5 + $0xa7c] ss:$20 sps:$4 sm:$0xff]  }
  0xbc   : > { %4733 = vmatprep.subr.bf16.mxu1 %v6936_v39  ;;  %v7018_v39 = vld [vmem:[%s8090_s5 + $0xcfc] ss:$20 sps:$4 sm:$0xff]  }
  0xbe   : > { %4693 = vmatpush1.bf16.msra.mxu0 %v6931_v40  ;;  %v7013_v40 = vld [vmem:[%s8090_s5 + $0xa78] ss:$20 sps:$4 sm:$0xff]  }
  0xbf   : > { %4734 = vmatpush1.bf16.msra.mxu1 %v6934_v41  ;;  %4694 = vmatprep.subr.bf16.mxu0 %v6939_v42  ;;  %v7016_v41 = vld [vmem:[%s8090_s5 + $0xcf8] ss:$20 sps:$4 sm:$0xff]   ;;  %v7021_v42 = vld [vmem:[%s8090_s5 + $0xa54] ss:$20 sps:$4 sm:$0xff]  }
  0xc0   : > { %4735 = vmatprep.subr.bf16.mxu1 %v6942_v43  ;;  %v7024_v43 = vld [vmem:[%s8090_s5 + $0xcd4] ss:$20 sps:$4 sm:$0xff]  }
  0xc2   : > { %4695 = vmatpush2.bf16.msra.mxu0 %v6937_v44  ;;  %v7019_v44 = vld [vmem:[%s8090_s5 + $0xa50] ss:$20 sps:$4 sm:$0xff]  }
  0xc3   : > { %4736 = vmatpush2.bf16.msra.mxu1 %v6940_v45  ;;  %4696 = vmatprep.subr.bf16.mxu0 %v6945_v46  ;;  %v7022_v45 = vld [vmem:[%s8090_s5 + $0xcd0] ss:$20 sps:$4 sm:$0xff]   ;;  %v7027_v46 = vld [vmem:[%s8090_s5 + $0xa2c] ss:$20 sps:$4 sm:$0xff]  }
  0xc4   : > { %4737 = vmatprep.subr.bf16.mxu1 %v6948_v48  ;;  %v7030_v48 = vld [vmem:[%s8090_s5 + $0xcac] ss:$20 sps:$4 sm:$0xff]  }
  0xc6   : > { %4697 = vmatpush2.bf16.msra.mxu0 %v6943_v49  ;;  %v7025_v49 = vld [vmem:[%s8090_s5 + $0xa28] ss:$20 sps:$4 sm:$0xff]  }
  0xc7   : > { %4738 = vmatpush2.bf16.msra.mxu1 %v6946_v50  ;;  %4698 = vmatprep.subr.bf16.mxu0 %v6951_v52  ;;  %v7028_v50 = vld [vmem:[%s8090_s5 + $0xca8] ss:$20 sps:$4 sm:$0xff]   ;;  %v7033_v52 = vld [vmem:[%s8090_s5 + $0xa04] ss:$20 sps:$4 sm:$0xff]  }
  0xc8   : > { %4739 = vmatprep.subr.bf16.mxu1 %v6954_v53  ;;  %v7036_v53 = vld [vmem:[%s8090_s5 + $0xc84] ss:$20 sps:$4 sm:$0xff]  }
  0xca   : > { %4699 = vmatpush2.bf16.msra.mxu0 %v6949_v54  ;;  %v7031_v54 = vld [vmem:[%s8090_s5 + $0xa00] ss:$20 sps:$4 sm:$0xff]  }
  0xcb   : > { %4740 = vmatpush2.bf16.msra.mxu1 %v6952_v55  ;;  %4700 = vmatprep.subr.bf16.mxu0 %v6957_v56  ;;  %v7034_v55 = vld [vmem:[%s8090_s5 + $0xc80] ss:$20 sps:$4 sm:$0xff]   ;;  %v7039_v56 = vld [vmem:[%s8090_s5 + $0xc5c] ss:$20 sps:$4 sm:$0xff]  }
  0xcc   : > { %4741 = vmatprep.subr.bf16.mxu1 %v6960_v57  ;;  %v7042_v57 = vld [vmem:[%s8090_s5 + $0xedc] ss:$20 sps:$4 sm:$0xff]  }
  0xce   : > { %4701 = vmatpush2.bf16.msra.mxu0 %v6955_v58  ;;  %v7037_v58 = vld [vmem:[%s8090_s5 + $0xc58] ss:$20 sps:$4 sm:$0xff]  }
  0xcf   : > { %4742 = vmatpush2.bf16.msra.mxu1 %v6958_v59  ;;  %4702 = vmatprep.subr.bf16.mxu0 %v6963_v60  ;;  %v7040_v59 = vld [vmem:[%s8090_s5 + $0xed8] ss:$20 sps:$4 sm:$0xff]   ;;  %v7045_v60 = vld [vmem:[%s8090_s5 + $0xc34] ss:$20 sps:$4 sm:$0xff]  }
  0xd0   : > { %4743 = vmatprep.subr.bf16.mxu1 %v6966_v61  ;;  %v7048_v61 = vld [vmem:[%s8090_s5 + $0xeb4] ss:$20 sps:$4 sm:$0xff]  }
  0xd2   : > { %4703 = vmatpush2.bf16.msra.mxu0 %v6961_v62  ;;  %v7043_v62 = vld [vmem:[%s8090_s5 + $0xc30] ss:$20 sps:$4 sm:$0xff]  }
  0xd3   : > { %4744 = vmatpush2.bf16.msra.mxu1 %v6964_v63  ;;  %4704 = vmatprep.subr.bf16.mxu0 %v6969_v0  ;;  %v7046_v63 = vld [vmem:[%s8090_s5 + $0xeb0] ss:$20 sps:$4 sm:$0xff]   ;;  %v7051_v0 = vld [vmem:[%s8090_s5 + $0xc0c] ss:$20 sps:$4 sm:$0xff]  }
  0xd4   : > { %4745 = vmatprep.subr.bf16.mxu1 %v6972_v1  ;;  %v7054_v1 = vld [vmem:[%s8090_s5 + $0xe8c] ss:$20 sps:$4 sm:$0xff]  }
  0xd6   : > { %4705 = vmatpush2.bf16.msra.mxu0 %v6967_v2  ;;  %v7049_v2 = vld [vmem:[%s8090_s5 + $0xc08] ss:$20 sps:$4 sm:$0xff]  }
  0xd7   : > { %4746 = vmatpush2.bf16.msra.mxu1 %v6970_v3  ;;  %4706 = vmatprep.subr.bf16.mxu0 %v6975_v4  ;;  %v7052_v3 = vld [vmem:[%s8090_s5 + $0xe88] ss:$20 sps:$4 sm:$0xff]   ;;  %v7057_v4 = vld [vmem:[%s8090_s5 + $0xbe4] ss:$20 sps:$4 sm:$0xff]  }
  0xd8   : > { %4747 = vmatprep.subr.bf16.mxu1 %v6978_v5  ;;  %v7060_v5 = vld [vmem:[%s8090_s5 + $0xe64] ss:$20 sps:$4 sm:$0xff]  }
  0xda   : > { %4707 = vmatpush2.bf16.msra.mxu0 %v6973_v8  ;;  %v7055_v8 = vld [vmem:[%s8090_s5 + $0xbe0] ss:$20 sps:$4 sm:$0xff]  }
  0xdb   : > { %4748 = vmatpush2.bf16.msra.mxu1 %v6976_v9  ;;  %4708 = vmatprep.subr.bf16.mxu0 %v6981_v10  ;;  %v7058_v9 = vld [vmem:[%s8090_s5 + $0xe60] ss:$20 sps:$4 sm:$0xff]   ;;  %v7063_v10 = vld [vmem:[%s8090_s5 + $0xbbc] ss:$20 sps:$4 sm:$0xff]  }
  0xdc   : > { %4749 = vmatprep.subr.bf16.mxu1 %v6984_v11  ;;  %v7066_v11 = vld [vmem:[%s8090_s5 + $0xe3c] ss:$20 sps:$4 sm:$0xff]  }
  0xde   : > { %4709 = vmatpush2.bf16.msra.mxu0 %v6979_v12  ;;  %v7061_v12 = vld [vmem:[%s8090_s5 + $0xbb8] ss:$20 sps:$4 sm:$0xff]  }
  0xdf   : > { %4750 = vmatpush2.bf16.msra.mxu1 %v6982_v13  ;;  %4760 = vmatprep.subr.bf16.mxu0 %v6991_v14  ;;  %v7064_v13 = vld [vmem:[%s8090_s5 + $0xe38] ss:$20 sps:$4 sm:$0xff]   ;;  %v7069_v14 = vld [vmem:[%s8090_s5 + $0xb94] ss:$20 sps:$4 sm:$0xff]  }
  0xe0   : > { %4801 = vmatprep.subr.bf16.mxu1 %v6994_v15  ;;  %v7072_v15 = vld [vmem:[%s8090_s5 + $0xe14] ss:$20 sps:$4 sm:$0xff]  }
  0xe1   : > { %4711 = vmatmul.mubr.bf16.vlgmr.msra.gmra.mxu0 %v8254_v16 }
  0xe2   : > { %4752 = vmatmul.mubr.bf16.vlgmr.msra.gmra.mxu1 %v8258_v17  ;;  %4761 = vmatpush1.bf16.msra.mxu0 %v6989_v18  ;;  %v7067_v18 = vld [vmem:[%s8090_s5 + $0xb90] ss:$20 sps:$4 sm:$0xff]  }
  0xe3   : > { %4802 = vmatpush1.bf16.msra.mxu1 %v6992_v19  ;;  %4762 = vmatprep.subr.bf16.mxu0 %v6997_v20  ;;  %v7070_v19 = vld [vmem:[%s8090_s5 + $0xe10] ss:$20 sps:$4 sm:$0xff]   ;;  %v7075_v20 = vld [vmem:[%s8090_s5 + $0xb6c] ss:$20 sps:$4 sm:$0xff]  }
  0xe4   : > { %4803 = vmatprep.subr.bf16.mxu1 %v7000_v21  ;;  %4792 = vmatprep.mubr.bf16.mxu0 %v8270_v24  ;;  %v7078_v21 = vld [vmem:[%s8090_s5 + $0xdec] ss:$20 sps:$4 sm:$0xff]  }
  0xe5   : > { %4833 = vmatprep.mubr.bf16.mxu1 %v8274_v25 }
  0xe6   : > { %4763 = vmatpush1.bf16.msra.mxu0 %v6995_v26  ;;  %v7073_v26 = vld [vmem:[%s8090_s5 + $0xb68] ss:$20 sps:$4 sm:$0xff]  }
  0xe7   : > { %4804 = vmatpush1.bf16.msra.mxu1 %v6998_v27  ;;  %4764 = vmatprep.subr.bf16.mxu0 %v7003_v28  ;;  %v7076_v27 = vld [vmem:[%s8090_s5 + $0xde8] ss:$20 sps:$4 sm:$0xff]   ;;  %v7081_v28 = vld [vmem:[%s8090_s5 + $0xb44] ss:$20 sps:$4 sm:$0xff]  }
  0xe8   : > { %4805 = vmatprep.subr.bf16.mxu1 %v7006_v29  ;;  %v7084_v29 = vld [vmem:[%s8090_s5 + $0xdc4] ss:$20 sps:$4 sm:$0xff]  }
  0xea   : > { %4765 = vmatpush1.bf16.msra.mxu0 %v7001_v30  ;;  %v7079_v30 = vld [vmem:[%s8090_s5 + $0xb40] ss:$20 sps:$4 sm:$0xff]  }
  0xeb   : > { %4806 = vmatpush1.bf16.msra.mxu1 %v7004_v31  ;;  %4766 = vmatprep.subr.bf16.mxu0 %v7009_v32  ;;  %v7082_v31 = vld [vmem:[%s8090_s5 + $0xdc0] ss:$20 sps:$4 sm:$0xff]   ;;  %v7091_v32 = vld [vmem:[%s8090_s5 + $0x101c] ss:$20 sps:$4 sm:$0xff]  }
  0xec   : > { %4807 = vmatprep.subr.bf16.mxu1 %v7012_v33  ;;  %v7094_v33 = vld [vmem:[%s8090_s5 + $0x129c] ss:$20 sps:$4 sm:$0xff]  }
  0xee   : > { %4767 = vmatpush1.bf16.msra.mxu0 %v7007_v34  ;;  %v7089_v34 = vld [vmem:[%s8090_s5 + $0x1018] ss:$20 sps:$4 sm:$0xff]  }
  0xef   : > { %4808 = vmatpush1.bf16.msra.mxu1 %v7010_v35  ;;  %4768 = vmatprep.subr.bf16.mxu0 %v7015_v38  ;;  %v8343_v35 = vcombine.low %v8264_v22, %v8264_v22  ;;  %v8347_v38 = vcombine.low %v8266_v23, %v8266_v23  ;;  %v7100_v22 = vld [vmem:[%s8090_s5 + $0x1274] ss:$20 sps:$4 sm:$0xff]  }
  0xf0   : > { %4809 = vmatprep.subr.bf16.mxu1 %v7018_v39  ;;  %v8349_v39 = vld [vmem:[#allocation2 + $0x30] sm:$0xff] }
  0xf2   : > { %4769 = vmatpush1.bf16.msra.mxu0 %v7013_v40  ;;  %v8351_v40 = vld [vmem:[#allocation2 + $0x38] sm:$0xff] }
  0xf3   : > { %4810 = vmatpush1.bf16.msra.mxu1 %v7016_v41  ;;  %4770 = vmatprep.subr.bf16.mxu0 %v7021_v42  ;;  %v7092_v41 = vld [vmem:[%s8090_s5 + $0x1298] ss:$20 sps:$4 sm:$0xff]   ;;  %v7097_v42 = vld [vmem:[%s8090_s5 + $0xff4] ss:$20 sps:$4 sm:$0xff]   ;;  %v8362_v23 = vcombine.high %v8351_v40, %v8351_v40 }
  0xf4   : > { %4811 = vmatprep.subr.bf16.mxu1 %v7024_v43  ;;  %v8358_v43 = vcombine.high %v8349_v39, %v8349_v39 }
  0xf6   : > { %4771 = vmatpush1.bf16.msra.mxu0 %v7019_v44  ;;  %v7095_v44 = vld [vmem:[%s8090_s5 + $0xff0] ss:$20 sps:$4 sm:$0xff]  }
  0xf7   : > { %4812 = vmatpush1.bf16.msra.mxu1 %v7022_v45  ;;  %4772 = vmatprep.subr.bf16.mxu0 %v7027_v46  ;;  %v7098_v45 = vld [vmem:[%s8090_s5 + $0x1270] ss:$20 sps:$4 sm:$0xff]   ;;  %v7103_v46 = vld [vmem:[%s8090_s5 + $0xfcc] ss:$20 sps:$4 sm:$0xff]  }
  0xf8   : > { %4813 = vmatprep.subr.bf16.mxu1 %v7030_v48  ;;  %v7106_v48 = vld [vmem:[%s8090_s5 + $0x124c] ss:$20 sps:$4 sm:$0xff]  }
  0xfa   : > { %4773 = vmatpush1.bf16.msra.mxu0 %v7025_v49  ;;  %v7101_v49 = vld [vmem:[%s8090_s5 + $0xfc8] ss:$20 sps:$4 sm:$0xff]  }
  0xfb   : > { %4814 = vmatpush1.bf16.msra.mxu1 %v7028_v50  ;;  %4774 = vmatprep.subr.bf16.mxu0 %v7033_v52  ;;  %v7104_v50 = vld [vmem:[%s8090_s5 + $0x1248] ss:$20 sps:$4 sm:$0xff]   ;;  %v7109_v52 = vld [vmem:[%s8090_s5 + $0xfa4] ss:$20 sps:$4 sm:$0xff]  }
  0xfc   : > { %4815 = vmatprep.subr.bf16.mxu1 %v7036_v53  ;;  %v7112_v53 = vld [vmem:[%s8090_s5 + $0x1224] ss:$20 sps:$4 sm:$0xff]  }
  0xfe   : > { %4775 = vmatpush1.bf16.msra.mxu0 %v7031_v54  ;;  %v7107_v54 = vld [vmem:[%s8090_s5 + $0xfa0] ss:$20 sps:$4 sm:$0xff]  }
  0xff   : > { %4816 = vmatpush1.bf16.msra.mxu1 %v7034_v55  ;;  %4776 = vmatprep.subr.bf16.mxu0 %v7039_v56  ;;  %v7110_v55 = vld [vmem:[%s8090_s5 + $0x1220] ss:$20 sps:$4 sm:$0xff]   ;;  %v7115_v56 = vld [vmem:[%s8090_s5 + $0xf7c] ss:$20 sps:$4 sm:$0xff]  }
 0x100   : > { %4817 = vmatprep.subr.bf16.mxu1 %v7042_v57  ;;  %v7118_v57 = vld [vmem:[%s8090_s5 + $0x11fc] ss:$20 sps:$4 sm:$0xff]  }
 0x102   : > { %4777 = vmatpush2.bf16.msra.mxu0 %v7037_v58  ;;  %v7113_v58 = vld [vmem:[%s8090_s5 + $0xf78] ss:$20 sps:$4 sm:$0xff]  }
 0x103   : > { %4818 = vmatpush2.bf16.msra.mxu1 %v7040_v59  ;;  %4778 = vmatprep.subr.bf16.mxu0 %v7045_v60  ;;  %v7116_v59 = vld [vmem:[%s8090_s5 + $0x11f8] ss:$20 sps:$4 sm:$0xff]   ;;  %v7121_v60 = vld [vmem:[%s8090_s5 + $0xf54] ss:$20 sps:$4 sm:$0xff]  }
 0x104   : > { %4819 = vmatprep.subr.bf16.mxu1 %v7048_v61  ;;  %v7124_v61 = vld [vmem:[%s8090_s5 + $0x11d4] ss:$20 sps:$4 sm:$0xff]  }
 0x106   : > { %4779 = vmatpush2.bf16.msra.mxu0 %v7043_v62  ;;  %v7119_v62 = vld [vmem:[%s8090_s5 + $0xf50] ss:$20 sps:$4 sm:$0xff]  }
 0x107   : > { %4820 = vmatpush2.bf16.msra.mxu1 %v7046_v63  ;;  %4780 = vmatprep.subr.bf16.mxu0 %v7051_v0  ;;  %v7122_v63 = vld [vmem:[%s8090_s5 + $0x11d0] ss:$20 sps:$4 sm:$0xff]   ;;  %v7127_v0 = vld [vmem:[%s8090_s5 + $0xf2c] ss:$20 sps:$4 sm:$0xff]  }
 0x108   : > { %4821 = vmatprep.subr.bf16.mxu1 %v7054_v1  ;;  %v7130_v1 = vld [vmem:[%s8090_s5 + $0x11ac] ss:$20 sps:$4 sm:$0xff]  }
 0x10a   : > { %4781 = vmatpush2.bf16.msra.mxu0 %v7049_v2  ;;  %v7125_v2 = vld [vmem:[%s8090_s5 + $0xf28] ss:$20 sps:$4 sm:$0xff]  }
 0x10b   : > { %4822 = vmatpush2.bf16.msra.mxu1 %v7052_v3  ;;  %4782 = vmatprep.subr.bf16.mxu0 %v7057_v4  ;;  %v7128_v3 = vld [vmem:[%s8090_s5 + $0x11a8] ss:$20 sps:$4 sm:$0xff]   ;;  %v7133_v4 = vld [vmem:[%s8090_s5 + $0xf04] ss:$20 sps:$4 sm:$0xff]  }
 0x10c   : > { %4823 = vmatprep.subr.bf16.mxu1 %v7060_v5  ;;  %v7136_v5 = vld [vmem:[%s8090_s5 + $0x1184] ss:$20 sps:$4 sm:$0xff]  }
 0x10e   : > { %4783 = vmatpush2.bf16.msra.mxu0 %v7055_v8  ;;  %v7131_v8 = vld [vmem:[%s8090_s5 + $0xf00] ss:$20 sps:$4 sm:$0xff]  }
 0x10f   : > { %4824 = vmatpush2.bf16.msra.mxu1 %v7058_v9  ;;  %4784 = vmatprep.subr.bf16.mxu0 %v7063_v10  ;;  %v7134_v9 = vld [vmem:[%s8090_s5 + $0x1180] ss:$20 sps:$4 sm:$0xff]   ;;  %v7139_v10 = vld [vmem:[%s8090_s5 + $0x115c] ss:$20 sps:$4 sm:$0xff]  }
 0x110   : > { %4825 = vmatprep.subr.bf16.mxu1 %v7066_v11  ;;  %v7142_v11 = vld [vmem:[%s8090_s5 + $0x13dc] ss:$20 sps:$4 sm:$0xff]  }
 0x112   : > { %4785 = vmatpush2.bf16.msra.mxu0 %v7061_v12  ;;  %v7137_v12 = vld [vmem:[%s8090_s5 + $0x1158] ss:$20 sps:$4 sm:$0xff]  }
 0x113   : > { %4826 = vmatpush2.bf16.msra.mxu1 %v7064_v13  ;;  %4786 = vmatprep.subr.bf16.mxu0 %v7069_v14  ;;  %v7140_v13 = vld [vmem:[%s8090_s5 + $0x13d8] ss:$20 sps:$4 sm:$0xff]   ;;  %v7145_v14 = vld [vmem:[%s8090_s5 + $0x1134] ss:$20 sps:$4 sm:$0xff]  }
 0x114   : > { %4827 = vmatprep.subr.bf16.mxu1 %v7072_v15  ;;  %v7148_v15 = vld [vmem:[%s8090_s5 + $0x13b4] ss:$20 sps:$4 sm:$0xff]  }
 0x116   : > { %4787 = vmatpush2.bf16.msra.mxu0 %v7067_v18  ;;  %v7143_v18 = vld [vmem:[%s8090_s5 + $0x1130] ss:$20 sps:$4 sm:$0xff]  }
 0x117   : > { %4828 = vmatpush2.bf16.msra.mxu1 %v7070_v19  ;;  %4788 = vmatprep.subr.bf16.mxu0 %v7075_v20  ;;  %v7146_v19 = vld [vmem:[%s8090_s5 + $0x13b0] ss:$20 sps:$4 sm:$0xff]   ;;  %v7151_v20 = vld [vmem:[%s8090_s5 + $0x110c] ss:$20 sps:$4 sm:$0xff]  }
 0x118   : > { %4829 = vmatprep.subr.bf16.mxu1 %v7078_v21  ;;  %v7154_v21 = vld [vmem:[%s8090_s5 + $0x138c] ss:$20 sps:$4 sm:$0xff]  }
 0x11a   : > { %4789 = vmatpush2.bf16.msra.mxu0 %v7073_v26  ;;  %v7149_v26 = vld [vmem:[%s8090_s5 + $0x1108] ss:$20 sps:$4 sm:$0xff]  }
 0x11b   : > { %4830 = vmatpush2.bf16.msra.mxu1 %v7076_v27  ;;  %4790 = vmatprep.subr.bf16.mxu0 %v7081_v28  ;;  %v7152_v27 = vld [vmem:[%s8090_s5 + $0x1388] ss:$20 sps:$4 sm:$0xff]   ;;  %v7157_v28 = vld [vmem:[%s8090_s5 + $0x10e4] ss:$20 sps:$4 sm:$0xff]  }
 0x11c   : > { %4831 = vmatprep.subr.bf16.mxu1 %v7084_v29  ;;  %v7160_v29 = vld [vmem:[%s8090_s5 + $0x1364] ss:$20 sps:$4 sm:$0xff]  }
 0x11e   : > { %4791 = vmatpush2.bf16.msra.mxu0 %v7079_v30  ;;  %v7155_v30 = vld [vmem:[%s8090_s5 + $0x10e0] ss:$20 sps:$4 sm:$0xff]  }
 0x11f   : > { %4832 = vmatpush2.bf16.msra.mxu1 %v7082_v31  ;;  %4842 = vmatprep.subr.bf16.mxu0 %v7091_v32  ;;  %v7158_v31 = vld [vmem:[%s8090_s5 + $0x1360] ss:$20 sps:$4 sm:$0xff]   ;;  %v7163_v32 = vld [vmem:[%s8090_s5 + $0x10bc] ss:$20 sps:$4 sm:$0xff]  }
 0x120   : > { %4883 = vmatprep.subr.bf16.mxu1 %v7094_v33  ;;  %v7166_v33 = vld [vmem:[%s8090_s5 + $0x133c] ss:$20 sps:$4 sm:$0xff]  }
 0x121   : > { %4793 = vmatmul.mubr.bf16.vlgmr.msra.gmra.mxu0 %v8343_v35 }
 0x122   : > { %4834 = vmatmul.mubr.bf16.vlgmr.msra.gmra.mxu1 %v8347_v38  ;;  %4843 = vmatpush1.bf16.msra.mxu0 %v7089_v34  ;;  %v7161_v34 = vld [vmem:[%s8090_s5 + $0x10b8] ss:$20 sps:$4 sm:$0xff]  }
 0x123   : > { %4884 = vmatpush1.bf16.msra.mxu1 %v7092_v41  ;;  %4844 = vmatprep.subr.bf16.mxu0 %v7097_v42  ;;  %v7164_v41 = vld [vmem:[%s8090_s5 + $0x1338] ss:$20 sps:$4 sm:$0xff]   ;;  %v7169_v42 = vld [vmem:[%s8090_s5 + $0x1094] ss:$20 sps:$4 sm:$0xff]  }
 0x124   : > { %4885 = vmatprep.subr.bf16.mxu1 %v7100_v22  ;;  %4874 = vmatprep.mubr.bf16.mxu0 %v8358_v43  ;;  %v7172_v22 = vld [vmem:[%s8090_s5 + $0x1314] ss:$20 sps:$4 sm:$0xff]  }
 0x125   : > { %4915 = vmatprep.mubr.bf16.mxu1 %v8362_v23 }
 0x126   : > { %4845 = vmatpush1.bf16.msra.mxu0 %v7095_v44  ;;  %v7167_v44 = vld [vmem:[%s8090_s5 + $0x1090] ss:$20 sps:$4 sm:$0xff]  }
 0x127   : > { %4886 = vmatpush1.bf16.msra.mxu1 %v7098_v45  ;;  %4846 = vmatprep.subr.bf16.mxu0 %v7103_v46  ;;  %v7170_v45 = vld [vmem:[%s8090_s5 + $0x1310] ss:$20 sps:$4 sm:$0xff]   ;;  %v7175_v46 = vld [vmem:[%s8090_s5 + $0x106c] ss:$20 sps:$4 sm:$0xff]  }
 0x128   : > { %4887 = vmatprep.subr.bf16.mxu1 %v7106_v48  ;;  %v1050_v48 = vlaneseq }
 0x12a   : > { %4847 = vmatpush1.bf16.msra.mxu0 %v7101_v49  ;;  %v7178_v49 = vld [vmem:[%s8090_s5 + $0x12ec] ss:$20 sps:$4 sm:$0xff]  }
 0x12b   : > { %4888 = vmatpush1.bf16.msra.mxu1 %v7104_v50  ;;  %4848 = vmatprep.subr.bf16.mxu0 %v7109_v52  ;;  %v7173_v50 = vld [vmem:[%s8090_s5 + $0x1068] ss:$20 sps:$4 sm:$0xff]  }
 0x12c   : > { %4889 = vmatprep.subr.bf16.mxu1 %v7112_v53  ;;  %v7176_v52 = vld [vmem:[%s8090_s5 + $0x12e8] ss:$20 sps:$4 sm:$0xff]   ;;  %v7181_v53 = vld [vmem:[%s8090_s5 + $0x1044] ss:$20 sps:$4 sm:$0xff]  }
 0x12e   : > { %4849 = vmatpush1.bf16.msra.mxu0 %v7107_v54  ;;  %v8424_v54 = vshrl.u32 %v1050_v48, 7  ;;  %v7222_v48 = vld [vmem:[%s8090_s5 + $0x5c] ss:$20 sps:$4 sm:$0xff]  }
 0x12f   : > { %4890 = vmatpush1.bf16.msra.mxu1 %v7110_v55  ;;  %4850 = vmatprep.subr.bf16.mxu0 %v7115_v56  ;;  %v7184_v55 = vld [vmem:[%s8090_s5 + $0x12c4] ss:$20 sps:$4 sm:$0xff]   ;;  %v7179_v56 = vld [vmem:[%s8090_s5 + $0x1040] ss:$20 sps:$4 sm:$0xff]  }
 0x130   : > { %4891 = vmatprep.subr.bf16.mxu1 %v7118_v57  ;;  %v7182_v57 = vld [vmem:[%s8090_s5 + $0x12c0] ss:$20 sps:$4 sm:$0xff]  }
 0x132   : > { %4851 = vmatpush1.bf16.msra.mxu0 %v7113_v58  ;;  %v1048_v58 = vld [vmem:[%s8429_s28] sm:$0x1f] }
 0x133   : > { %4892 = vmatpush1.bf16.msra.mxu1 %v7116_v59  ;;  %4852 = vmatprep.subr.bf16.mxu0 %v7121_v60  ;;  %v1052_v59 = vsub.s32 0, %v8424_v54  ;;  %v7191_v60 = vld [vmem:[%s8090_s5 + $0x14a4] ss:$20 sps:$4 sm:$0xff]  }
 0x134   : > { %4893 = vmatprep.subr.bf16.mxu1 %v7124_v61  ;;  %v7194_v61 = vld [vmem:[%s8090_s5 + $0x124] ss:$20 sps:$4 sm:$0xff]  }
 0x136   : > { %4853 = vmatpush1.bf16.msra.mxu0 %v7119_v62  ;;  %v1056_v62 = vsub.s32 1, %v8424_v54 }
 0x137   : > { %4894 = vmatpush1.bf16.msra.mxu1 %v7122_v63  ;;  %4854 = vmatprep.subr.bf16.mxu0 %v7127_v0  ;;  %v8438_v63 = vcombine.low %v8349_v39, %v8349_v39  ;;  %v8442_v0 = vcombine.low %v8351_v40, %v8351_v40 }
 0x138   : > { %4895 = vmatprep.subr.bf16.mxu1 %v7130_v1  ;;  %v7189_v1 = vld [vmem:[%s8090_s5 + $0x14a0] ss:$20 sps:$4 sm:$0xff]  }
 0x13a   : > { %4855 = vmatpush1.bf16.msra.mxu0 %v7125_v2  ;;  %v1053_v2 = vrot.slane %v1048_v58, %v1052_v59  ;;  %v7237_v59 = vld [vmem:[%s8090_s5 + $0x354] ss:$20 sps:$4 sm:$0xff]  }
 0x13b   : > { %4896 = vmatpush1.bf16.msra.mxu1 %v7128_v3  ;;  %4856 = vmatprep.subr.bf16.mxu0 %v7133_v4  ;;  %v7192_v3 = vld [vmem:[%s8090_s5 + $0x120] ss:$20 sps:$4 sm:$0xff]   ;;  %v7197_v4 = vld [vmem:[%s8090_s5 + $0x147c] ss:$20 sps:$4 sm:$0xff]  }
 0x13c   : > { %4897 = vmatprep.subr.bf16.mxu1 %v7136_v5  ;;  %v7200_v5 = vld [vmem:[%s8090_s5 + $0xfc] ss:$20 sps:$4 sm:$0xff]  }
 0x13e   : > { %4857 = vmatpush1.bf16.msra.mxu0 %v7131_v8  ;;  %v1057_v8 = vrot.slane %v1048_v58, %v1056_v62  ;;  %v7234_v58 = vld [vmem:[%s8090_s5 + $0xc] ss:$20 sps:$4 sm:$0xff]   ;;  %v7240_v62 = vld [vmem:[%s8090_s5 + $0x264] ss:$20 sps:$4 sm:$0xff]  }
 0x13f   : > { %4898 = vmatpush1.bf16.msra.mxu1 %v7134_v9  ;;  %4858 = vmatprep.subr.bf16.mxu0 %v7139_v10  ;;  %v7195_v9 = vld [vmem:[%s8090_s5 + $0x1478] ss:$20 sps:$4 sm:$0xff]  }
 0x140   : > { %4899 = vmatprep.subr.bf16.mxu1 %v7142_v11  ;;  %v7198_v11 = vld [vmem:[%s8090_s5 + $0xf8] ss:$20 sps:$4 sm:$0xff]  }
 0x142   : > { %4859 = vmatpush2.bf16.msra.mxu0 %v7137_v12  ;;  %v7203_v12 = vld [vmem:[%s8090_s5 + $0x1454] ss:$20 sps:$4 sm:$0xff]  }
 0x143   : > { %4900 = vmatpush2.bf16.msra.mxu1 %v7140_v13  ;;  %4860 = vmatprep.subr.bf16.mxu0 %v7145_v14 }
 0x144   : > { %4901 = vmatprep.subr.bf16.mxu1 %v7148_v15  ;;  %v7206_v15 = vld [vmem:[%s8090_s5 + $0xd4] ss:$20 sps:$4 sm:$0xff]  }
 0x146   : > { %4861 = vmatpush2.bf16.msra.mxu0 %v7143_v18 }
 0x147   : > { %4902 = vmatpush2.bf16.msra.mxu1 %v7146_v19  ;;  %4862 = vmatprep.subr.bf16.mxu0 %v7151_v20  ;;  %v7897_v20 = vmov 0  }
 0x148   : > { %4903 = vmatprep.subr.bf16.mxu1 %v7154_v21 }
 0x14a   : > { %4863 = vmatpush2.bf16.msra.mxu0 %v7149_v26  ;;  %v7201_v26 = vld [vmem:[%s8090_s5 + $0x1450] ss:$20 sps:$4 sm:$0xff]  }
 0x14b   : > { %4904 = vmatpush2.bf16.msra.mxu1 %v7152_v27  ;;  %4864 = vmatprep.subr.bf16.mxu0 %v7157_v28 }
 0x14c   : > { %4905 = vmatprep.subr.bf16.mxu1 %v7160_v29  ;;  %v7204_v29 = vld [vmem:[%s8090_s5 + $0xd0] ss:$20 sps:$4 sm:$0xff]  }
 0x14e   : > { %4865 = vmatpush2.bf16.msra.mxu0 %v7155_v30  ;;  %v7209_v30 = vld [vmem:[%s8090_s5 + $0x142c] ss:$20 sps:$4 sm:$0xff]  }
 0x14f   : > { %4906 = vmatpush2.bf16.msra.mxu1 %v7158_v31  ;;  %4866 = vmatprep.subr.bf16.mxu0 %v7163_v32  ;;  %v7212_v32 = vld [vmem:[%s8090_s5 + $0xac] ss:$20 sps:$4 sm:$0xff]  }
 0x150   : > { %4907 = vmatprep.subr.bf16.mxu1 %v7166_v33 }
 0x152   : > { %4867 = vmatpush2.bf16.msra.mxu0 %v7161_v34  ;;  %v7207_v34 = vld [vmem:[%s8090_s5 + $0x1428] ss:$20 sps:$4 sm:$0xff]  }
 0x153   : > { %4908 = vmatpush2.bf16.msra.mxu1 %v7164_v41  ;;  %4868 = vmatprep.subr.bf16.mxu0 %v7169_v42  ;;  %v7210_v41 = vld [vmem:[%s8090_s5 + $0xa8] ss:$20 sps:$4 sm:$0xff]   ;;  %v7215_v42 = vld [vmem:[%s8090_s5 + $0x1404] ss:$20 sps:$4 sm:$0xff]  }
 0x154   : > { %4909 = vmatprep.subr.bf16.mxu1 %v7172_v22  ;;  %v7218_v22 = vld [vmem:[%s8090_s5 + $0x84] ss:$20 sps:$4 sm:$0xff]  }
 0x156   : > { %4869 = vmatpush2.bf16.msra.mxu0 %v7167_v44  ;;  %v7213_v44 = vld [vmem:[%s8090_s5 + $0x1400] ss:$20 sps:$4 sm:$0xff]  }
 0x157   : > { %4910 = vmatpush2.bf16.msra.mxu1 %v7170_v45  ;;  %4870 = vmatprep.subr.bf16.mxu0 %v7175_v46  ;;  %v7216_v45 = vld [vmem:[%s8090_s5 + $0x80] ss:$20 sps:$4 sm:$0xff]  }
 0x158   : > { %4911 = vmatprep.subr.bf16.mxu1 %v7178_v49  ;;  %v7219_v46 = vld [vmem:[#allocation2 + $0x40] ss:$0 sps:$4 sm:$0xff]   ;;  %v7225_v49 = vld [vmem:[%s8090_s5 + $0x3a4] ss:$20 sps:$4 sm:$0xff]  }
 0x15a   : > { %4871 = vmatpush2.bf16.msra.mxu0 %v7173_v50  ;;  %v7220_v50 = vld [vmem:[%s8090_s5 + $0x58] ss:$20 sps:$4 sm:$0xff]  }
 0x15b   : > { %4912 = vmatpush2.bf16.msra.mxu1 %v7176_v52  ;;  %4872 = vmatprep.subr.bf16.mxu0 %v7181_v53  ;;  %v7223_v52 = vld [vmem:[%s8090_s5 + $0x3a0] ss:$20 sps:$4 sm:$0xff]  }
 0x15c   : > { %4913 = vmatprep.subr.bf16.mxu1 %v7184_v55  ;;  %v7228_v53 = vld [vmem:[%s8090_s5 + $0x34] ss:$20 sps:$4 sm:$0xff]   ;;  %v7231_v55 = vld [vmem:[%s8090_s5 + $0x37c] ss:$20 sps:$4 sm:$0xff]  }
 0x15e   : > { %4873 = vmatpush2.bf16.msra.mxu0 %v7179_v56  ;;  %v7226_v56 = vld [vmem:[%s8090_s5 + $0x30] ss:$20 sps:$4 sm:$0xff]  }
 0x15f   : > { %4914 = vmatpush2.bf16.msra.mxu1 %v7182_v57  ;;  %4930 = vmatprep.subr.bf16.mxu0 %v7191_v60  ;;  %v7229_v57 = vld [vmem:[%s8090_s5 + $0x378] ss:$20 sps:$4 sm:$0xff]   ;;  %v7232_v60 = vld [vmem:[%s8090_s5 + $0x8] ss:$20 sps:$4 sm:$0xff]  }
 0x160   : > { %4965 = vmatprep.subr.bf16.mxu1 %v7194_v61  ;;  %v7235_v61 = vld [vmem:[%s8090_s5 + $0x350] ss:$20 sps:$4 sm:$0xff]  }
 0x161   : > { %v4630_v39 = vpop.f32.mrf.mxu0  ;;  %4875 = vmatmul.mubr.bf16.vlgmr.msra.gmra.mxu0 %v8438_v63 }
 0x162   : > { %4916 = vmatmul.mubr.bf16.vlgmr.msra.gmra.mxu1 %v8442_v0  ;;  %v4671_v40 = vpop.f32.mrf.mxu1  ;;  %v4631_v10 = vadd.f32 %v4630_v39, %v1053_v2  ;;  %4931 = vmatpush1.bf16.msra.mxu0 %v7189_v1  ;;  %v7243_v1 = vld [vmem:[%s8090_s5 + $0x32c] ss:$20 sps:$4 sm:$0xff]  }
 0x163   : > { %4966 = vmatpush1.bf16.msra.mxu1 %v7192_v3  ;;  %v4632_v13 = vpop.f32.mrf.mxu0  ;;  %4932 = vmatprep.subr.bf16.mxu0 %v7197_v4  ;;  %v7238_v2 = vld [vmem:[%s8090_s5 + $0x260] ss:$20 sps:$4 sm:$0xff]   ;;  %v7241_v3 = vld [vmem:[%s8090_s5 + $0x328] ss:$20 sps:$4 sm:$0xff]  }
 0x164   : > { %v4673_v14 = vpop.f32.mrf.mxu1  ;;  %4967 = vmatprep.subr.bf16.mxu1 %v7200_v5  ;;  %v4633_v18 = vadd.f32 %v4632_v13, %v1057_v8  ;;  %v8454_v19 = vadd.f32 %v4671_v40, %v4631_v10  ;;  %4956 = vmatprep.mubr.bf16.mxu0 %v7897_v20  ;;  %v7246_v4 = vld [vmem:[%s8090_s5 + $0x23c] ss:$20 sps:$4 sm:$0xff]   ;;  %v7249_v5 = vld [vmem:[%s8090_s5 + $0x304] ss:$20 sps:$4 sm:$0xff]   ;;  %v7247_v39 = vld [vmem:[%s8090_s5 + $0x300] ss:$20 sps:$4 sm:$0xff]  }
 0x165   : > { %4997 = vmatprep.mubr.bf16.mxu1 %v8142_v47  ;;  %v4634_v21 = vpop.f32.mrf.mxu0  ;;  %v7244_v8 = vld [vmem:[%s8090_s5 + $0x238] ss:$20 sps:$4 sm:$0xff]   ;;  %v7252_v40 = vld [vmem:[%s8090_s5 + $0x214] ss:$20 sps:$4 sm:$0xff]   ;;  %v7250_v10 = vld [vmem:[%s8090_s5 + $0x210] ss:$20 sps:$4 sm:$0xff]  }
 0x166   : > { %v4675_v27 = vpop.f32.mrf.mxu1  ;;  %v8459_v28 = vadd.f32 %v4673_v14, %v4633_v18  ;;  %4933 = vmatpush1.bf16.msra.mxu0 %v7195_v9  ;;  %v7255_v9 = vld [vmem:[%s8090_s5 + $0x2dc] ss:$20 sps:$4 sm:$0xff]   ;;  %v7261_v13 = vld [vmem:[%s8090_s5 + $0x2b4] ss:$20 sps:$4 sm:$0xff]   ;;  %v7264_v18 = vld [vmem:[%s8090_s5 + $0x1c4] ss:$20 sps:$4 sm:$0xff]  }
 0x167   : > { %4968 = vmatpush1.bf16.msra.mxu1 %v7198_v11  ;;  %v4635_v31 = vpop.f32.mrf.mxu0  ;;  %4934 = vmatprep.subr.bf16.mxu0 %v7203_v12  ;;  %v7253_v11 = vld [vmem:[%s8090_s5 + $0x2d8] ss:$20 sps:$4 sm:$0xff]   ;;  %v7256_v14 = vld [vmem:[%s8090_s5 + $0x1e8] ss:$20 sps:$4 sm:$0xff]  }
 0x168   : > { %4969 = vmatprep.subr.bf16.mxu1 %v7206_v15  ;;  %v4676_v33 = vpop.f32.mrf.mxu1  ;;  %v7258_v12 = vld [vmem:[%s8090_s5 + $0x1ec] ss:$20 sps:$4 sm:$0xff]   ;;  %v7259_v15 = vld [vmem:[%s8090_s5 + $0x2b0] ss:$20 sps:$4 sm:$0xff]   ;;  %v7265_v27 = vld [vmem:[%s8090_s5 + $0x288] ss:$20 sps:$4 sm:$0xff]  }
 0x169   : > { %v7267_v21 = vld [vmem:[%s8090_s5 + $0x28c] ss:$20 sps:$4 sm:$0xff]   ;;  %v7276_v33 = vld [vmem:[%s8090_s5 + $0x174] ss:$20 sps:$4 sm:$0xff]  }
 0x16a   : > { %4935 = vmatpush1.bf16.msra.mxu0 %v7201_v26  ;;  %v7262_v26 = vld [vmem:[%s8090_s5 + $0x1c0] ss:$20 sps:$4 sm:$0xff]   ;;  %v7268_v31 = vld [vmem:[%s8090_s5 + $0x198] ss:$20 sps:$4 sm:$0xff]  }
 0x16b   : > { %4970 = vmatpush1.bf16.msra.mxu1 %v7204_v29  ;;  %4936 = vmatprep.subr.bf16.mxu0 %v7209_v30  ;;  %v7270_v29 = vld [vmem:[%s8090_s5 + $0x19c] ss:$20 sps:$4 sm:$0xff]   ;;  %v7273_v30 = vld [vmem:[%s8090_s5 + $0x4e4] ss:$20 sps:$4 sm:$0xff]  }
 0x16c   : > { %4971 = vmatprep.subr.bf16.mxu1 %v7212_v32  ;;  %v7271_v32 = vld [vmem:[%s8090_s5 + $0x4e0] ss:$20 sps:$4 sm:$0xff]  }
 0x16e   : > { %4937 = vmatpush1.bf16.msra.mxu0 %v7207_v34  ;;  %v7279_v34 = vld [vmem:[%s8090_s5 + $0x4bc] ss:$20 sps:$4 sm:$0xff]  }
 0x16f   : > { %4972 = vmatpush1.bf16.msra.mxu1 %v7210_v41  ;;  %4938 = vmatprep.subr.bf16.mxu0 %v7215_v42  ;;  %v7274_v41 = vld [vmem:[%s8090_s5 + $0x170] ss:$20 sps:$4 sm:$0xff]   ;;  %v7277_v42 = vld [vmem:[%s8090_s5 + $0x4b8] ss:$20 sps:$4 sm:$0xff]  }
 0x170   : > { %4973 = vmatprep.subr.bf16.mxu1 %v7218_v22  ;;  %v7282_v22 = vld [vmem:[%s8090_s5 + $0x14c] ss:$20 sps:$4 sm:$0xff]  }
 0x172   : > { %4939 = vmatpush1.bf16.msra.mxu0 %v7213_v44  ;;  %v7285_v44 = vld [vmem:[%s8090_s5 + $0x494] ss:$20 sps:$4 sm:$0xff]  }
 0x173   : > { %4974 = vmatpush1.bf16.msra.mxu1 %v7216_v45  ;;  %5006 = vmatprep.subr.bf16.mxu0 %v7225_v49  ;;  %v7280_v45 = vld [vmem:[%s8090_s5 + $0x148] ss:$20 sps:$4 sm:$0xff]   ;;  %v7291_v49 = vld [vmem:[%s8090_s5 + $0x624] ss:$20 sps:$4 sm:$0xff]  }
 0x174   : > { %4975 = vmatprep.subr.bf16.mxu1 %v7222_v48  ;;  %v7288_v48 = vld [vmem:[%s8090_s5 + $0x46c] ss:$20 sps:$4 sm:$0xff]  }
 0x175   : > { %6511 = vmatmul.mubr.msk.bf16.vlgmr.msra.gmra.mxu0 %vm4592_vm0, %v7219_v46  ;;  %v7283_v46 = vld [vmem:[%s8090_s5 + $0x490] ss:$20 sps:$4 sm:$0xff]  }
 0x176   : > { %5007 = vmatpush1.bf16.msra.mxu0 %v7223_v52  ;;  %5038 = vmatprep.mubr.bf16.mxu0 %v8146_v51  ;;  %v7289_v52 = vld [vmem:[%s8090_s5 + $0x620] ss:$20 sps:$4 sm:$0xff]  }
 0x177   : > { %4976 = vmatpush1.bf16.msra.mxu1 %v7220_v50  ;;  %5008 = vmatprep.subr.bf16.mxu0 %v7231_v55  ;;  %v7286_v50 = vld [vmem:[%s8090_s5 + $0x468] ss:$20 sps:$4 sm:$0xff]  }
 0x178   : > { %4977 = vmatprep.subr.bf16.mxu1 %v7228_v53  ;;  %v7294_v53 = vld [vmem:[%s8090_s5 + $0x444] ss:$20 sps:$4 sm:$0xff]   ;;  %v7297_v55 = vld [vmem:[%s8090_s5 + $0x5fc] ss:$20 sps:$4 sm:$0xff]  }
 0x17a   : > { %5009 = vmatpush1.bf16.msra.mxu0 %v7229_v57  ;;  %v7295_v57 = vld [vmem:[%s8090_s5 + $0x5f8] ss:$20 sps:$4 sm:$0xff]  }
 0x17b   : > { %4978 = vmatpush1.bf16.msra.mxu1 %v7226_v56  ;;  %5010 = vmatprep.subr.bf16.mxu0 %v7237_v59  ;;  %v7292_v56 = vld [vmem:[%s8090_s5 + $0x440] ss:$20 sps:$4 sm:$0xff]  }
 0x17c   : > { %4979 = vmatprep.subr.bf16.mxu1 %v7234_v58 }
 0x17e   : > { %5011 = vmatpush1.bf16.msra.mxu0 %v7235_v61 }
 0x17f   : > { %4980 = vmatpush1.bf16.msra.mxu1 %v7232_v60  ;;  %5012 = vmatprep.subr.bf16.mxu0 %v7243_v1  ;;  %v7300_v1 = vld [vmem:[%s8090_s5 + $0x41c] ss:$20 sps:$4 sm:$0xff]  }
 0x180   : > { %4981 = vmatprep.subr.bf16.mxu1 %v7240_v62 }
 0x182   : > { %5013 = vmatpush1.bf16.msra.mxu0 %v7241_v3 }
 0x183   : > { %4982 = vmatpush2.bf16.msra.mxu1 %v7238_v2  ;;  %5014 = vmatprep.subr.bf16.mxu0 %v7249_v5  ;;  %v7303_v2 = vld [vmem:[%s8090_s5 + $0x5d4] ss:$20 sps:$4 sm:$0xff]   ;;  %v7298_v5 = vld [vmem:[%s8090_s5 + $0x418] ss:$20 sps:$4 sm:$0xff]  }
 0x184   : > { %4983 = vmatprep.subr.bf16.mxu1 %v7246_v4 }
 0x186   : > { %5015 = vmatpush1.bf16.msra.mxu0 %v7247_v39 }
 0x187   : > { %4984 = vmatpush2.bf16.msra.mxu1 %v7244_v8  ;;  %5016 = vmatprep.subr.bf16.mxu0 %v7255_v9  ;;  %v7301_v8 = vld [vmem:[%s8090_s5 + $0x5d0] ss:$20 sps:$4 sm:$0xff]  }
 0x188   : > { %4985 = vmatprep.subr.bf16.mxu1 %v7252_v40 }
 0x18a   : > { %5017 = vmatpush1.bf16.msra.mxu0 %v7253_v11 }
 0x18b   : > { %4986 = vmatpush2.bf16.msra.mxu1 %v7250_v10  ;;  %5018 = vmatprep.subr.bf16.mxu0 %v7261_v13  ;;  %v7309_v10 = vld [vmem:[%s8090_s5 + $0x5ac] ss:$20 sps:$4 sm:$0xff]   ;;  %v7307_v13 = vld [vmem:[%s8090_s5 + $0x5a8] ss:$20 sps:$4 sm:$0xff]  }
 0x18c   : > { %4987 = vmatprep.subr.bf16.mxu1 %v7258_v12  ;;  %v7304_v12 = vld [vmem:[%s8090_s5 + $0x3f0] ss:$20 sps:$4 sm:$0xff]  }
 0x18e   : > { %5019 = vmatpush1.bf16.msra.mxu0 %v7259_v15  ;;  %v7315_v15 = vld [vmem:[%s8090_s5 + $0x584] ss:$20 sps:$4 sm:$0xff]  }
 0x18f   : > { %4988 = vmatpush2.bf16.msra.mxu1 %v7256_v14  ;;  %5020 = vmatprep.subr.bf16.mxu0 %v7267_v21  ;;  %v7312_v14 = vld [vmem:[%s8090_s5 + $0x3cc] ss:$20 sps:$4 sm:$0xff]  }
 0x190   : > { %4989 = vmatprep.subr.bf16.mxu1 %v7264_v18  ;;  %v7310_v18 = vld [vmem:[%s8090_s5 + $0x3c8] ss:$20 sps:$4 sm:$0xff]   ;;  %v7313_v21 = vld [vmem:[%s8090_s5 + $0x580] ss:$20 sps:$4 sm:$0xff]  }
 0x192   : > { %5021 = vmatpush1.bf16.msra.mxu0 %v7265_v27  ;;  %v7321_v27 = vld [vmem:[%s8090_s5 + $0x8a4] ss:$20 sps:$4 sm:$0xff]  }
 0x193   : > { %4990 = vmatpush2.bf16.msra.mxu1 %v7262_v26  ;;  %5022 = vmatprep.subr.bf16.mxu0 %v7273_v30  ;;  %v7318_v26 = vld [vmem:[%s8090_s5 + $0x55c] ss:$20 sps:$4 sm:$0xff]   ;;  %v7319_v30 = vld [vmem:[%s8090_s5 + $0x8a0] ss:$20 sps:$4 sm:$0xff]  }
 0x194   : > { %4991 = vmatprep.subr.bf16.mxu1 %v7270_v29  ;;  %v7316_v29 = vld [vmem:[%s8090_s5 + $0x558] ss:$20 sps:$4 sm:$0xff]  }
 0x196   : > { %5023 = vmatpush2.bf16.msra.mxu0 %v7271_v32  ;;  %v7327_v32 = vld [vmem:[%s8090_s5 + $0x87c] ss:$20 sps:$4 sm:$0xff]  }
 0x197   : > { %4992 = vmatpush2.bf16.msra.mxu1 %v7268_v31  ;;  %5024 = vmatprep.subr.bf16.mxu0 %v7279_v34  ;;  %v7324_v31 = vld [vmem:[%s8090_s5 + $0x534] ss:$20 sps:$4 sm:$0xff]   ;;  %v7325_v34 = vld [vmem:[%s8090_s5 + $0x878] ss:$20 sps:$4 sm:$0xff]  }
 0x198   : > { %4993 = vmatprep.subr.bf16.mxu1 %v7276_v33  ;;  %v7322_v33 = vld [vmem:[%s8090_s5 + $0x530] ss:$20 sps:$4 sm:$0xff]  }
 0x19a   : > { %5025 = vmatpush2.bf16.msra.mxu0 %v7277_v42  ;;  %v7333_v42 = vld [vmem:[%s8090_s5 + $0x854] ss:$20 sps:$4 sm:$0xff]  }
 0x19b   : > { %4994 = vmatpush2.bf16.msra.mxu1 %v7274_v41  ;;  %5026 = vmatprep.subr.bf16.mxu0 %v7285_v44  ;;  %v7330_v41 = vld [vmem:[%s8090_s5 + $0x50c] ss:$20 sps:$4 sm:$0xff]   ;;  %v7331_v44 = vld [vmem:[%s8090_s5 + $0x850] ss:$20 sps:$4 sm:$0xff]  }
 0x19c   : > { %4995 = vmatprep.subr.bf16.mxu1 %v7282_v22  ;;  %v7328_v22 = vld [vmem:[%s8090_s5 + $0x508] ss:$20 sps:$4 sm:$0xff]  }
 0x19e   : > { %5027 = vmatpush2.bf16.msra.mxu0 %v7283_v46  ;;  %v7339_v46 = vld [vmem:[%s8090_s5 + $0x82c] ss:$20 sps:$4 sm:$0xff]  }
 0x19f   : > { %4996 = vmatpush2.bf16.msra.mxu1 %v7280_v45  ;;  %5028 = vmatprep.subr.bf16.mxu0 %v7288_v48  ;;  %v7336_v45 = vld [vmem:[%s8090_s5 + $0x764] ss:$20 sps:$4 sm:$0xff]   ;;  %v7334_v48 = vld [vmem:[%s8090_s5 + $0x760] ss:$20 sps:$4 sm:$0xff]  }
 0x1a0   : > { %5047 = vmatprep.subr.bf16.mxu1 %v7291_v49  ;;  %v7337_v49 = vld [vmem:[%s8090_s5 + $0x828] ss:$20 sps:$4 sm:$0xff]  }
 0x1a1   : > { %v4712_v58 = vpop.f32.mrf.mxu0 }
 0x1a2   : > { %4998 = vmatmul.mubr.bf16.vlgmr.msra.gmra.mxu1 %v8168_v6  ;;  %v4753_v59 = vpop.f32.mrf.mxu1  ;;  %v4713_v60 = vadd.f32 %v4712_v58, %v8454_v19  ;;  %5029 = vmatpush2.bf16.msra.mxu0 %v7286_v50  ;;  %v7342_v50 = vld [vmem:[%s8090_s5 + $0x73c] ss:$20 sps:$4 sm:$0xff]  }
 0x1a3   : > { %5048 = vmatpush1.bf16.msra.mxu1 %v7289_v52  ;;  %v4714_v61 = vpop.f32.mrf.mxu0  ;;  %5030 = vmatprep.subr.bf16.mxu0 %v7294_v53  ;;  %v7345_v52 = vld [vmem:[%s8090_s5 + $0x804] ss:$20 sps:$4 sm:$0xff]  }
 0x1a4   : > { %v4755_v62 = vpop.f32.mrf.mxu1  ;;  %5049 = vmatprep.subr.bf16.mxu1 %v7297_v55  ;;  %v4715_v3 = vadd.f32 %v4714_v61, %v8459_v28  ;;  %v8529_v4 = vadd.f32 %v4753_v59, %v4713_v60  ;;  %5079 = vmatprep.mubr.bf16.mxu1 %v8206_v36  ;;  %v7306_v28 = vld [vmem:[%s8090_s5 + $0x3f4] ss:$20 sps:$4 sm:$0xff]   ;;  %v7340_v53 = vld [vmem:[%s8090_s5 + $0x738] ss:$20 sps:$4 sm:$0xff]   ;;  %v7346_v58 = vld [vmem:[%s8090_s5 + $0x710] ss:$20 sps:$4 sm:$0xff]  }
 0x1a5   : > { %v4716_v19 = vpop.f32.mrf.mxu0  ;;  %v7343_v55 = vld [vmem:[%s8090_s5 + $0x800] ss:$20 sps:$4 sm:$0xff]   ;;  %v7349_v59 = vld [vmem:[%s8090_s5 + $0x7d8] ss:$20 sps:$4 sm:$0xff]  }
 0x1a6   : > { %v4757_v39 = vpop.f32.mrf.mxu1  ;;  %v8534_v40 = vadd.f32 %v4755_v62, %v4715_v3  ;;  %5031 = vmatpush2.bf16.msra.mxu0 %v7292_v56  ;;  %v7348_v56 = vld [vmem:[%s8090_s5 + $0x714] ss:$20 sps:$4 sm:$0xff]   ;;  %v7354_v60 = vld [vmem:[%s8090_s5 + $0x6ec] ss:$20 sps:$4 sm:$0xff]   ;;  %v7366_v19 = vld [vmem:[%s8090_s5 + $0x69c] ss:$20 sps:$4 sm:$0xff]  }
 0x1a7   : > { %5050 = vmatpush1.bf16.msra.mxu1 %v7295_v57  ;;  %v4717_v9 = vpop.f32.mrf.mxu0  ;;  %5032 = vmatprep.subr.bf16.mxu0 %v7300_v1  ;;  %v7351_v57 = vld [vmem:[%s8090_s5 + $0x7dc] ss:$20 sps:$4 sm:$0xff]   ;;  %v7357_v61 = vld [vmem:[%s8090_s5 + $0x7b4] ss:$20 sps:$4 sm:$0xff]   ;;  %v7363_v3 = vld [vmem:[%s8090_s5 + $0x78c] ss:$20 sps:$4 sm:$0xff]  }
 0x1a8   : > { %5051 = vmatprep.subr.bf16.mxu1 %v7303_v2  ;;  %v4758_v11 = vpop.f32.mrf.mxu1  ;;  %v7352_v62 = vld [vmem:[%s8090_s5 + $0x6e8] ss:$20 sps:$4 sm:$0xff]   ;;  %v7355_v1 = vld [vmem:[%s8090_s5 + $0x7b0] ss:$20 sps:$4 sm:$0xff]   ;;  %v7364_v9 = vld [vmem:[%s8090_s5 + $0x698] ss:$20 sps:$4 sm:$0xff]  }
 0x1a9   : > { %v7360_v2 = vld [vmem:[%s8090_s5 + $0x6c4] ss:$20 sps:$4 sm:$0xff]   ;;  %v7375_v11 = vld [vmem:[%s8090_s5 + $0x9bc] ss:$20 sps:$4 sm:$0xff]  }
 0x1aa   : > { %5033 = vmatpush2.bf16.msra.mxu0 %v7298_v5  ;;  %v7358_v5 = vld [vmem:[%s8090_s5 + $0x6c0] ss:$20 sps:$4 sm:$0xff]   ;;  %v7369_v39 = vld [vmem:[%s8090_s5 + $0x9e4] ss:$20 sps:$4 sm:$0xff]  }
 0x1ab   : > { %5052 = vmatpush1.bf16.msra.mxu1 %v7301_v8  ;;  %5034 = vmatprep.subr.bf16.mxu0 %v7306_v28  ;;  %v7361_v8 = vld [vmem:[%s8090_s5 + $0x788] ss:$20 sps:$4 sm:$0xff]   ;;  %v7367_v28 = vld [vmem:[%s8090_s5 + $0x9e0] ss:$20 sps:$4 sm:$0xff]  }
 0x1ac   : > { %5053 = vmatprep.subr.bf16.mxu1 %v7309_v10  ;;  %v7372_v10 = vld [vmem:[%s8090_s5 + $0x674] ss:$20 sps:$4 sm:$0xff]  }
 0x1ae   : > { %5035 = vmatpush2.bf16.msra.mxu0 %v7304_v12  ;;  %v7370_v12 = vld [vmem:[%s8090_s5 + $0x670] ss:$20 sps:$4 sm:$0xff]  }
 0x1af   : > { %5054 = vmatpush1.bf16.msra.mxu1 %v7307_v13  ;;  %5036 = vmatprep.subr.bf16.mxu0 %v7312_v14  ;;  %v7373_v13 = vld [vmem:[%s8090_s5 + $0x9b8] ss:$20 sps:$4 sm:$0xff]  }
 0x1b0   : > { %5055 = vmatprep.subr.bf16.mxu1 %v7315_v15  ;;  %v7378_v14 = vld [vmem:[%s8090_s5 + $0x64c] ss:$20 sps:$4 sm:$0xff]   ;;  %v7381_v15 = vld [vmem:[%s8090_s5 + $0x994] ss:$20 sps:$4 sm:$0xff]  }
 0x1b2   : > { %5037 = vmatpush2.bf16.msra.mxu0 %v7310_v18  ;;  %v7376_v18 = vld [vmem:[%s8090_s5 + $0x648] ss:$20 sps:$4 sm:$0xff]  }
 0x1b3   : > { %5056 = vmatpush1.bf16.msra.mxu1 %v7313_v21  ;;  %5088 = vmatprep.subr.bf16.mxu0 %v7321_v27  ;;  %v7379_v21 = vld [vmem:[%s8090_s5 + $0x990] ss:$20 sps:$4 sm:$0xff]  }
 0x1b4   : > { %5057 = vmatprep.subr.bf16.mxu1 %v7318_v26  ;;  %v7384_v26 = vld [vmem:[%s8090_s5 + $0x96c] ss:$20 sps:$4 sm:$0xff]   ;;  %v7387_v27 = vld [vmem:[%s8090_s5 + $0xb24] ss:$20 sps:$4 sm:$0xff]  }
 0x1b5   : > { %5039 = vmatmul.mubr.bf16.vlgmr.msra.gmra.mxu0 %v8170_v7 }
 0x1b6   : > { %5089 = vmatpush1.bf16.msra.mxu0 %v7319_v30  ;;  %5120 = vmatprep.mubr.bf16.mxu0 %v8210_v37  ;;  %v7385_v30 = vld [vmem:[%s8090_s5 + $0xb20] ss:$20 sps:$4 sm:$0xff]  }
 0x1b7   : > { %5058 = vmatpush1.bf16.msra.mxu1 %v7316_v29  ;;  %5090 = vmatprep.subr.bf16.mxu0 %v7327_v32  ;;  %v7382_v29 = vld [vmem:[%s8090_s5 + $0x968] ss:$20 sps:$4 sm:$0xff]  }
 0x1b8   : > { %5059 = vmatprep.subr.bf16.mxu1 %v7324_v31  ;;  %v7390_v31 = vld [vmem:[%s8090_s5 + $0x944] ss:$20 sps:$4 sm:$0xff]   ;;  %v7393_v32 = vld [vmem:[%s8090_s5 + $0xafc] ss:$20 sps:$4 sm:$0xff]  }
 0x1ba   : > { %5091 = vmatpush1.bf16.msra.mxu0 %v7325_v34 }
 0x1bb   : > { %5060 = vmatpush1.bf16.msra.mxu1 %v7322_v33  ;;  %5092 = vmatprep.subr.bf16.mxu0 %v7333_v42 }
 0x1bc   : > { %5061 = vmatprep.subr.bf16.mxu1 %v7330_v41  ;;  %v7388_v41 = vld [vmem:[%s8090_s5 + $0x940] ss:$20 sps:$4 sm:$0xff]  }
 0x1be   : > { %5093 = vmatpush1.bf16.msra.mxu0 %v7331_v44  ;;  %v7396_v44 = vld [vmem:[%s8090_s5 + $0x91c] ss:$20 sps:$4 sm:$0xff]  }
 0x1bf   : > { %5062 = vmatpush1.bf16.msra.mxu1 %v7328_v22  ;;  %5094 = vmatprep.subr.bf16.mxu0 %v7339_v46  ;;  %v7391_v22 = vld [vmem:[%s8090_s5 + $0xaf8] ss:$20 sps:$4 sm:$0xff]  }
 0x1c0   : > { %5063 = vmatprep.subr.bf16.mxu1 %v7336_v45  ;;  %v7399_v45 = vld [vmem:[%s8090_s5 + $0xad4] ss:$20 sps:$4 sm:$0xff]  }
 0x1c2   : > { %5095 = vmatpush1.bf16.msra.mxu0 %v7337_v49 }
 0x1c3   : > { %5064 = vmatpush2.bf16.msra.mxu1 %v7334_v48  ;;  %5096 = vmatprep.subr.bf16.mxu0 %v7345_v52 }
 0x1c4   : > { %5065 = vmatprep.subr.bf16.mxu1 %v7342_v50 }
 0x1c6   : > { %5097 = vmatpush1.bf16.msra.mxu0 %v7343_v55  ;;  %v7394_v55 = vld [vmem:[%s8090_s5 + $0x918] ss:$20 sps:$4 sm:$0xff]  }
 0x1c7   : > { %5066 = vmatpush2.bf16.msra.mxu1 %v7340_v53  ;;  %5098 = vmatprep.subr.bf16.mxu0 %v7351_v57  ;;  %v7402_v57 = vld [vmem:[%s8090_s5 + $0x8f4] ss:$20 sps:$4 sm:$0xff]  }
 0x1c8   : > { %5067 = vmatprep.subr.bf16.mxu1 %v7348_v56  ;;  %v7397_v56 = vld [vmem:[%s8090_s5 + $0xad0] ss:$20 sps:$4 sm:$0xff]  }
 0x1ca   : > { %5099 = vmatpush1.bf16.msra.mxu0 %v7349_v59 }
 0x1cb   : > { %5068 = vmatpush2.bf16.msra.mxu1 %v7346_v58  ;;  %5100 = vmatprep.subr.bf16.mxu0 %v7357_v61  ;;  %v7403_v61 = vld [vmem:[%s8090_s5 + $0xaa8] ss:$20 sps:$4 sm:$0xff]  }
 0x1cc   : > { %5069 = vmatprep.subr.bf16.mxu1 %v7354_v60  ;;  %v7400_v60 = vld [vmem:[%s8090_s5 + $0x8f0] ss:$20 sps:$4 sm:$0xff]  }
 0x1ce   : > { %5101 = vmatpush1.bf16.msra.mxu0 %v7355_v1  ;;  %v7411_v1 = vld [vmem:[%s8090_s5 + $0xa84] ss:$20 sps:$4 sm:$0xff]  }
 0x1cf   : > { %5070 = vmatpush2.bf16.msra.mxu1 %v7352_v62  ;;  %5102 = vmatprep.subr.bf16.mxu0 %v7363_v3  ;;  %v7408_v62 = vld [vmem:[%s8090_s5 + $0x8cc] ss:$20 sps:$4 sm:$0xff]  }
 0x1d0   : > { %5071 = vmatprep.subr.bf16.mxu1 %v7360_v2  ;;  %v7406_v2 = vld [vmem:[%s8090_s5 + $0x8c8] ss:$20 sps:$4 sm:$0xff]   ;;  %v7409_v3 = vld [vmem:[%s8090_s5 + $0xa80] ss:$20 sps:$4 sm:$0xff]  }
 0x1d2   : > { %5103 = vmatpush1.bf16.msra.mxu0 %v7361_v8  ;;  %v7417_v8 = vld [vmem:[%s8090_s5 + $0xda4] ss:$20 sps:$4 sm:$0xff]  }
 0x1d3   : > { %5072 = vmatpush2.bf16.msra.mxu1 %v7358_v5  ;;  %5104 = vmatprep.subr.bf16.mxu0 %v7369_v39  ;;  %v7414_v5 = vld [vmem:[%s8090_s5 + $0xa5c] ss:$20 sps:$4 sm:$0xff]   ;;  %v7415_v39 = vld [vmem:[%s8090_s5 + $0xda0] ss:$20 sps:$4 sm:$0xff]  }
 0x1d4   : > { %5073 = vmatprep.subr.bf16.mxu1 %v7366_v19  ;;  %v7412_v19 = vld [vmem:[%s8090_s5 + $0xa58] ss:$20 sps:$4 sm:$0xff]  }
 0x1d6   : > { %5105 = vmatpush2.bf16.msra.mxu0 %v7367_v28  ;;  %v7423_v28 = vld [vmem:[%s8090_s5 + $0xd7c] ss:$20 sps:$4 sm:$0xff]  }
 0x1d7   : > { %5074 = vmatpush2.bf16.msra.mxu1 %v7364_v9  ;;  %5106 = vmatprep.subr.bf16.mxu0 %v7375_v11  ;;  %v7420_v9 = vld [vmem:[%s8090_s5 + $0xa34] ss:$20 sps:$4 sm:$0xff]   ;;  %v7421_v11 = vld [vmem:[%s8090_s5 + $0xd78] ss:$20 sps:$4 sm:$0xff]  }
 0x1d8   : > { %5075 = vmatprep.subr.bf16.mxu1 %v7372_v10  ;;  %v7418_v10 = vld [vmem:[%s8090_s5 + $0xa30] ss:$20 sps:$4 sm:$0xff]  }
 0x1da   : > { %5107 = vmatpush2.bf16.msra.mxu0 %v7373_v13  ;;  %v7429_v13 = vld [vmem:[%s8090_s5 + $0xd54] ss:$20 sps:$4 sm:$0xff]  }
 0x1db   : > { %5076 = vmatpush2.bf16.msra.mxu1 %v7370_v12  ;;  %5108 = vmatprep.subr.bf16.mxu0 %v7381_v15  ;;  %v7426_v12 = vld [vmem:[%s8090_s5 + $0xa0c] ss:$20 sps:$4 sm:$0xff]   ;;  %v7427_v15 = vld [vmem:[%s8090_s5 + $0xd50] ss:$20 sps:$4 sm:$0xff]  }
 0x1dc   : > { %5077 = vmatprep.subr.bf16.mxu1 %v7378_v14  ;;  %v7424_v14 = vld [vmem:[%s8090_s5 + $0xa08] ss:$20 sps:$4 sm:$0xff]  }
 0x1de   : > { %5109 = vmatpush2.bf16.msra.mxu0 %v7379_v21  ;;  %v7435_v21 = vld [vmem:[%s8090_s5 + $0xd2c] ss:$20 sps:$4 sm:$0xff]  }
 0x1df   : > { %5078 = vmatpush2.bf16.msra.mxu1 %v7376_v18  ;;  %5110 = vmatprep.subr.bf16.mxu0 %v7384_v26  ;;  %v7432_v18 = vld [vmem:[%s8090_s5 + $0xc64] ss:$20 sps:$4 sm:$0xff]   ;;  %v7430_v26 = vld [vmem:[%s8090_s5 + $0xc60] ss:$20 sps:$4 sm:$0xff]  }
 0x1e0   : > { %5129 = vmatprep.subr.bf16.mxu1 %v7387_v27  ;;  %v7433_v27 = vld [vmem:[%s8090_s5 + $0xd28] ss:$20 sps:$4 sm:$0xff]  }
 0x1e1   : > { %v4794_v33 = vpop.f32.mrf.mxu0 }
 0x1e2   : > { %5080 = vmatmul.mubr.bf16.vlgmr.msra.gmra.mxu1 %v8254_v16  ;;  %v4835_v34 = vpop.f32.mrf.mxu1  ;;  %v4795_v42 = vadd.f32 %v4794_v33, %v8529_v4  ;;  %5111 = vmatpush2.bf16.msra.mxu0 %v7382_v29  ;;  %v7438_v29 = vld [vmem:[%s8090_s5 + $0xc3c] ss:$20 sps:$4 sm:$0xff]   ;;  %v7444_v33 = vld [vmem:[%s8090_s5 + $0xc14] ss:$20 sps:$4 sm:$0xff]  }
 0x1e3   : > { %5130 = vmatpush1.bf16.msra.mxu1 %v7385_v30  ;;  %v4796_v46 = vpop.f32.mrf.mxu0  ;;  %5112 = vmatprep.subr.bf16.mxu0 %v7390_v31  ;;  %v7441_v30 = vld [vmem:[%s8090_s5 + $0xd04] ss:$20 sps:$4 sm:$0xff]  }
 0x1e4   : > { %v4837_v48 = vpop.f32.mrf.mxu1  ;;  %5131 = vmatprep.subr.bf16.mxu1 %v7393_v32  ;;  %v4797_v49 = vadd.f32 %v4796_v46, %v8534_v40  ;;  %v8603_v50 = vadd.f32 %v4835_v34, %v4795_v42  ;;  %5161 = vmatprep.mubr.bf16.mxu1 %v8270_v24  ;;  %v7405_v40 = vld [vmem:[%s8090_s5 + $0xaac] ss:$20 sps:$4 sm:$0xff]   ;;  %v7447_v34 = vld [vmem:[%s8090_s5 + $0xcdc] ss:$20 sps:$4 sm:$0xff]  }
 0x1e5   : > { %v4798_v4 = vpop.f32.mrf.mxu0  ;;  %v7436_v31 = vld [vmem:[%s8090_s5 + $0xc38] ss:$20 sps:$4 sm:$0xff]   ;;  %v7439_v32 = vld [vmem:[%s8090_s5 + $0xd00] ss:$20 sps:$4 sm:$0xff]   ;;  %v7451_v46 = vld [vmem:[%s8090_s5 + $0xcb0] ss:$20 sps:$4 sm:$0xff]  }
 0x1e6   : > { %v4839_v52 = vpop.f32.mrf.mxu1  ;;  %v8606_v53 = vadd.f32 %v4837_v48, %v4797_v49  ;;  %5113 = vmatpush2.bf16.msra.mxu0 %v7388_v41  ;;  %v7442_v41 = vld [vmem:[%s8090_s5 + $0xc10] ss:$20 sps:$4 sm:$0xff]   ;;  %v7445_v42 = vld [vmem:[%s8090_s5 + $0xcd8] ss:$20 sps:$4 sm:$0xff]   ;;  %v7454_v4 = vld [vmem:[%s8090_s5 + $0xbc0] ss:$20 sps:$4 sm:$0xff]  }
 0x1e7   : > { %5132 = vmatpush1.bf16.msra.mxu1 %v7391_v22  ;;  %v4799_v58 = vpop.f32.mrf.mxu0  ;;  %5114 = vmatprep.subr.bf16.mxu0 %v7396_v44  ;;  %v7450_v22 = vld [vmem:[%s8090_s5 + $0xbec] ss:$20 sps:$4 sm:$0xff]   ;;  %v7453_v44 = vld [vmem:[%s8090_s5 + $0xcb4] ss:$20 sps:$4 sm:$0xff]   ;;  %v7456_v48 = vld [vmem:[%s8090_s5 + $0xbc4] ss:$20 sps:$4 sm:$0xff]  }
 0x1e8   : > { %5133 = vmatprep.subr.bf16.mxu1 %v7399_v45  ;;  %v4840_v59 = vpop.f32.mrf.mxu1  ;;  %v7448_v45 = vld [vmem:[%s8090_s5 + $0xbe8] ss:$20 sps:$4 sm:$0xff]   ;;  %v7459_v49 = vld [vmem:[%s8090_s5 + $0xc8c] ss:$20 sps:$4 sm:$0xff]  }
 0x1e9   : > { %v7457_v52 = vld [vmem:[%s8090_s5 + $0xc88] ss:$20 sps:$4 sm:$0xff]   ;;  %v7463_v58 = vld [vmem:[%s8090_s5 + $0xee0] ss:$20 sps:$4 sm:$0xff]  }
 0x1ea   : > { %5115 = vmatpush2.bf16.msra.mxu0 %v7394_v55  ;;  %v7462_v55 = vld [vmem:[%s8090_s5 + $0xb9c] ss:$20 sps:$4 sm:$0xff]  }
 0x1eb   : > { %5134 = vmatpush1.bf16.msra.mxu1 %v7397_v56  ;;  %5116 = vmatprep.subr.bf16.mxu0 %v7402_v57  ;;  %v7465_v56 = vld [vmem:[%s8090_s5 + $0xee4] ss:$20 sps:$4 sm:$0xff]   ;;  %v7471_v59 = vld [vmem:[%s8090_s5 + $0xebc] ss:$20 sps:$4 sm:$0xff]  }
 0x1ec   : > { %5135 = vmatprep.subr.bf16.mxu1 %v7405_v40  ;;  %v7460_v57 = vld [vmem:[%s8090_s5 + $0xb98] ss:$20 sps:$4 sm:$0xff]   ;;  %v7468_v40 = vld [vmem:[%s8090_s5 + $0xb74] ss:$20 sps:$4 sm:$0xff]  }
 0x1ee   : > { %5117 = vmatpush2.bf16.msra.mxu0 %v7400_v60  ;;  %v7466_v60 = vld [vmem:[%s8090_s5 + $0xb70] ss:$20 sps:$4 sm:$0xff]  }
 0x1ef   : > { %5136 = vmatpush1.bf16.msra.mxu1 %v7403_v61  ;;  %5118 = vmatprep.subr.bf16.mxu0 %v7408_v62  ;;  %v7469_v61 = vld [vmem:[%s8090_s5 + $0xeb8] ss:$20 sps:$4 sm:$0xff]  }
 0x1f0   : > { %5137 = vmatprep.subr.bf16.mxu1 %v7411_v1  ;;  %v7474_v62 = vld [vmem:[%s8090_s5 + $0xb4c] ss:$20 sps:$4 sm:$0xff]   ;;  %v7477_v1 = vld [vmem:[%s8090_s5 + $0xe94] ss:$20 sps:$4 sm:$0xff]  }
 0x1f2   : > { %5119 = vmatpush2.bf16.msra.mxu0 %v7406_v2  ;;  %v7472_v2 = vld [vmem:[%s8090_s5 + $0xb48] ss:$20 sps:$4 sm:$0xff]  }
 0x1f3   : > { %5138 = vmatpush1.bf16.msra.mxu1 %v7409_v3  ;;  %5170 = vmatprep.subr.bf16.mxu0 %v7417_v8  ;;  %v7475_v3 = vld [vmem:[%s8090_s5 + $0xe90] ss:$20 sps:$4 sm:$0xff]  }
 0x1f4   : > { %5139 = vmatprep.subr.bf16.mxu1 %v7414_v5  ;;  %v7480_v5 = vld [vmem:[%s8090_s5 + $0xe6c] ss:$20 sps:$4 sm:$0xff]   ;;  %v7483_v8 = vld [vmem:[%s8090_s5 + $0x1024] ss:$20 sps:$4 sm:$0xff]  }
 0x1f5   : > { %5121 = vmatmul.mubr.bf16.vlgmr.msra.gmra.mxu0 %v8258_v17 }
 0x1f6   : > { %5171 = vmatpush1.bf16.msra.mxu0 %v7415_v39  ;;  %5202 = vmatprep.mubr.bf16.mxu0 %v8274_v25  ;;  %v7481_v39 = vld [vmem:[%s8090_s5 + $0x1020] ss:$20 sps:$4 sm:$0xff]  }
 0x1f7   : > { %5140 = vmatpush1.bf16.msra.mxu1 %v7412_v19  ;;  %5172 = vmatprep.subr.bf16.mxu0 %v7423_v28  ;;  %v7478_v19 = vld [vmem:[%s8090_s5 + $0xe68] ss:$20 sps:$4 sm:$0xff]  }
 0x1f8   : > { %5141 = vmatprep.subr.bf16.mxu1 %v7420_v9  ;;  %v7486_v9 = vld [vmem:[%s8090_s5 + $0xe44] ss:$20 sps:$4 sm:$0xff]   ;;  %v7489_v28 = vld [vmem:[%s8090_s5 + $0xffc] ss:$20 sps:$4 sm:$0xff]  }
 0x1fa   : > { %5173 = vmatpush1.bf16.msra.mxu0 %v7421_v11 }
 0x1fb   : > { %5142 = vmatpush1.bf16.msra.mxu1 %v7418_v10  ;;  %5174 = vmatprep.subr.bf16.mxu0 %v7429_v13  ;;  %v7484_v10 = vld [vmem:[%s8090_s5 + $0xe40] ss:$20 sps:$4 sm:$0xff]   ;;  %v7487_v13 = vld [vmem:[%s8090_s5 + $0xff8] ss:$20 sps:$4 sm:$0xff]  }
 0x1fc   : > { %5143 = vmatprep.subr.bf16.mxu1 %v7426_v12 }
 0x1fe   : > { %5175 = vmatpush1.bf16.msra.mxu0 %v7427_v15 }
 0x1ff   : > { %5144 = vmatpush1.bf16.msra.mxu1 %v7424_v14  ;;  %5176 = vmatprep.subr.bf16.mxu0 %v7435_v21  ;;  %v7492_v14 = vld [vmem:[%s8090_s5 + $0xe1c] ss:$20 sps:$4 sm:$0xff]   ;;  %v7495_v21 = vld [vmem:[%s8090_s5 + $0xfd4] ss:$20 sps:$4 sm:$0xff]  }
 0x200   : > { %5145 = vmatprep.subr.bf16.mxu1 %v7432_v18 }
 0x202   : > { %5177 = vmatpush1.bf16.msra.mxu0 %v7433_v27  ;;  %v7490_v27 = vld [vmem:[%s8090_s5 + $0xe18] ss:$20 sps:$4 sm:$0xff]  }
 0x203   : > { %5146 = vmatpush2.bf16.msra.mxu1 %v7430_v26  ;;  %5178 = vmatprep.subr.bf16.mxu0 %v7441_v30  ;;  %v7493_v30 = vld [vmem:[%s8090_s5 + $0xfd0] ss:$20 sps:$4 sm:$0xff]  }
 0x204   : > { %5147 = vmatprep.subr.bf16.mxu1 %v7438_v29 }
 0x206   : > { %5179 = vmatpush1.bf16.msra.mxu0 %v7439_v32 }
 0x207   : > { %5148 = vmatpush2.bf16.msra.mxu1 %v7436_v31  ;;  %5180 = vmatprep.subr.bf16.mxu0 %v7447_v34  ;;  %v7498_v31 = vld [vmem:[%s8090_s5 + $0xdf4] ss:$20 sps:$4 sm:$0xff]  }
 0x208   : > { %5149 = vmatprep.subr.bf16.mxu1 %v7444_v33  ;;  %v7501_v33 = vld [vmem:[%s8090_s5 + $0xfac] ss:$20 sps:$4 sm:$0xff]  }
 0x20a   : > { %5181 = vmatpush1.bf16.msra.mxu0 %v7445_v42  ;;  %v7499_v42 = vld [vmem:[%s8090_s5 + $0xfa8] ss:$20 sps:$4 sm:$0xff]  }
 0x20b   : > { %5150 = vmatpush2.bf16.msra.mxu1 %v7442_v41  ;;  %5182 = vmatprep.subr.bf16.mxu0 %v7453_v44  ;;  %v7496_v41 = vld [vmem:[%s8090_s5 + $0xdf0] ss:$20 sps:$4 sm:$0xff]  }
 0x20c   : > { %5151 = vmatprep.subr.bf16.mxu1 %v7450_v22  ;;  %v7504_v22 = vld [vmem:[%s8090_s5 + $0xdcc] ss:$20 sps:$4 sm:$0xff]   ;;  %v7507_v44 = vld [vmem:[%s8090_s5 + $0xf84] ss:$20 sps:$4 sm:$0xff]  }
 0x20e   : > { %5183 = vmatpush1.bf16.msra.mxu0 %v7451_v46  ;;  %v7505_v46 = vld [vmem:[%s8090_s5 + $0xf80] ss:$20 sps:$4 sm:$0xff]  }
 0x20f   : > { %5152 = vmatpush2.bf16.msra.mxu1 %v7448_v45  ;;  %5184 = vmatprep.subr.bf16.mxu0 %v7459_v49  ;;  %v7502_v45 = vld [vmem:[%s8090_s5 + $0xdc8] ss:$20 sps:$4 sm:$0xff]   ;;  %v7513_v49 = vld [vmem:[%s8090_s5 + $0x12a4] ss:$20 sps:$4 sm:$0xff]  }
 0x210   : > { %5153 = vmatprep.subr.bf16.mxu1 %v7456_v48  ;;  %v7510_v48 = vld [vmem:[%s8090_s5 + $0xf5c] ss:$20 sps:$4 sm:$0xff]  }
 0x212   : > { %5185 = vmatpush1.bf16.msra.mxu0 %v7457_v52  ;;  %v7508_v52 = vld [vmem:[%s8090_s5 + $0xf58] ss:$20 sps:$4 sm:$0xff]  }
 0x213   : > { %5154 = vmatpush2.bf16.msra.mxu1 %v7454_v4  ;;  %5186 = vmatprep.subr.bf16.mxu0 %v7465_v56 }
 0x214   : > { %5155 = vmatprep.subr.bf16.mxu1 %v7462_v55  ;;  %v7511_v55 = vld [vmem:[%s8090_s5 + $0x12a0] ss:$20 sps:$4 sm:$0xff]  }
 0x216   : > { %5187 = vmatpush2.bf16.msra.mxu0 %v7463_v58  ;;  %v7519_v58 = vld [vmem:[%s8090_s5 + $0x127c] ss:$20 sps:$4 sm:$0xff]  }
 0x217   : > { %5156 = vmatpush2.bf16.msra.mxu1 %v7460_v57  ;;  %5188 = vmatprep.subr.bf16.mxu0 %v7471_v59  ;;  %v7516_v57 = vld [vmem:[%s8090_s5 + $0xf34] ss:$20 sps:$4 sm:$0xff]  }
 0x218   : > { %5157 = vmatprep.subr.bf16.mxu1 %v7468_v40 }
 0x21a   : > { %5189 = vmatpush2.bf16.msra.mxu0 %v7469_v61  ;;  %v7514_v61 = vld [vmem:[%s8090_s5 + $0xf30] ss:$20 sps:$4 sm:$0xff]  }
 0x21b   : > { %5158 = vmatpush2.bf16.msra.mxu1 %v7466_v60  ;;  %5190 = vmatprep.subr.bf16.mxu0 %v7477_v1  ;;  %v7522_v1 = vld [vmem:[%s8090_s5 + $0xf0c] ss:$20 sps:$4 sm:$0xff]  }
 0x21c   : > { %5159 = vmatprep.subr.bf16.mxu1 %v7474_v62 }
 0x21e   : > { %5191 = vmatpush2.bf16.msra.mxu0 %v7475_v3 }
 0x21f   : > { %5160 = vmatpush2.bf16.msra.mxu1 %v7472_v2  ;;  %5192 = vmatprep.subr.bf16.mxu0 %v7480_v5  ;;  %v7525_v2 = vld [vmem:[%s8090_s5 + $0x1254] ss:$20 sps:$4 sm:$0xff]  }
 0x220   : > { %5211 = vmatprep.subr.bf16.mxu1 %v7483_v8 }
 0x221   : > { %v4876_v11 = vpop.f32.mrf.mxu0 }
 0x222   : > { %5162 = vmatmul.mubr.bf16.vlgmr.msra.gmra.mxu1 %v8343_v35  ;;  %v4917_v12 = vpop.f32.mrf.mxu1  ;;  %5193 = vmatpush2.bf16.msra.mxu0 %v7478_v19  ;;  %v4877_v4 = vadd.f32 %v4876_v11, %v8603_v50  ;;  %v7531_v11 = vld [vmem:[%s8090_s5 + $0x122c] ss:$20 sps:$4 sm:$0xff]  }
 0x223   : > { %5212 = vmatpush1.bf16.msra.mxu1 %v7481_v39  ;;  %v4878_v15 = vpop.f32.mrf.mxu0  ;;  %5194 = vmatprep.subr.bf16.mxu0 %v7486_v9  ;;  %v7520_v39 = vld [vmem:[%s8090_s5 + $0xf08] ss:$20 sps:$4 sm:$0xff]   ;;  %v7523_v9 = vld [vmem:[%s8090_s5 + $0x1250] ss:$20 sps:$4 sm:$0xff]  }
 0x224   : > { %v4919_v18 = vpop.f32.mrf.mxu1  ;;  %5213 = vmatprep.subr.bf16.mxu1 %v7489_v28  ;;  %5243 = vmatprep.mubr.bf16.mxu1 %v8358_v43  ;;  %v4879_v56 = vadd.f32 %v4878_v15, %v8606_v53  ;;  %v4918_v40 = vadd.f32 %v4917_v12, %v4877_v4  ;;  %v7517_v53 = vld [vmem:[%s8090_s5 + $0x1278] ss:$20 sps:$4 sm:$0xff]   ;;  %v7526_v12 = vld [vmem:[%s8090_s5 + $0x1160] ss:$20 sps:$4 sm:$0xff]  }
 0x225   : > { %v4880_v26 = vpop.f32.mrf.mxu0  ;;  %v7537_v15 = vld [vmem:[%s8090_s5 + $0x1204] ss:$20 sps:$4 sm:$0xff]   ;;  %v7564_v4 = vld [vmem:[%s8090_s5 + $0x1074] ss:$20 sps:$4 sm:$0xff]  }
 0x226   : > { %v4921_v29 = vpop.f32.mrf.mxu1  ;;  %5195 = vmatpush2.bf16.msra.mxu0 %v7484_v10  ;;  %v4920_v50 = vadd.f32 %v4919_v18, %v4879_v56  ;;  %v7528_v10 = vld [vmem:[%s8090_s5 + $0x1164] ss:$20 sps:$4 sm:$0xff]   ;;  %v7540_v26 = vld [vmem:[%s8090_s5 + $0x1114] ss:$20 sps:$4 sm:$0xff]  }
 0x227   : > { %5214 = vmatpush1.bf16.msra.mxu1 %v7487_v13  ;;  %v4881_v32 = vpop.f32.mrf.mxu0  ;;  %5196 = vmatprep.subr.bf16.mxu0 %v7492_v14  ;;  %v7529_v13 = vld [vmem:[%s8090_s5 + $0x1228] ss:$20 sps:$4 sm:$0xff]   ;;  %v7532_v18 = vld [vmem:[%s8090_s5 + $0x1138] ss:$20 sps:$4 sm:$0xff]   ;;  %v7538_v29 = vld [vmem:[%s8090_s5 + $0x1110] ss:$20 sps:$4 sm:$0xff]  }
 0x228   : > { %5215 = vmatprep.subr.bf16.mxu1 %v7495_v21  ;;  %v4922_v34 = vpop.f32.mrf.mxu1  ;;  %v7534_v14 = vld [vmem:[%s8090_s5 + $0x113c] ss:$20 sps:$4 sm:$0xff]   ;;  %v7535_v21 = vld [vmem:[%s8090_s5 + $0x1200] ss:$20 sps:$4 sm:$0xff]   ;;  %v7565_v56 = vld [vmem:[%s8090_s5 + $0x13b8] ss:$20 sps:$4 sm:$0xff]  }
 0x229   : > { %v7549_v32 = vld [vmem:[%s8090_s5 + $0x11b4] ss:$20 sps:$4 sm:$0xff]   ;;  %v7547_v34 = vld [vmem:[%s8090_s5 + $0x11b0] ss:$20 sps:$4 sm:$0xff]  }
 0x22a   : > { %5197 = vmatpush2.bf16.msra.mxu0 %v7490_v27  ;;  %v7543_v27 = vld [vmem:[%s8090_s5 + $0x11dc] ss:$20 sps:$4 sm:$0xff]  }
 0x22b   : > { %5216 = vmatpush1.bf16.msra.mxu1 %v7493_v30  ;;  %5198 = vmatprep.subr.bf16.mxu0 %v7498_v31  ;;  %v7541_v30 = vld [vmem:[%s8090_s5 + $0x11d8] ss:$20 sps:$4 sm:$0xff]  }
 0x22c   : > { %5217 = vmatprep.subr.bf16.mxu1 %v7501_v33  ;;  %v7546_v31 = vld [vmem:[%s8090_s5 + $0x10ec] ss:$20 sps:$4 sm:$0xff]   ;;  %v7544_v33 = vld [vmem:[%s8090_s5 + $0x10e8] ss:$20 sps:$4 sm:$0xff]  }
 0x22e   : > { %5199 = vmatpush2.bf16.msra.mxu0 %v7496_v41  ;;  %v7552_v41 = vld [vmem:[%s8090_s5 + $0x10c4] ss:$20 sps:$4 sm:$0xff]  }
 0x22f   : > { %5218 = vmatpush1.bf16.msra.mxu1 %v7499_v42  ;;  %5200 = vmatprep.subr.bf16.mxu0 %v7504_v22  ;;  %v7555_v42 = vld [vmem:[%s8090_s5 + $0x118c] ss:$20 sps:$4 sm:$0xff]  }
 0x230   : > { %5219 = vmatprep.subr.bf16.mxu1 %v7507_v44  ;;  %v7550_v22 = vld [vmem:[%s8090_s5 + $0x10c0] ss:$20 sps:$4 sm:$0xff]   ;;  %v7553_v44 = vld [vmem:[%s8090_s5 + $0x1188] ss:$20 sps:$4 sm:$0xff]  }
 0x232   : > { %5201 = vmatpush2.bf16.msra.mxu0 %v7502_v45  ;;  %v7558_v45 = vld [vmem:[%s8090_s5 + $0x109c] ss:$20 sps:$4 sm:$0xff]  }
 0x233   : > { %5220 = vmatpush1.bf16.msra.mxu1 %v7505_v46  ;;  %5252 = vmatprep.subr.bf16.mxu0 %v7513_v49  ;;  %v7561_v46 = vld [vmem:[%s8090_s5 + $0x13e4] ss:$20 sps:$4 sm:$0xff]   ;;  %v7559_v49 = vld [vmem:[%s8090_s5 + $0x13e0] ss:$20 sps:$4 sm:$0xff]  }
 0x234   : > { %5221 = vmatprep.subr.bf16.mxu1 %v7510_v48  ;;  %v7556_v48 = vld [vmem:[%s8090_s5 + $0x1098] ss:$20 sps:$4 sm:$0xff]  }
 0x235   : > { %v4958_v59 = vpop.f32.mrf.mxu0  ;;  %5203 = vmatmul.mubr.bf16.vlgmr.msra.gmra.mxu0 %v8347_v38 }
 0x236   : > { %v4959_v60 = vadd.f32 %v4958_v59, %v4918_v40  ;;  %5253 = vmatpush1.bf16.msra.mxu0 %v7511_v55  ;;  %5284 = vmatprep.mubr.bf16.mxu0 %v8362_v23  ;;  %v7562_v55 = vld [vmem:[%s8090_s5 + $0x1070] ss:$20 sps:$4 sm:$0xff]   ;;  %v7568_v40 = vld [vmem:[%s8090_s5 + $0x1048] ss:$20 sps:$4 sm:$0xff]  }
 0x237   : > { %5222 = vmatpush1.bf16.msra.mxu1 %v7508_v52  ;;  %v4960_v62 = vpop.f32.mrf.mxu0  ;;  %5254 = vmatprep.subr.bf16.mxu0 %v7519_v58  ;;  %v7567_v52 = vld [vmem:[%s8090_s5 + $0x13bc] ss:$20 sps:$4 sm:$0xff]   ;;  %v7573_v58 = vld [vmem:[%s8090_s5 + $0x1394] ss:$20 sps:$4 sm:$0xff]  }
 0x238   : > { %5223 = vmatprep.subr.bf16.mxu1 %v7516_v57  ;;  %v5694_v3 = vmax.f32 %v4959_v60, 0.0  ;;  %v4961_v5 = vadd.f32 %v4960_v62, %v4920_v50  ;;  %v7570_v57 = vld [vmem:[%s8090_s5 + $0x104c] ss:$20 sps:$4 sm:$0xff]   ;;  %v7571_v59 = vld [vmem:[%s8090_s5 + $0x1390] ss:$20 sps:$4 sm:$0xff]  }
 0x239   : > { %v4962_v8 = vpop.f32.mrf.mxu0  ;;  %v7576_v50 = vld [vmem:[%s8090_s5 + $0x136c] ss:$20 sps:$4 sm:$0xff]   ;;  %v7582_v62 = vld [vmem:[%s8090_s5 + $0x1344] ss:$20 sps:$4 sm:$0xff]  }
 0x23a   : > { %5699 = vst [vmem:[%s8703_s17] sm:$0xff] %v5694_v3  ;;  %v5695_v19 = vmax.f32 %v4961_v5, 0.0  ;;  %5255 = vmatpush1.bf16.msra.mxu0 %v7517_v53  ;;  %v7579_v60 = vld [vmem:[%s8090_s5 + $0x14ac] ss:$20 sps:$4 sm:$0xff]   ;;  %v7577_v53 = vld [vmem:[%s8090_s5 + $0x14a8] ss:$20 sps:$4 sm:$0xff]  }
 0x23b   : > { %5224 = vmatpush1.bf16.msra.mxu1 %v7514_v61  ;;  %v4963_v28 = vpop.f32.mrf.mxu0  ;;  %5256 = vmatprep.subr.bf16.mxu0 %v7525_v2  ;;  %v7574_v61 = vld [vmem:[%s8090_s5 + $0x1368] ss:$20 sps:$4 sm:$0xff]   ;;  %v7580_v3 = vld [vmem:[%s8090_s5 + $0x1340] ss:$20 sps:$4 sm:$0xff]  }
 0x23c   : > { %5225 = vmatprep.subr.bf16.mxu1 %v7522_v1  ;;  %5700 = vst [vmem:[%s8703_s17 + $0x8] sm:$0xff] %v5695_v19  ;;  %v7585_v1 = vld [vmem:[%s8090_s5 + $0x1484] ss:$20 sps:$4 sm:$0xff]   ;;  %v7583_v5 = vld [vmem:[%s8090_s5 + $0x1480] ss:$20 sps:$4 sm:$0xff]  }
 0x23d   : > { %v7588_v8 = vld [vmem:[%s8090_s5 + $0x131c] ss:$20 sps:$4 sm:$0xff]   ;;  %v7586_v28 = vld [vmem:[%s8090_s5 + $0x1318] ss:$20 sps:$4 sm:$0xff]  }
 0x23e   : > { %5257 = vmatpush1.bf16.msra.mxu0 %v7523_v9  ;;  %v7591_v19 = vld [vmem:[%s8090_s5 + $0x145c] ss:$20 sps:$4 sm:$0xff]  }
 0x23f   : > { %5226 = vmatpush1.bf16.msra.mxu1 %v7520_v39  ;;  %5258 = vmatprep.subr.bf16.mxu0 %v7531_v11  ;;  %v7594_v11 = vld [vmem:[%s8090_s5 + $0x12f4] ss:$20 sps:$4 sm:$0xff]  }
 0x240   : > { %5227 = vmatprep.subr.bf16.mxu1 %v7528_v10  ;;  %v7589_v10 = vld [vmem:[%s8090_s5 + $0x1458] ss:$20 sps:$4 sm:$0xff]  }
 0x242   : > { %5259 = vmatpush1.bf16.msra.mxu0 %v7529_v13 }
 0x243   : > { %5228 = vmatpush2.bf16.msra.mxu1 %v7526_v12  ;;  %5260 = vmatprep.subr.bf16.mxu0 %v7537_v15  ;;  %v7597_v12 = vld [vmem:[%s8090_s5 + $0x1434] ss:$20 sps:$4 sm:$0xff]   ;;  %v7600_v15 = vld [vmem:[%s8090_s5 + $0x12cc] ss:$20 sps:$4 sm:$0xff]  }
 0x244   : > { %5229 = vmatprep.subr.bf16.mxu1 %v7534_v14  ;;  %v7592_v14 = vld [vmem:[%s8090_s5 + $0x12f0] ss:$20 sps:$4 sm:$0xff]  }
 0x246   : > { %5261 = vmatpush1.bf16.msra.mxu0 %v7535_v21  ;;  %v1060_v21 = vsub.s32 2, %v8424_v54 }
 0x247   : > { %5230 = vmatpush2.bf16.msra.mxu1 %v7532_v18  ;;  %5262 = vmatprep.subr.bf16.mxu0 %v7543_v27  ;;  %v7603_v18 = vld [vmem:[%s8090_s5 + $0x140c] ss:$20 sps:$4 sm:$0xff]   ;;  %v7598_v27 = vld [vmem:[%s8090_s5 + $0x12c8] ss:$20 sps:$4 sm:$0xff]  }
 0x248   : > { %5231 = vmatprep.subr.bf16.mxu1 %v7540_v26  ;;  %v1064_v26 = vsub.s32 3, %v8424_v54 }
 0x24a   : > { %5263 = vmatpush1.bf16.msra.mxu0 %v7541_v30  ;;  %v7604_v30 = vld [vmem:[%s8090_s5 + $0x268] ss:$20 sps:$4 sm:$0xff]  }
 0x24b   : > { %5232 = vmatpush2.bf16.msra.mxu1 %v7538_v29  ;;  %5264 = vmatprep.subr.bf16.mxu0 %v7549_v32  ;;  %v7601_v29 = vld [vmem:[%s8090_s5 + $0x1408] ss:$20 sps:$4 sm:$0xff]   ;;  %v8768_v32 = vld [vmem:[%s8429_s28] sm:$0x1f] }
 0x24c   : > { %5233 = vmatprep.subr.bf16.mxu1 %v7546_v31  ;;  %v7606_v31 = vld [vmem:[%s8090_s5 + $0x4e8] ss:$20 sps:$4 sm:$0xff]  }
 0x24e   : > { %5265 = vmatpush1.bf16.msra.mxu0 %v7547_v34  ;;  %v1065_v34 = vrot.slane %v8768_v32, %v1064_v26  ;;  %v7637_v26 = vld [vmem:[%s8090_s5 + $0x628] ss:$20 sps:$4 sm:$0xff]  }
 0x24f   : > { %5234 = vmatpush2.bf16.msra.mxu1 %v7544_v33  ;;  %5266 = vmatprep.subr.bf16.mxu0 %v7555_v42  ;;  %v1061_v33 = vrot.slane %v8768_v32, %v1060_v21  ;;  %v7607_v42 = vld [vmem:[%s8090_s5 + $0x3a8] ss:$20 sps:$4 sm:$0xff]  }
 0x250   : > { %5235 = vmatprep.subr.bf16.mxu1 %v7552_v41  ;;  %v7605_v41 = vld [vmem:[%s8090_s5 + $0x128] ss:$20 sps:$4 sm:$0xff]  }
 0x251   : > { %v7638_v21 = vld [vmem:[%s8090_s5 + $0x9e8] ss:$20 sps:$4 sm:$0xff]  }
 0x252   : > { %5267 = vmatpush1.bf16.msra.mxu0 %v7553_v44  ;;  %v7610_v44 = vld [vmem:[%s8090_s5 + $0x4c0] ss:$20 sps:$4 sm:$0xff]  }
 0x253   : > { %5236 = vmatpush2.bf16.msra.mxu1 %v7550_v22  ;;  %5268 = vmatprep.subr.bf16.mxu0 %v7561_v46  ;;  %v7608_v22 = vld [vmem:[%s8090_s5 + $0x240] ss:$20 sps:$4 sm:$0xff]  }
 0x254   : > { %5237 = vmatprep.subr.bf16.mxu1 %v7558_v45 }
 0x256   : > { %5269 = vmatpush2.bf16.msra.mxu0 %v7559_v49 }
 0x257   : > { %5238 = vmatpush2.bf16.msra.mxu1 %v7556_v48  ;;  %5270 = vmatprep.subr.bf16.mxu0 %v7567_v52  ;;  %v8777_v48 = vld [vmem:[#allocation2 + $0x40] ss:$0 sps:$4 sm:$0xff]  }
 0x258   : > { %5239 = vmatprep.subr.bf16.mxu1 %v7564_v4  ;;  %v7609_v52 = vld [vmem:[%s8090_s5 + $0x100] ss:$20 sps:$4 sm:$0xff]  }
 0x25a   : > { %5271 = vmatpush2.bf16.msra.mxu0 %v7565_v56 }
 0x25b   : > { %5240 = vmatpush2.bf16.msra.mxu1 %v7562_v55  ;;  %5272 = vmatprep.subr.bf16.mxu0 %v7573_v58  ;;  %v7611_v55 = vld [vmem:[%s8090_s5 + $0x380] ss:$20 sps:$4 sm:$0xff]   ;;  %v7614_v58 = vld [vmem:[%s8090_s5 + $0x498] ss:$20 sps:$4 sm:$0xff]  }
 0x25c   : > { %5241 = vmatprep.subr.bf16.mxu1 %v7570_v57  ;;  %v7612_v57 = vld [vmem:[%s8090_s5 + $0x218] ss:$20 sps:$4 sm:$0xff]  }
 0x25e   : > { %5273 = vmatpush2.bf16.msra.mxu0 %v7571_v59 }
 0x25f   : > { %5242 = vmatpush2.bf16.msra.mxu1 %v7568_v40  ;;  %5274 = vmatprep.subr.bf16.mxu0 %v7576_v50  ;;  %v7613_v50 = vld [vmem:[%s8090_s5 + $0xd8] ss:$20 sps:$4 sm:$0xff]  }
 0x260   : > { %5299 = vmatprep.subr.bf16.mxu1 %v7579_v60  ;;  %v7615_v60 = vld [vmem:[%s8090_s5 + $0x358] ss:$20 sps:$4 sm:$0xff]  }
 0x262   : > { %5244 = vmatmul.mubr.bf16.vlgmr.msra.gmra.mxu1 %v8438_v63  ;;  %v4999_v2 = vpop.f32.mrf.mxu1  ;;  %5275 = vmatpush2.bf16.msra.mxu0 %v7574_v61 }
 0x263   : > { %5300 = vmatpush1.bf16.msra.mxu1 %v7577_v53  ;;  %5276 = vmatprep.subr.bf16.mxu0 %v7582_v62  ;;  %v5000_v45 = vadd.f32 %v4999_v2, %v1061_v33  ;;  %v7616_v53 = vld [vmem:[%s8090_s5 + $0x1f0] ss:$20 sps:$4 sm:$0xff]   ;;  %v7622_v2 = vld [vmem:[%s8090_s5 + $0x448] ss:$20 sps:$4 sm:$0xff]   ;;  %v7643_v33 = vld [vmem:[%s8090_s5 + $0x880] ss:$20 sps:$4 sm:$0xff]  }
 0x264   : > { %5301 = vmatprep.subr.bf16.mxu1 %v7585_v1  ;;  %v5001_v39 = vpop.f32.mrf.mxu1  ;;  %5325 = vmatprep.mubr.bf16.mxu1 %v7897_v20  ;;  %v7595_v20 = vld [vmem:[%s8090_s5 + $0x1430] ss:$20 sps:$4 sm:$0xff]   ;;  %v7620_v1 = vld [vmem:[%s8090_s5 + $0x1c8] ss:$20 sps:$4 sm:$0xff]  }
 0x265   : > { %v5002_v49 = vadd.f32 %v5001_v39, %v1065_v34  ;;  %v7618_v62 = vld [vmem:[%s8090_s5 + $0x470] ss:$20 sps:$4 sm:$0xff]   ;;  %v7625_v39 = vld [vmem:[%s8090_s5 + $0x60] ss:$20 sps:$4 sm:$0xff]   ;;  %v7644_v34 = vld [vmem:[%s8090_s5 + $0x718] ss:$20 sps:$4 sm:$0xff]  }
 0x266   : > { %v5003_v9 = vpop.f32.mrf.mxu1  ;;  %5277 = vmatpush2.bf16.msra.mxu0 %v7580_v3  ;;  %v7621_v3 = vld [vmem:[%s8090_s5 + $0x88] ss:$20 sps:$4 sm:$0xff]  }
 0x267   : > { %5302 = vmatpush1.bf16.msra.mxu1 %v7583_v5  ;;  %5278 = vmatprep.subr.bf16.mxu0 %v7588_v8  ;;  %v7623_v5 = vld [vmem:[%s8090_s5 + $0x308] ss:$20 sps:$4 sm:$0xff]   ;;  %v7624_v8 = vld [vmem:[%s8090_s5 + $0x1a0] ss:$20 sps:$4 sm:$0xff]  }
 0x268   : > { %5303 = vmatprep.subr.bf16.mxu1 %v7591_v19  ;;  %v5004_v13 = vpop.f32.mrf.mxu1  ;;  %v7626_v19 = vld [vmem:[%s8090_s5 + $0x420] ss:$20 sps:$4 sm:$0xff]  }
 0x269   : > { %v7627_v9 = vld [vmem:[%s8090_s5 + $0x2e0] ss:$20 sps:$4 sm:$0xff]   ;;  %v7632_v13 = vld [vmem:[%s8090_s5 + $0x150] ss:$20 sps:$4 sm:$0xff]  }
 0x26a   : > { %5279 = vmatpush2.bf16.msra.mxu0 %v7586_v28  ;;  %v7628_v28 = vld [vmem:[%s8090_s5 + $0x178] ss:$20 sps:$4 sm:$0xff]  }
 0x26b   : > { %5304 = vmatpush1.bf16.msra.mxu1 %v7589_v10  ;;  %5280 = vmatprep.subr.bf16.mxu0 %v7594_v11  ;;  %v7630_v10 = vld [vmem:[%s8090_s5 + $0x3f8] ss:$20 sps:$4 sm:$0xff]  }
 0x26c   : > { %5305 = vmatprep.subr.bf16.mxu1 %v7597_v12  ;;  %v7629_v11 = vld [vmem:[%s8090_s5 + $0x38] ss:$20 sps:$4 sm:$0xff]  }
 0x26d   : > { %v7631_v12 = vld [vmem:[%s8090_s5 + $0x2b8] ss:$20 sps:$4 sm:$0xff]  }
 0x26e   : > { %5281 = vmatpush2.bf16.msra.mxu0 %v7592_v14  ;;  %v7634_v14 = vld [vmem:[%s8090_s5 + $0x3d0] ss:$20 sps:$4 sm:$0xff]  }
 0x26f   : > { %5306 = vmatpush1.bf16.msra.mxu1 %v7595_v20  ;;  %5282 = vmatprep.subr.bf16.mxu0 %v7600_v15  ;;  %v7633_v20 = vld [vmem:[%s8090_s5 + $0x10] ss:$20 sps:$4 sm:$0xff]  }
 0x270   : > { %5307 = vmatprep.subr.bf16.mxu1 %v7603_v18  ;;  %v7635_v15 = vld [vmem:[%s8090_s5 + $0x290] ss:$20 sps:$4 sm:$0xff]   ;;  %v7636_v18 = vld [vmem:[%s8090_s5 + $0x768] ss:$20 sps:$4 sm:$0xff]  }
 0x272   : > { %5283 = vmatpush2.bf16.msra.mxu0 %v7598_v27  ;;  %v7639_v27 = vld [vmem:[%s8090_s5 + $0x8a8] ss:$20 sps:$4 sm:$0xff]  }
 0x273   : > { %5308 = vmatpush1.bf16.msra.mxu1 %v7601_v29  ;;  %6520 = vmatprep.subr.bf16.mxu0 %v7604_v30  ;;  %v7640_v29 = vld [vmem:[%s8090_s5 + $0x740] ss:$20 sps:$4 sm:$0xff]  }
 0x274   : > { %6542 = vmatprep.subr.bf16.mxu1 %v7606_v31  ;;  %v7642_v30 = vld [vmem:[%s8090_s5 + $0x9c0] ss:$20 sps:$4 sm:$0xff]  }
 0x275   : > { %v5040_v46 = vpop.f32.mrf.mxu0  ;;  %5285 = vmatmul.mubr.bf16.vlgmr.msra.gmra.mxu0 %v8442_v0  ;;  %v7641_v31 = vld [vmem:[%s8090_s5 + $0x600] ss:$20 sps:$4 sm:$0xff]  }
 0x276   : > { %6512 = vmatmul.mubr.msk.bf16.vlgmr.msra.gmra.mxu1 %vm4592_vm0, %v8777_v48  ;;  %v8781_v4 = vadd.f32 %v5040_v46, %v5000_v45  ;;  %6521 = vmatpush3.bf16.msra.mxu0 %v7605_v41  ;;  %v7646_v41 = vld [vmem:[%s8090_s5 + $0x998] ss:$20 sps:$4 sm:$0xff]   ;;  %v7654_v45 = vld [vmem:[%s8090_s5 + $0x948] ss:$20 sps:$4 sm:$0xff]  }
 0x277   : > { %6543 = vmatpush3.bf16.msra.mxu1 %v7607_v42  ;;  %v5042_v56 = vpop.f32.mrf.mxu0  ;;  %6522 = vmatprep.subr.bf16.mxu0 %v7608_v22  ;;  %v7648_v42 = vld [vmem:[%s8090_s5 + $0x6f0] ss:$20 sps:$4 sm:$0xff]  }
 0x278   : > { %6544 = vmatprep.subr.bf16.mxu1 %v7610_v44  ;;  %v8787_v40 = vadd.f32 %v5042_v56, %v5002_v49  ;;  %5366 = vmatprep.mubr.bf16.mxu0 %v8142_v47  ;;  %v7617_v47 = vld [vmem:[%s8090_s5 + $0xb0] ss:$20 sps:$4 sm:$0xff]  }
 0x279   : > { %5406 = vmatprep.mubr.bf16.mxu1 %v8146_v51  ;;  %v5044_v59 = vpop.f32.mrf.mxu0  ;;  %v7619_v51 = vld [vmem:[%s8090_s5 + $0x330] ss:$20 sps:$4 sm:$0xff]  }
 0x27a   : > { %6523 = vmatpush3.bf16.msra.mxu0 %v7609_v52  ;;  %v7650_v22 = vld [vmem:[%s8090_s5 + $0x970] ss:$20 sps:$4 sm:$0xff]   ;;  %v7653_v52 = vld [vmem:[%s8090_s5 + $0x588] ss:$20 sps:$4 sm:$0xff]  }
 0x27b   : > { %6545 = vmatpush3.bf16.msra.mxu1 %v7611_v55  ;;  %v5045_v61 = vpop.f32.mrf.mxu0  ;;  %6524 = vmatprep.subr.bf16.mxu0 %v7612_v57  ;;  %v7649_v44 = vld [vmem:[%s8090_s5 + $0x5b0] ss:$20 sps:$4 sm:$0xff]   ;;  %v7655_v55 = vld [vmem:[%s8090_s5 + $0x808] ss:$20 sps:$4 sm:$0xff]   ;;  %v7656_v57 = vld [vmem:[%s8090_s5 + $0x6a0] ss:$20 sps:$4 sm:$0xff]  }
 0x27c   : > { %6546 = vmatprep.subr.bf16.mxu1 %v7614_v58  ;;  %v7658_v58 = vld [vmem:[%s8090_s5 + $0x920] ss:$20 sps:$4 sm:$0xff]   ;;  %v7660_v61 = vld [vmem:[%s8090_s5 + $0x678] ss:$20 sps:$4 sm:$0xff]  }
 0x27e   : > { %6525 = vmatpush3.bf16.msra.mxu0 %v7613_v50 }
 0x27f   : > { %6547 = vmatpush3.bf16.msra.mxu1 %v7615_v60  ;;  %6526 = vmatprep.subr.bf16.mxu0 %v7616_v53  ;;  %v7659_v60 = vld [vmem:[%s8090_s5 + $0x7e0] ss:$20 sps:$4 sm:$0xff]   ;;  %v7662_v53 = vld [vmem:[%s8090_s5 + $0x8f8] ss:$20 sps:$4 sm:$0xff]  }
 0x280   : > { %6548 = vmatprep.subr.bf16.mxu1 %v7618_v62 }
 0x282   : > { %6527 = vmatpush3.bf16.msra.mxu0 %v7617_v47  ;;  %v7661_v47 = vld [vmem:[%s8090_s5 + $0x538] ss:$20 sps:$4 sm:$0xff]  }
 0x283   : > { %6549 = vmatpush3.bf16.msra.mxu1 %v7619_v51  ;;  %6528 = vmatprep.subr.bf16.mxu0 %v7620_v1  ;;  %v7664_v51 = vld [vmem:[%s8090_s5 + $0x650] ss:$20 sps:$4 sm:$0xff]  }
 0x284   : > { %6550 = vmatprep.subr.bf16.mxu1 %v7622_v2  ;;  %v7666_v1 = vld [vmem:[%s8090_s5 + $0x8d0] ss:$20 sps:$4 sm:$0xff]  }
 0x285   : > { %v7665_v2 = vld [vmem:[%s8090_s5 + $0x510] ss:$20 sps:$4 sm:$0xff]  }
 0x286   : > { %6529 = vmatpush3.bf16.msra.mxu0 %v7621_v3  ;;  %v7667_v3 = vld [vmem:[%s8090_s5 + $0x790] ss:$20 sps:$4 sm:$0xff]  }
 0x287   : > { %6551 = vmatpush3.bf16.msra.mxu1 %v7623_v5  ;;  %6530 = vmatprep.subr.bf16.mxu0 %v7624_v8  ;;  %v7668_v5 = vld [vmem:[%s8090_s5 + $0xc68] ss:$20 sps:$4 sm:$0xff]  }
 0x288   : > { %6552 = vmatprep.subr.bf16.mxu1 %v7626_v19  ;;  %v7670_v8 = vld [vmem:[%s8090_s5 + $0xee8] ss:$20 sps:$4 sm:$0xff]  }
 0x289   : > { %v7669_v19 = vld [vmem:[%s8090_s5 + $0xb28] ss:$20 sps:$4 sm:$0xff]  }
 0x28a   : > { %6531 = vmatpush3.bf16.msra.mxu0 %v7625_v39  ;;  %v7671_v39 = vld [vmem:[%s8090_s5 + $0xda8] ss:$20 sps:$4 sm:$0xff]  }
 0x28b   : > { %6553 = vmatpush3.bf16.msra.mxu1 %v7627_v9  ;;  %6532 = vmatprep.subr.bf16.mxu0 %v7628_v28  ;;  %v7672_v9 = vld [vmem:[%s8090_s5 + $0xc40] ss:$20 sps:$4 sm:$0xff]  }
 0x28c   : > { %6554 = vmatprep.subr.bf16.mxu1 %v7630_v10  ;;  %v7674_v28 = vld [vmem:[%s8090_s5 + $0xec0] ss:$20 sps:$4 sm:$0xff]  }
 0x28e   : > { %6533 = vmatpush3.bf16.msra.mxu0 %v7629_v11 }
 0x28f   : > { %6555 = vmatpush3.bf16.msra.mxu1 %v7631_v12  ;;  %6534 = vmatprep.subr.bf16.mxu0 %v7632_v13  ;;  %v7673_v12 = vld [vmem:[%s8090_s5 + $0xb00] ss:$20 sps:$4 sm:$0xff]  }
 0x290   : > { %6556 = vmatprep.subr.bf16.mxu1 %v7634_v14  ;;  %v7675_v13 = vld [vmem:[%s8090_s5 + $0xd80] ss:$20 sps:$4 sm:$0xff]  }
 0x292   : > { %6535 = vmatpush3.bf16.msra.mxu0 %v7633_v20  ;;  %v7676_v20 = vld [vmem:[%s8090_s5 + $0xc18] ss:$20 sps:$4 sm:$0xff]  }
 0x293   : > { %6557 = vmatpush3.bf16.msra.mxu1 %v7635_v15  ;;  %6564 = vmatprep.subr.bf16.mxu0 %v7636_v18  ;;  %v7678_v15 = vld [vmem:[%s8090_s5 + $0xe98] ss:$20 sps:$4 sm:$0xff]  }
 0x294   : > { %6586 = vmatprep.subr.bf16.mxu1 %v7638_v21  ;;  %v7679_v21 = vld [vmem:[%s8090_s5 + $0xd58] ss:$20 sps:$4 sm:$0xff]  }
 0x295   : > { %5367 = vmatmul.mubr.bf16.vlgmr.msra.gmra.mxu0 %v8168_v6  ;;  %v7645_v6 = vld [vmem:[%s8090_s5 + $0x5d8] ss:$20 sps:$4 sm:$0xff]  }
 0x296   : > { %5407 = vmatmul.mubr.bf16.vlgmr.msra.gmra.mxu1 %v8170_v7  ;;  %6565 = vmatpush3.bf16.msra.mxu0 %v7637_v26  ;;  %v7647_v7 = vld [vmem:[%s8090_s5 + $0x858] ss:$20 sps:$4 sm:$0xff]  }
 0x297   : > { %6587 = vmatpush3.bf16.msra.mxu1 %v7639_v27  ;;  %6566 = vmatprep.subr.bf16.mxu0 %v7640_v29  ;;  %v7680_v27 = vld [vmem:[%s8090_s5 + $0xbf0] ss:$20 sps:$4 sm:$0xff]  }
 0x298   : > { %6588 = vmatprep.subr.bf16.mxu1 %v7642_v30  ;;  %5446 = vmatprep.mubr.bf16.mxu0 %v8206_v36  ;;  %v7651_v36 = vld [vmem:[%s8090_s5 + $0x830] ss:$20 sps:$4 sm:$0xff]   ;;  %v7684_v30 = vld [vmem:[%s8090_s5 + $0xbc8] ss:$20 sps:$4 sm:$0xff]  }
 0x299   : > { %5486 = vmatprep.mubr.bf16.mxu1 %v8210_v37  ;;  %v7652_v37 = vld [vmem:[%s8090_s5 + $0x6c8] ss:$20 sps:$4 sm:$0xff]   ;;  %v7682_v29 = vld [vmem:[%s8090_s5 + $0xe70] ss:$20 sps:$4 sm:$0xff]  }
 0x29a   : > { %6567 = vmatpush3.bf16.msra.mxu0 %v7641_v31  ;;  %v7686_v31 = vld [vmem:[%s8090_s5 + $0xe48] ss:$20 sps:$4 sm:$0xff]  }
 0x29b   : > { %6589 = vmatpush3.bf16.msra.mxu1 %v7643_v33  ;;  %6568 = vmatprep.subr.bf16.mxu0 %v7644_v34  ;;  %v7685_v33 = vld [vmem:[%s8090_s5 + $0xa88] ss:$20 sps:$4 sm:$0xff]  }
 0x29c   : > { %6590 = vmatprep.subr.bf16.mxu1 %v7646_v41  ;;  %v7687_v34 = vld [vmem:[%s8090_s5 + $0xd08] ss:$20 sps:$4 sm:$0xff]   ;;  %v7688_v41 = vld [vmem:[%s8090_s5 + $0xba0] ss:$20 sps:$4 sm:$0xff]  }
 0x29e   : > { %6569 = vmatpush3.bf16.msra.mxu0 %v7645_v6  ;;  %v7690_v6 = vld [vmem:[%s8090_s5 + $0xe20] ss:$20 sps:$4 sm:$0xff]  }
 0x29f   : > { %6591 = vmatpush3.bf16.msra.mxu1 %v7647_v7  ;;  %6570 = vmatprep.subr.bf16.mxu0 %v7648_v42  ;;  %v7689_v7 = vld [vmem:[%s8090_s5 + $0xa60] ss:$20 sps:$4 sm:$0xff]  }
 0x2a0   : > { %6592 = vmatprep.subr.bf16.mxu1 %v7650_v22  ;;  %v7691_v42 = vld [vmem:[%s8090_s5 + $0xce0] ss:$20 sps:$4 sm:$0xff]   ;;  %v7692_v22 = vld [vmem:[%s8090_s5 + $0xb78] ss:$20 sps:$4 sm:$0xff]  }
 0x2a2   : > { %v5081_v46 = vpop.f32.mrf.mxu1  ;;  %6571 = vmatpush3.bf16.msra.mxu0 %v7649_v44  ;;  %v7694_v44 = vld [vmem:[%s8090_s5 + $0xdf8] ss:$20 sps:$4 sm:$0xff]  }
 0x2a3   : > { %v5082_v49 = vadd.f32 %v5081_v46, %v8781_v4  ;;  %6593 = vmatpush3.bf16.msra.mxu1 %v7651_v36  ;;  %6572 = vmatprep.subr.bf16.mxu0 %v7652_v37  ;;  %v7657_v4 = vld [vmem:[%s8090_s5 + $0x560] ss:$20 sps:$4 sm:$0xff]   ;;  %v7693_v36 = vld [vmem:[%s8090_s5 + $0xa38] ss:$20 sps:$4 sm:$0xff]   ;;  %v7698_v46 = vld [vmem:[%s8090_s5 + $0xdd0] ss:$20 sps:$4 sm:$0xff]  }
 0x2a4   : > { %v5083_v56 = vpop.f32.mrf.mxu1  ;;  %6594 = vmatprep.subr.bf16.mxu1 %v7654_v45  ;;  %v7695_v37 = vld [vmem:[%s8090_s5 + $0xcb8] ss:$20 sps:$4 sm:$0xff]   ;;  %v7696_v45 = vld [vmem:[%s8090_s5 + $0xb50] ss:$20 sps:$4 sm:$0xff]  }
 0x2a5   : > { %v5084_v59 = vadd.f32 %v5083_v56, %v8787_v40  ;;  %v7663_v40 = vld [vmem:[%s8090_s5 + $0x7b8] ss:$20 sps:$4 sm:$0xff]   ;;  %v7702_v56 = vld [vmem:[%s8090_s5 + $0x13e8] ss:$20 sps:$4 sm:$0xff]  }
 0x2a6   : > { %v5085_v50 = vpop.f32.mrf.mxu1  ;;  %6573 = vmatpush3.bf16.msra.mxu0 %v7653_v52  ;;  %v7699_v52 = vld [vmem:[%s8090_s5 + $0xc90] ss:$20 sps:$4 sm:$0xff]  }
 0x2a7   : > { %6595 = vmatpush3.bf16.msra.mxu1 %v7655_v55  ;;  %6574 = vmatprep.subr.bf16.mxu0 %v7656_v57  ;;  %v7700_v55 = vld [vmem:[%s8090_s5 + $0x1168] ss:$20 sps:$4 sm:$0xff]   ;;  %v7706_v50 = vld [vmem:[%s8090_s5 + $0x13c0] ss:$20 sps:$4 sm:$0xff]  }
 0x2a8   : > { %6596 = vmatprep.subr.bf16.mxu1 %v7658_v58  ;;  %v5086_v62 = vpop.f32.mrf.mxu1  ;;  %v7701_v57 = vld [vmem:[%s8090_s5 + $0x1028] ss:$20 sps:$4 sm:$0xff]  }
 0x2a9   : > { %v7703_v58 = vld [vmem:[%s8090_s5 + $0x12a8] ss:$20 sps:$4 sm:$0xff]   ;;  %v7712_v62 = vld [vmem:[%s8090_s5 + $0x10f0] ss:$20 sps:$4 sm:$0xff]  }
 0x2aa   : > { %6575 = vmatpush3.bf16.msra.mxu0 %v7657_v4  ;;  %v7705_v4 = vld [vmem:[%s8090_s5 + $0x1000] ss:$20 sps:$4 sm:$0xff]  }
 0x2ab   : > { %6597 = vmatpush3.bf16.msra.mxu1 %v7659_v60  ;;  %6576 = vmatprep.subr.bf16.mxu0 %v7660_v61  ;;  %v7707_v60 = vld [vmem:[%s8090_s5 + $0x1280] ss:$20 sps:$4 sm:$0xff]   ;;  %v7708_v61 = vld [vmem:[%s8090_s5 + $0x1118] ss:$20 sps:$4 sm:$0xff]  }
 0x2ac   : > { %6598 = vmatprep.subr.bf16.mxu1 %v7662_v53  ;;  %v7710_v53 = vld [vmem:[%s8090_s5 + $0x1398] ss:$20 sps:$4 sm:$0xff]  }
 0x2ae   : > { %6577 = vmatpush3.bf16.msra.mxu0 %v7661_v47  ;;  %v7714_v47 = vld [vmem:[%s8090_s5 + $0x1370] ss:$20 sps:$4 sm:$0xff]  }
 0x2af   : > { %6599 = vmatpush3.bf16.msra.mxu1 %v7663_v40  ;;  %6578 = vmatprep.subr.bf16.mxu0 %v7664_v51  ;;  %v7713_v40 = vld [vmem:[%s8090_s5 + $0xfb0] ss:$20 sps:$4 sm:$0xff]   ;;  %v7718_v51 = vld [vmem:[%s8090_s5 + $0x1348] ss:$20 sps:$4 sm:$0xff]  }
 0x2b0   : > { %6600 = vmatprep.subr.bf16.mxu1 %v7666_v1 }
 0x2b2   : > { %6579 = vmatpush3.bf16.msra.mxu0 %v7665_v2 }
 0x2b3   : > { %6601 = vmatpush3.bf16.msra.mxu1 %v7667_v3  ;;  %6608 = vmatprep.subr.bf16.mxu0 %v7668_v5  ;;  %v7717_v3 = vld [vmem:[%s8090_s5 + $0xf88] ss:$20 sps:$4 sm:$0xff]  }
 0x2b4   : > { %6630 = vmatprep.subr.bf16.mxu1 %v7670_v8  ;;  %v7719_v5 = vld [vmem:[%s8090_s5 + $0x1208] ss:$20 sps:$4 sm:$0xff]  }
 0x2b5   : > { %v5122_v10 = vpop.f32.mrf.mxu0  ;;  %5447 = vmatmul.mubr.bf16.vlgmr.msra.gmra.mxu0 %v8254_v16 }
 0x2b6   : > { %5487 = vmatmul.mubr.bf16.vlgmr.msra.gmra.mxu1 %v8258_v17  ;;  %v8859_v11 = vadd.f32 %v5122_v10, %v5082_v49  ;;  %6609 = vmatpush3.bf16.msra.mxu0 %v7669_v19  ;;  %v7677_v17 = vld [vmem:[%s8090_s5 + $0xad8] ss:$20 sps:$4 sm:$0xff]   ;;  %v7697_v49 = vld [vmem:[%s8090_s5 + $0xa10] ss:$20 sps:$4 sm:$0xff]   ;;  %v7720_v19 = vld [vmem:[%s8090_s5 + $0x10a0] ss:$20 sps:$4 sm:$0xff]  }
 0x2b7   : > { %6631 = vmatpush3.bf16.msra.mxu1 %v7671_v39  ;;  %v5124_v14 = vpop.f32.mrf.mxu0  ;;  %6610 = vmatprep.subr.bf16.mxu0 %v7672_v9  ;;  %v7722_v39 = vld [vmem:[%s8090_s5 + $0x1320] ss:$20 sps:$4 sm:$0xff]  }
 0x2b8   : > { %6632 = vmatprep.subr.bf16.mxu1 %v7674_v28  ;;  %v8865_v18 = vadd.f32 %v5124_v14, %v5084_v59  ;;  %5526 = vmatprep.mubr.bf16.mxu0 %v8270_v24  ;;  %v7681_v24 = vld [vmem:[%s8090_s5 + $0xab0] ss:$20 sps:$4 sm:$0xff]   ;;  %v7704_v59 = vld [vmem:[%s8090_s5 + $0x1140] ss:$20 sps:$4 sm:$0xff]  }
 0x2b9   : > { %5566 = vmatprep.mubr.bf16.mxu1 %v8274_v25  ;;  %v5126_v16 = vpop.f32.mrf.mxu0  ;;  %v7683_v25 = vld [vmem:[%s8090_s5 + $0xd30] ss:$20 sps:$4 sm:$0xff]   ;;  %v7721_v10 = vld [vmem:[%s8090_s5 + $0xf60] ss:$20 sps:$4 sm:$0xff]  }
 0x2ba   : > { %6611 = vmatpush3.bf16.msra.mxu0 %v7673_v12  ;;  %v7724_v12 = vld [vmem:[%s8090_s5 + $0x1078] ss:$20 sps:$4 sm:$0xff]   ;;  %v7730_v16 = vld [vmem:[%s8090_s5 + $0x12d0] ss:$20 sps:$4 sm:$0xff]  }
 0x2bb   : > { %6633 = vmatpush3.bf16.msra.mxu1 %v7675_v13  ;;  %v5127_v26 = vpop.f32.mrf.mxu0  ;;  %6612 = vmatprep.subr.bf16.mxu0 %v7676_v20  ;;  %v7726_v13 = vld [vmem:[%s8090_s5 + $0x12f8] ss:$20 sps:$4 sm:$0xff]  }
 0x2bc   : > { %6634 = vmatprep.subr.bf16.mxu1 %v7678_v15  ;;  %v7725_v20 = vld [vmem:[%s8090_s5 + $0xf38] ss:$20 sps:$4 sm:$0xff]   ;;  %v7732_v26 = vld [vmem:[%s8090_s5 + $0x14b0] ss:$20 sps:$4 sm:$0xff]  }
 0x2bd   : > { %v7727_v15 = vld [vmem:[%s8090_s5 + $0x11b8] ss:$20 sps:$4 sm:$0xff]  }
 0x2be   : > { %6613 = vmatpush3.bf16.msra.mxu0 %v7677_v17  ;;  %v7729_v17 = vld [vmem:[%s8090_s5 + $0xf10] ss:$20 sps:$4 sm:$0xff]  }
 0x2bf   : > { %6635 = vmatpush3.bf16.msra.mxu1 %v7679_v21  ;;  %6614 = vmatprep.subr.bf16.mxu0 %v7680_v27  ;;  %v7731_v21 = vld [vmem:[%s8090_s5 + $0x1190] ss:$20 sps:$4 sm:$0xff]   ;;  %v7898_v27 = vmov 0.0  }
 0x2c0   : > { %6636 = vmatprep.subr.bf16.mxu1 %v7682_v29 }
 0x2c2   : > { %6615 = vmatpush3.bf16.msra.mxu0 %v7681_v24  ;;  %v7733_v24 = vld [vmem:[%s8090_s5 + $0x1488] ss:$20 sps:$4 sm:$0xff]  }
 0x2c3   : > { %6637 = vmatpush3.bf16.msra.mxu1 %v7683_v25  ;;  %6616 = vmatprep.subr.bf16.mxu0 %v7684_v30 }
 0x2c4   : > { %6638 = vmatprep.subr.bf16.mxu1 %v7686_v31  ;;  %v7734_v31 = vld [vmem:[%s8090_s5 + $0x1460] ss:$20 sps:$4 sm:$0xff]  }
 0x2c6   : > { %6617 = vmatpush3.bf16.msra.mxu0 %v7685_v33 }
 0x2c7   : > { %6639 = vmatpush3.bf16.msra.mxu1 %v7687_v34  ;;  %6618 = vmatprep.subr.bf16.mxu0 %v7688_v41  ;;  %v7735_v34 = vld [vmem:[%s8090_s5 + $0x1438] ss:$20 sps:$4 sm:$0xff]   ;;  %v7736_v41 = vld [vmem:[%s8090_s5 + $0x1410] ss:$20 sps:$4 sm:$0xff]  }
 0x2c8   : > { %6640 = vmatprep.subr.bf16.mxu1 %v7690_v6 }
 0x2ca   : > { %6619 = vmatpush3.bf16.msra.mxu0 %v7689_v7 }
 0x2cb   : > { %6641 = vmatpush3.bf16.msra.mxu1 %v7691_v42  ;;  %6620 = vmatprep.subr.bf16.mxu0 %v7692_v22 }
 0x2cc   : > { %6642 = vmatprep.subr.bf16.mxu1 %v7694_v44 }
 0x2ce   : > { %6621 = vmatpush3.bf16.msra.mxu0 %v7693_v36 }
 0x2cf   : > { %6643 = vmatpush3.bf16.msra.mxu1 %v7695_v37  ;;  %6622 = vmatprep.subr.bf16.mxu0 %v7696_v45 }
 0x2d0   : > { %6644 = vmatprep.subr.bf16.mxu1 %v7698_v46 }
 0x2d2   : > { %6623 = vmatpush3.bf16.msra.mxu0 %v7697_v49 }
 0x2d3   : > { %6645 = vmatpush3.bf16.msra.mxu1 %v7699_v52  ;;  %6652 = vmatprep.subr.bf16.mxu0 %v7700_v55 }
 0x2d4   : > { %6674 = vmatprep.subr.bf16.mxu1 %v7702_v56 }
 0x2d5   : > { %5527 = vmatmul.mubr.bf16.vlgmr.msra.gmra.mxu0 %v8343_v35  ;;  %v7709_v35 = vld [vmem:[%s8090_s5 + $0xfd8] ss:$20 sps:$4 sm:$0xff]  }
 0x2d6   : > { %5567 = vmatmul.mubr.bf16.vlgmr.msra.gmra.mxu1 %v8347_v38  ;;  %6653 = vmatpush3.bf16.msra.mxu0 %v7701_v57  ;;  %v7711_v38 = vld [vmem:[%s8090_s5 + $0x1258] ss:$20 sps:$4 sm:$0xff]  }
 0x2d7   : > { %6675 = vmatpush3.bf16.msra.mxu1 %v7703_v58  ;;  %6654 = vmatprep.subr.bf16.mxu0 %v7704_v59 }
 0x2d8   : > { %6676 = vmatprep.subr.bf16.mxu1 %v7706_v50  ;;  %5606 = vmatprep.mubr.bf16.mxu0 %v8358_v43  ;;  %v7715_v43 = vld [vmem:[%s8090_s5 + $0x1230] ss:$20 sps:$4 sm:$0xff]  }
 0x2d9   : > { %5646 = vmatprep.mubr.bf16.mxu1 %v8362_v23  ;;  %v7716_v23 = vld [vmem:[%s8090_s5 + $0x10c8] ss:$20 sps:$4 sm:$0xff]  }
 0x2da   : > { %6655 = vmatpush3.bf16.msra.mxu0 %v7705_v4 }
 0x2db   : > { %6677 = vmatpush3.bf16.msra.mxu1 %v7707_v60  ;;  %6656 = vmatprep.subr.bf16.mxu0 %v7708_v61  ;;  %v1068_v61 = vsub.s32 4, %v8424_v54 }
 0x2dc   : > { %6678 = vmatprep.subr.bf16.mxu1 %v7710_v53 }
 0x2de   : > { %6657 = vmatpush3.bf16.msra.mxu0 %v7709_v35 }
 0x2df   : > { %6679 = vmatpush3.bf16.msra.mxu1 %v7711_v38  ;;  %6658 = vmatprep.subr.bf16.mxu0 %v7712_v62  ;;  %v1069_v38 = vrot.slane %v8768_v32, %v1068_v61 }
 0x2e0   : > { %6680 = vmatprep.subr.bf16.mxu1 %v7714_v47 }
 0x2e2   : > { %v5163_v1 = vpop.f32.mrf.mxu1  ;;  %6659 = vmatpush3.bf16.msra.mxu0 %v7713_v40 }
 0x2e3   : > { %v8914_v2 = vadd.f32 %v5163_v1, %v8859_v11  ;;  %6681 = vmatpush3.bf16.msra.mxu1 %v7715_v43  ;;  %6660 = vmatprep.subr.bf16.mxu0 %v7716_v23  ;;  %v7723_v11 = vld [vmem:[%s8090_s5 + $0x11e0] ss:$20 sps:$4 sm:$0xff]  }
 0x2e4   : > { %v5165_v8 = vpop.f32.mrf.mxu1  ;;  %6682 = vmatprep.subr.bf16.mxu1 %v7718_v51 }
 0x2e5   : > { %v5166_v9 = vadd.f32 %v5165_v8, %v8865_v18  ;;  %v7728_v18 = vld [vmem:[%s8090_s5 + $0x1050] ss:$20 sps:$4 sm:$0xff]  }
 0x2e6   : > { %v5167_v28 = vpop.f32.mrf.mxu1  ;;  %6661 = vmatpush3.bf16.msra.mxu0 %v7717_v3 }
 0x2e7   : > { %6683 = vmatpush3.bf16.msra.mxu1 %v7719_v5  ;;  %6662 = vmatprep.subr.bf16.mxu0 %v7720_v19 }
 0x2e8   : > { %6684 = vmatprep.subr.bf16.mxu1 %v7722_v39  ;;  %v5168_v14 = vpop.f32.mrf.mxu1 }
 0x2ea   : > { %6663 = vmatpush3.bf16.msra.mxu0 %v7721_v10 }
 0x2eb   : > { %6685 = vmatpush3.bf16.msra.mxu1 %v7723_v11  ;;  %6664 = vmatprep.subr.bf16.mxu0 %v7724_v12 }
 0x2ec   : > { %6686 = vmatprep.subr.bf16.mxu1 %v7726_v13 }
 0x2ee   : > { %6665 = vmatpush3.bf16.msra.mxu0 %v7725_v20 }
 0x2ef   : > { %6687 = vmatpush3.bf16.msra.mxu1 %v7727_v15  ;;  %6666 = vmatprep.subr.bf16.mxu0 %v7728_v18 }
 0x2f0   : > { %6688 = vmatprep.subr.bf16.mxu1 %v7730_v16 }
 0x2f2   : > { %6667 = vmatpush3.bf16.msra.mxu0 %v7729_v17 }
 0x2f3   : > { %6689 = vmatpush3.bf16.msra.mxu1 %v7731_v21  ;;  %6702 = vmatprep.subr.bf16.mxu0 %v7898_v27 }
 0x2f5   : > { %v5204_v29 = vpop.f32.mrf.mxu0  ;;  %5607 = vmatmul.mubr.bf16.vlgmr.msra.gmra.mxu0 %v8438_v63 }
 0x2f6   : > { %5647 = vmatmul.mubr.bf16.vlgmr.msra.gmra.mxu1 %v8442_v0  ;;  %6703 = vmatpush3.bf16.msra.mxu0 %v7732_v26  ;;  %v5205_v42 = vadd.f32 %v5204_v29, %v8914_v2 }
 0x2f7   : > { %6712 = vmatprep.mubr.msk.bf16.mxu0 %vm7899_vm1, %v7898_v27  ;;  %v5206_v25 = vpop.f32.mrf.mxu0  ;;  %6704 = vmatprep.subr.bf16.mxu0 %v7898_v27 }
 0x2f8   : > { %v5207_v22 = vadd.f32 %v5206_v25, %v5166_v9 }
 0x2f9   : > { %v5208_v30 = vpop.f32.mrf.mxu0 }
 0x2fa   : > { %6705 = vmatpush3.bf16.msra.mxu0 %v7733_v24 }
 0x2fb   : > { %v5209_v33 = vpop.f32.mrf.mxu0  ;;  %6706 = vmatprep.subr.bf16.mxu0 %v7898_v27 }
 0x2fe   : > { %6707 = vmatpush3.bf16.msra.mxu0 %v7734_v31 }
 0x2ff   : > { %6708 = vmatprep.subr.bf16.mxu0 %v7898_v27 }
 0x302   : > { %6709 = vmatpush3.bf16.msra.mxu0 %v7735_v34 }
 0x303   : > { %6710 = vmatprep.subr.bf16.mxu0 %v7898_v27 }
 0x306   : > { %6711 = vmatpush3.bf16.msra.mxu0 %v7736_v41 }
 0x309   : > { %6713 = vmatmul.mubr.msk.bf16.vlgmr.msra.gmra.mxu0 %vm4592_vm0, %v8777_v48 }
 0x322   : > { %v5245_v63 = vpop.f32.mrf.mxu1 }
 0x323   : > { %v5246_v44 = vadd.f32 %v5245_v63, %v5205_v42 }
 0x324   : > { %v5247_v0 = vpop.f32.mrf.mxu1 }
 0x325   : > { %v5248_v45 = vadd.f32 %v5247_v0, %v5207_v22 }
 0x326   : > { %v5249_v6 = vpop.f32.mrf.mxu1 }
 0x328   : > { %v5250_v7 = vpop.f32.mrf.mxu1 }
 0x335   : > { %v5286_v36 = vpop.f32.mrf.mxu0 }
 0x336   : > { %v5327_v37 = vpop.f32.mrf.mxu1  ;;  %v5287_v46 = vadd.f32 %v5286_v36, %v5246_v44 }
 0x337   : > { %v5288_v49 = vpop.f32.mrf.mxu0 }
 0x338   : > { %v5329_v52 = vpop.f32.mrf.mxu1  ;;  %v5289_v55 = vadd.f32 %v5288_v49, %v5248_v45  ;;  %v5328_v56 = vadd.f32 %v5327_v37, %v5287_v46 }
 0x339   : > { %v5290_v57 = vpop.f32.mrf.mxu0 }
 0x33a   : > { %v5331_v48 = vpop.f32.mrf.mxu1  ;;  %v5696_v58 = vmax.f32 %v5328_v56, 0.0  ;;  %v5330_v59 = vadd.f32 %v5329_v52, %v5289_v55 }
 0x33b   : > { %v5291_v50 = vpop.f32.mrf.mxu0 }
 0x33c   : > { %v5332_v4 = vpop.f32.mrf.mxu1  ;;  %5701 = vst [vmem:[%s8703_s17 + $0x10] sm:$0xff] %v5696_v58  ;;  %v5697_v60 = vmax.f32 %v5330_v59, 0.0 }
 0x33e   : > { %5702 = vst [vmem:[%s8703_s17 + $0x18] sm:$0xff] %v5697_v60 }
 0x355   : > { %v6536_v53 = vpop.f32.mrf.mxu0 }
 0x356   : > { %v6558_v35 = vpop.f32.mrf.mxu1 }
 0x357   : > { %v6537_v62 = vpop.f32.mrf.mxu0 }
 0x358   : > { %v6559_v47 = vpop.f32.mrf.mxu1  ;;  %v6538_v40 = vadd.f32 %v6537_v62, %v6536_v53 }
 0x359   : > { %v6560_v43 = vadd.f32 %v6559_v47, %v6558_v35  ;;  %v6539_v23 = vpop.f32.mrf.mxu0 }
 0x35a   : > { %v6561_v51 = vpop.f32.mrf.mxu1  ;;  %v5369_v1 = vadd.f32 %v6538_v40, %v1069_v38 }
 0x35b   : > { %v6540_v2 = vpop.f32.mrf.mxu0 }
 0x35c   : > { %v6562_v3 = vpop.f32.mrf.mxu1  ;;  %v5409_v5 = vadd.f32 %v6560_v43, %v5369_v1 }
 0x375   : > { %v6580_v8 = vpop.f32.mrf.mxu0 }
 0x376   : > { %v6602_v19 = vpop.f32.mrf.mxu1 }
 0x377   : > { %v6581_v39 = vpop.f32.mrf.mxu0 }
 0x378   : > { %v6603_v9 = vpop.f32.mrf.mxu1  ;;  %v6582_v28 = vadd.f32 %v6581_v39, %v6580_v8 }
 0x379   : > { %v6604_v54 = vadd.f32 %v6603_v9, %v6602_v19  ;;  %v6583_v10 = vpop.f32.mrf.mxu0 }
 0x37a   : > { %v6605_v11 = vpop.f32.mrf.mxu1  ;;  %v5449_v12 = vadd.f32 %v6582_v28, %v5409_v5 }
 0x37b   : > { %v6584_v32 = vpop.f32.mrf.mxu0 }
 0x37c   : > { %v6606_v13 = vpop.f32.mrf.mxu1  ;;  %v5489_v14 = vadd.f32 %v6604_v54, %v5449_v12 }
 0x395   : > { %v6624_v20 = vpop.f32.mrf.mxu0 }
 0x396   : > { %v6646_v15 = vpop.f32.mrf.mxu1 }
 0x397   : > { %v6625_v18 = vpop.f32.mrf.mxu0 }
 0x398   : > { %v6647_v16 = vpop.f32.mrf.mxu1  ;;  %v6626_v34 = vadd.f32 %v6625_v18, %v6624_v20 }
 0x399   : > { %v6627_v17 = vpop.f32.mrf.mxu0  ;;  %v6648_v6 = vadd.f32 %v6647_v16, %v6646_v15 }
 0x39a   : > { %v6649_v21 = vpop.f32.mrf.mxu1  ;;  %v5529_v0 = vadd.f32 %v6626_v34, %v5489_v14 }
 0x39b   : > { %v6628_v26 = vpop.f32.mrf.mxu0 }
 0x39c   : > { %v6650_v27 = vpop.f32.mrf.mxu1  ;;  %v5569_v42 = vadd.f32 %v6648_v6, %v5529_v0 }
 0x3b5   : > { %v6668_v29 = vpop.f32.mrf.mxu0 }
 0x3b6   : > { %v6690_v24 = vpop.f32.mrf.mxu1 }
 0x3b7   : > { %v6669_v25 = vpop.f32.mrf.mxu0 }
 0x3b8   : > { %v6691_v30 = vpop.f32.mrf.mxu1  ;;  %v6670_v7 = vadd.f32 %v6669_v25, %v6668_v29 }
 0x3b9   : > { %v6671_v31 = vpop.f32.mrf.mxu0  ;;  %v6692_v44 = vadd.f32 %v6691_v30, %v6690_v24 }
 0x3ba   : > { %v6693_v33 = vpop.f32.mrf.mxu1  ;;  %v5609_v22 = vadd.f32 %v6670_v7, %v5569_v42 }
 0x3bb   : > { %v6672_v41 = vpop.f32.mrf.mxu0 }
 0x3bc   : > { %v6694_v63 = vpop.f32.mrf.mxu1  ;;  %v5649_v36 = vadd.f32 %v6692_v44, %v5609_v22 }
 0x3c9   : > { %v5688_v37 = vpop.f32.mrf.mxu0 }
 0x3ca   : > { %v5689_v45 = vadd.f32 %v5688_v37, %v5649_v36 }
 0x3cb   : > { %v6714_v46 = vpop.f32.mrf.mxu0 }
 0x3cc   : > { %v5698_v49 = vmax.f32 %v5689_v45, 0.0 }
 0x3cd   : > { %v5691_v52 = vpop.f32.mrf.mxu0 }
 0x3ce   : > { %5703 = vst [vmem:[%s8703_s17 + $0x20] sm:$0xff] %v5698_v49 }
 0x3cf   : > { %v6715_v55 = vpop.f32.mrf.mxu0 }
 0x3d0   : > { %7834 = shalt.err (!%p7831_p10)
}
 0x3d1   : > { %s7835_s22 = scalar_lea.hbm %s8950_s9, 640  ;;  %s7839_s26 = scalar_lea.hbm %s8996_s3, 3840 }
 0x3d2   : > { %p7836_p9 = scmp.ne.s32.totalorder %s8950_s9, %s7835_s22  ;;  %p7840_p13 = scmp.lt.s32.totalorder %s8950_s9, %s8996_s3 }
 0x3d3   : > { %p7841_p11 = scmp.lt.s32.totalorder %s7839_s26, %s7835_s22 }
 0x3d4   : > { %p7837_p12 = pnand %p7836_p9, %p9012_p3 }
 0x3d5   : > { %p7842_p5 = por %p7841_p11, %p7840_p13 }
 0x3d6   : > { %p7838_p7 = pneg %p7837_p12 }
 0x3d8   : > { %p7843_p2 = pnand %p7842_p5, %p7838_p7 }
 0x3da   : > { %7846 = shalt.err (!%p7843_p2)
}
 0x3db   : > { %6729 = dma.vmem_to_hbm [thread:$0]  (%p9012_p3), %s8952_s7, 640, %s8950_s9, %s5705_s6  }
 0x3dc PF: > { %p6749_p8 = scmp.ge.s32.totalorder %s7889_s15, 2  ;;  %s5731_s28 = sand.u32 1, %s7877_s12  }
 0x3dd   : > { %p9013_p1 = scmp.ne.s32.totalorder %s9004_s29, 0  ;;  %s5732_s4 = scalar_lea.sflag [#allocation4], %s5731_s28 }
 0x3df   : > { %p6743_p6 = pnand %p6749_p8, %p9013_p1 }
 0x3e1   : > { %p6744_p0 = pneg %p6743_p6 }
 0x3e3   : > { %7872 = dma.done.wait (%p6744_p0), %s5732_s4, 640  }
 0x3e4   : > { %7874 = vsyncadd (%p6744_p0), %s5732_s4, 4294966656  ;;  %p17_p4 = scmp.ge.s32.totalorder %s7942_s16, 8   ;;  %s9014_s12 = smov %s7881_s13 }
 0x3e5   : > { %s9015_s13 = smov %s7885_s14  ;;  %s9016_s14 = smov %s7952_s19 }
 0x3e6   : > { %s9017_s15 = smov %s7942_s16  ;;  %19 = sbr.rel (!%p17_p4) target bundleno = 6 (0x6), region = 93 }
 0x3eb   :  { %5737 = vsyncpa [#allocation3], 1 }
 0x3ec   :  { %5739 = vsyncpa [#allocation3 + $0x1], 1 }
 0x3ed   :  { %5740 = vsyncpa [#allocation6], 1 }
 0x3ee   :  { %5742 = vsyncpa [#allocation6 + $0x1], 1 }
 0x3ef   :  { %5743 = vsyncpa [#allocation4], 1 }
 0x3f0   :  { %5745 = vsyncpa [#allocation4 + $0x1], 1 }

</bundles_post_ra>
